<compile_context>
chip_gen: v6e
topology: v6e:2x2x1
jax: 0.10.0
libtpu: 0.0.40
codegen_flags: <defaults>
</compile_context>

<pallas_src>
import functools

import numpy as np
import jax
import jax.numpy as jnp
from jax.experimental import pallas as pl
from jax.experimental.pallas import tpu as pltpu

PATCH = 9
KK = PATCH * PATCH            # 81 patch elements
KP = 128                      # 81 -> 128, lane-aligned patch dim
NEG_SLOPE = 0.2


def _round_up(n, m):
    return ((n + m - 1) // m) * m


# ---------------------------------------------------------------------------
# Pallas kernel: fused (1x1x1 conv channel-mix) + attention + count_nonzero
# normalization + correction matmul + LeakyReLU(0.2)*dec + dec.
# One grid step processes a TL1-row tile of L1 for ALL output channels; the
# (TL1, L2P) attention tile lives only in registers/VMEM.
#
#   ux_ref : (cin1, TL1, KP)   streamed  (raw x, unfolded, zero padded)
#   uy_ref : (cin2, L2P, KP)   resident
#   wi/bi, wf/bf : SMEM conv weights/biases
#   v_ref  : (C, L2P, KP)      resident  (pooled+unfolded decoder)
#   dec_ref: (C, TL1, KP)      streamed  (unfolded decoder)
#   o_ref  : (C, TL1, KP)      streamed output
# ---------------------------------------------------------------------------
def _fused_attention_kernel(ux_ref, uy_ref, wi_ref, bi_ref, wf_ref, bf_ref,
                            v_ref, dec_ref, o_ref, *, c_out, cin1, cin2, l2, kk):
    ux = ux_ref[...]                      # (cin1, TL1, KP)
    uy = uy_ref[...]                      # (cin2, L2P, KP)
    l2p, kp = uy.shape[1], uy.shape[2]

    # The conv bias on the feature-map side must land only on real
    # (row < l2, lane < 81) positions so the structural zero padding stays
    # exact (count_nonzero and the matmuls are then unaffected by padding).
    lane = jax.lax.broadcasted_iota(jnp.int32, (l2p, kp), 1)
    row = jax.lax.broadcasted_iota(jnp.int32, (l2p, kp), 0)
    fmask = jnp.where((lane < kk) & (row < l2), 1.0, 0.0).astype(jnp.float32)

    for o in range(c_out):                # C is tiny and static -> unrolled
        # fused 1x1x1 convs (channel mix) on the pre-unfolded operands
        ui = wi_ref[o, 0] * ux[0]
        for ci in range(1, cin1):
            ui = ui + wi_ref[o, ci] * ux[ci]
        ui = ui + bi_ref[o]               # unmasked bias is safe: uf is masked

        uf = wf_ref[o, 0] * uy[0]
        for ci in range(1, cin2):
            uf = uf + wf_ref[o, ci] * uy[ci]
        uf = uf + bf_ref[o] * fmask

        # attention (TL1, L2P); L2P padded columns are exact zeros
        att = jnp.einsum("lk,mk->lm", ui, uf,
                         preferred_element_type=jnp.float32)
        nz = jnp.sum((att != 0.0).astype(jnp.float32),
                     axis=-1, keepdims=True) + 1e-5            # count_nonzero
        corr = jnp.dot(att / nz, v_ref[o],
                       preferred_element_type=jnp.float32)     # (TL1, KP)
        dec = dec_ref[o]
        act = jnp.where(corr >= 0.0, corr, NEG_SLOPE * corr)   # LeakyReLU(0.2)
        o_ref[o] = act * dec + dec


# ---------------------------------------------------------------------------
# Host-side glue: batched non-overlapping unfold / fold (pure layout
# reshuffles) and the tiny separable AvgPool3d.
# ---------------------------------------------------------------------------
def unfold_batched(x3, p):
    # x3: (C, H, W) -> (C, p*p, L) == nn.Unfold(kernel=(p,p), stride=(p,p))
    c, h, w = x3.shape
    hb, wb = h // p, w // p
    xb = x3[:, :hb * p, :wb * p].reshape(c, hb, p, wb, p)
    return xb.transpose(0, 2, 4, 1, 3).reshape(c, p * p, hb * wb)


def fold_batched(u, out_hw, p, base):
    # u: (C, p*p, L) -> write patch blocks into `base` (C, H, W); any spatial
    # remainder not covered by whole patches keeps `base` (== decoder there,
    # matching correction==0 -> LeakyReLU(0)*dec + dec == dec).
    c = u.shape[0]
    h, w = out_hw
    hb, wb = h // p, w // p
    blocks = u.reshape(c, p, p, hb, wb).transpose(0, 3, 1, 4, 2)
    blocks = blocks.reshape(c, hb * p, wb * p)
    return base.at[:, :hb * p, :wb * p].set(blocks)


def _avg_pool3d(x):
    # AvgPool3d(kernel=3, stride=2, padding=1, count_include_pad=False)
    # on a (C, D, H, W) volume.  Separable / O(27) per output, wrapper-side.
    dims, strides = (1, 3, 3, 3), (1, 2, 2, 2)
    pad = [(0, 0), (1, 1), (1, 1), (1, 1)]
    s = jax.lax.reduce_window(x, 0.0, jax.lax.add, dims, strides, pad)
    cnt = jax.lax.reduce_window(jnp.ones_like(x), 0.0, jax.lax.add,
                                dims, strides, pad)
    return s / cnt


# ---------------------------------------------------------------------------
# Full forward pass (1 Pallas call)
# ---------------------------------------------------------------------------
def across_attention_multi_forward(x, y, z, params, *, tile_l1=128):
    b, cin1, d1, h1, w1 = x.shape
    _, cin2, d2, h2, w2 = y.shape
    _, c, dz, hz, wz = z.shape
    assert b == 1 and y.shape[0] == 1 and z.shape[0] == 1, \
        "module's reshapes assume batch == 1"
    assert params["w_img"].shape == (c, cin1)
    assert params["w_fea"].shape == (c, cin2)
    p = PATCH
    f32 = jnp.float32

    x3 = x[0].astype(f32).reshape(cin1, d1, h1 * w1)
    y3 = y[0].astype(f32).reshape(cin2, d2, h2 * w2)
    decoder = z[0].astype(f32)                        # (C, Dz, Hz, Wz)
    dec2d = decoder.reshape(c, dz, hz * wz)

    # separable avg-pool of the decoder (wrapper side; tiny)
    pooled = _avg_pool3d(decoder)
    dd, hd, wd = pooled.shape[1:]
    pooled2d = pooled.reshape(c, dd, hd * wd)

    # unfold everything BEFORE the channel mix (1x1x1 convs commute with the
    # unfold, so the mix is fused into the Pallas kernel) -> (chan, L, 81)
    ux = unfold_batched(x3, p).transpose(0, 2, 1)         # (cin1, L1, 81)
    uy = unfold_batched(y3, p).transpose(0, 2, 1)         # (cin2, L2, 81)
    v = unfold_batched(pooled2d, p).transpose(0, 2, 1)    # (C,   L2, 81)
    dec_unf = unfold_batched(dec2d, p).transpose(0, 2, 1)  # (C,   L1, 81)

    l1 = ux.shape[1]
    l2 = uy.shape[1]
    assert v.shape[1] == l2, "pooled-decoder L2 must match attention L2"
    assert dec_unf.shape[1] == l1, "decoder L1 must match attention L1"

    # adaptive L1 tile (<=128 rows, sublane multiple); lane-dense pads
    tl1 = min(tile_l1, max(8, _round_up(l1, 8)))
    l1p = _round_up(l1, tl1)
    l2p = max(128, _round_up(l2, 128))

    def pad_lk(a, lp):                                    # exact-zero padding
        return jnp.pad(a, ((0, 0), (0, lp - a.shape[1]), (0, KP - KK)))

    ux_p = pad_lk(ux, l1p)
    uy_p = pad_lk(uy, l2p)
    v_p = pad_lk(v, l2p)
    dec_p = pad_lk(dec_unf, l1p)

    kernel = functools.partial(_fused_attention_kernel, c_out=c, cin1=cin1,
                               cin2=cin2, l2=l2, kk=KK)
    smem_spec = pl.BlockSpec(memory_space=pltpu.MemorySpace.SMEM)
    grid = (l1p // tl1,)

    out_p = pl.pallas_call(
        kernel,
        out_shape=jax.ShapeDtypeStruct((c, l1p, KP), f32),
        grid=grid,
        in_specs=[
            pl.BlockSpec((cin1, tl1, KP), lambda i: (0, i, 0)),   # ux: streamed
            pl.BlockSpec((cin2, l2p, KP), lambda i: (0, 0, 0)),   # uy: resident
            smem_spec, smem_spec, smem_spec, smem_spec,           # conv w / b
            pl.BlockSpec((c, l2p, KP), lambda i: (0, 0, 0)),      # v : resident
            pl.BlockSpec((c, tl1, KP), lambda i: (0, i, 0)),      # dec: streamed
        ],
        out_specs=pl.BlockSpec((c, tl1, KP), lambda i: (0, i, 0)),
        compiler_params=pltpu.CompilerParams(
            dimension_semantics=("parallel",),
            vmem_limit_bytes=32 * 1024 * 1024),
    )(ux_p, uy_p,
      params["w_img"].astype(f32), params["b_img"].astype(f32),
      params["w_fea"].astype(f32), params["b_fea"].astype(f32),
      v_p, dec_p)

    out_unf = out_p[:, :l1, :KK].transpose(0, 2, 1)       # (C, 81, L1)
    out2d = fold_batched(out_unf, (dz, hz * wz), p, base=dec2d)
    return out2d.reshape(1, c, dz, hz, wz)


# ---------------------------------------------------------------------------
# Pure-JAX reference (independent per-channel implementation, for checking)
# ---------------------------------------------------------------------------
def _unfold_ref(x2d, p):
    h, w = x2d.shape
    hb, wb = (h - p) // p + 1, (w - p) // p + 1
    xx = x2d[: hb * p, : wb * p]
    return xx.reshape(hb, p, wb, p).transpose(1, 3, 0, 2).reshape(p * p, hb * wb)


def _fold_ref(u, out_hw, p):
    h, w = out_hw
    hb, wb = (h - p) // p + 1, (w - p) // p + 1
    blocks = u.reshape(p, p, hb, wb).transpose(2, 0, 3, 1).reshape(hb * p, wb * p)
    out = jnp.zeros((h, w), u.dtype)
    return out.at[: hb * p, : wb * p].set(blocks)


def reference_forward(x, y, z, params):
    b, cin1, d1, h1, w1 = x.shape
    _, cin2, dy, hy, wy = y.shape
    c = params["w_img"].shape[0]
    p = PATCH
    xc = params["w_img"] @ x.reshape(cin1, -1) + params["b_img"][:, None]
    yc = params["w_fea"] @ y.reshape(cin2, -1) + params["b_fea"][:, None]
    x_rs = xc.reshape(c, d1, h1 * w1)
    y_rs = yc.reshape(c, dy, hy * wy)
    att = jnp.stack(
        [_unfold_ref(x_rs[i], p).T @ _unfold_ref(y_rs[i], p) for i in range(c)])
    decoder = z[0]
    _, dz, hz, wz = decoder.shape
    pooled = _avg_pool3d(decoder)
    dd, hd, wd = pooled.shape[1:]
    x_resize = pooled.reshape(c, dd, hd * wd)
    corr = []
    for i in range(c):
        nz = jnp.sum((att[i] != 0.0).astype(jnp.float32),
                     axis=-1, keepdims=True) + 1e-5
        vi = _unfold_ref(x_resize[i], p).T
        a = (att[i] / nz) @ vi
        corr.append(_fold_ref(a.T, (dz, hz * wz), p))
    corr = jnp.stack(corr)
    act = jnp.where(corr >= 0.0, corr, NEG_SLOPE * corr)
    out = act * decoder.reshape(c, dz, hz * wz) + decoder.reshape(c, dz, hz * wz)
    return out.reshape(1, c, dz, hz, wz)


# ---------------------------------------------------------------------------
if __name__ == "__main__":
    key = jax.random.PRNGKey(0)
    k1, k2, k3, k4, k5, k6, k7 = jax.random.split(key, 7)

    in_dim1, in_dim2, out_dim = 4, 4, 3
    # shapes consistent with the 9x9 unfold/fold and the AvgPool3d:
    #   x,z spatial (18,6,6) -> L1 = 2*4 = 8 ; y spatial (9,3,3) -> L2 = 1
    #   down_avg(z) -> (9,3,3) -> unfold -> L2' = 1 == L2
    x = jax.random.normal(k1, (1, in_dim1, 18, 6, 6), jnp.float32)
    y = jax.random.normal(k2, (1, in_dim2, 9, 3, 3), jnp.float32)
    z = jax.random.normal(k3, (1, out_dim, 18, 6, 6), jnp.float32)

    params = {
        "w_img": 0.1 * jax.random.normal(k4, (out_dim, in_dim1), jnp.float32),
        "b_img": 0.1 * jax.random.normal(k5, (out_dim,), jnp.float32),
        "w_fea": 0.1 * jax.random.normal(k6, (out_dim, in_dim2), jnp.float32),
        "b_fea": 0.1 * jax.random.normal(k7, (out_dim,), jnp.float32),
    }

    fwd = jax.jit(across_attention_multi_forward)
    out = jax.block_until_ready(fwd(x, y, z, params))

    ref = jax.block_until_ready(reference_forward(x, y, z, params))
    assert out.shape == z.shape
    assert np.allclose(np.asarray(out), np.asarray(ref), rtol=1e-4, atol=1e-4), \
        "mismatch vs reference"
    print("KERNEL_OK")
</pallas_src>

<mosaic_0001>
module attributes {stable_mosaic.version = 11 : i64} {
  func.func @_fused_attention_kernel(%arg0: i32, %arg1: memref<4x8x128xf32, #tpu.memory_space<vmem>>, %arg2: memref<4x128x128xf32, #tpu.memory_space<vmem>>, %arg3: memref<3x4xf32, #tpu.memory_space<smem>>, %arg4: memref<3xf32, #tpu.memory_space<smem>>, %arg5: memref<3x4xf32, #tpu.memory_space<smem>>, %arg6: memref<3xf32, #tpu.memory_space<smem>>, %arg7: memref<3x128x128xf32, #tpu.memory_space<vmem>>, %arg8: memref<3x8x128xf32, #tpu.memory_space<vmem>>, %arg9: memref<3x8x128xf32, #tpu.memory_space<vmem>>) attributes {dimension_semantics = [#tpu.dimension_semantics<parallel>], iteration_bounds = array<i64: 1>, scalar_prefetch = 0 : i64, scratch_operands = 0 : i64, tpu.core_type = #tpu.core_type<tc>, window_params = [{transform_indices = @transform_0, window_bounds = array<i64: 4, 8, 128>}, {pipeline_mode = #tpu.pipeline_mode<synchronous>, transform_indices = @transform_1, window_bounds = array<i64: 4, 128, 128>}, {transform_indices = @transform_2, window_bounds = array<i64: 3, 4>}, {transform_indices = @transform_3, window_bounds = array<i64: 3>}, {transform_indices = @transform_4, window_bounds = array<i64: 3, 4>}, {transform_indices = @transform_5, window_bounds = array<i64: 3>}, {pipeline_mode = #tpu.pipeline_mode<synchronous>, transform_indices = @transform_6, window_bounds = array<i64: 3, 128, 128>}, {transform_indices = @transform_7, window_bounds = array<i64: 3, 8, 128>}, {transform_indices = @transform_8, window_bounds = array<i64: 3, 8, 128>}]} {
    %c0 = arith.constant 0 : index
    %c0_0 = arith.constant 0 : index
    %c0_1 = arith.constant 0 : index
    %0 = vector.load %arg1[%c0, %c0_0, %c0_1] : memref<4x8x128xf32, #tpu.memory_space<vmem>>, vector<4x8x128xf32>
    %c0_2 = arith.constant 0 : index
    %c0_3 = arith.constant 0 : index
    %c0_4 = arith.constant 0 : index
    %1 = vector.load %arg2[%c0_2, %c0_3, %c0_4] : memref<4x128x128xf32, #tpu.memory_space<vmem>>, vector<4x128x128xf32>
    %2 = tpu.iota {dimensions = array<i32: 1>} : vector<128x128xi32>
    %3 = tpu.iota {dimensions = array<i32: 0>} : vector<128x128xi32>
    %c81_i32 = arith.constant 81 : i32
    %4 = vector.broadcast %c81_i32 : i32 to vector<128x128xi32>
    %5 = arith.cmpi slt, %2, %4 : vector<128x128xi32>
    %c1_i32 = arith.constant 1 : i32
    %6 = vector.broadcast %c1_i32 : i32 to vector<128x128xi32>
    %7 = arith.cmpi slt, %3, %6 : vector<128x128xi32>
    %8 = arith.andi %5, %7 : vector<128x128xi1>
    %cst = arith.constant 1.000000e+00 : f32
    %cst_5 = arith.constant 0.000000e+00 : f32
    %9 = vector.broadcast %cst : f32 to vector<128x128xf32>
    %10 = vector.broadcast %cst_5 : f32 to vector<128x128xf32>
    %11 = arith.select %8, %9, %10 : vector<128x128xi1>, vector<128x128xf32>
    %c0_6 = arith.constant 0 : index
    %c0_7 = arith.constant 0 : index
    %12 = memref.load %arg3[%c0_6, %c0_7] : memref<3x4xf32, #tpu.memory_space<smem>>
    %13 = vector.extract_strided_slice %0 {offsets = [0, 0, 0], sizes = [1, 8, 128], strides = [1, 1, 1]} : vector<4x8x128xf32> to vector<1x8x128xf32>
    %14 = vector.shape_cast %13 : vector<1x8x128xf32> to vector<8x128xf32>
    %15 = vector.broadcast %12 : f32 to vector<8x128xf32>
    %16 = arith.mulf %15, %14 : vector<8x128xf32>
    %c0_8 = arith.constant 0 : index
    %c1 = arith.constant 1 : index
    %17 = memref.load %arg3[%c0_8, %c1] : memref<3x4xf32, #tpu.memory_space<smem>>
    %18 = vector.extract_strided_slice %0 {offsets = [1, 0, 0], sizes = [1, 8, 128], strides = [1, 1, 1]} : vector<4x8x128xf32> to vector<1x8x128xf32>
    %19 = vector.shape_cast %18 : vector<1x8x128xf32> to vector<8x128xf32>
    %20 = vector.broadcast %17 : f32 to vector<8x128xf32>
    %21 = arith.mulf %20, %19 : vector<8x128xf32>
    %22 = arith.addf %16, %21 : vector<8x128xf32>
    %c0_9 = arith.constant 0 : index
    %c2 = arith.constant 2 : index
    %23 = memref.load %arg3[%c0_9, %c2] : memref<3x4xf32, #tpu.memory_space<smem>>
    %24 = vector.extract_strided_slice %0 {offsets = [2, 0, 0], sizes = [1, 8, 128], strides = [1, 1, 1]} : vector<4x8x128xf32> to vector<1x8x128xf32>
    %25 = vector.shape_cast %24 : vector<1x8x128xf32> to vector<8x128xf32>
    %26 = vector.broadcast %23 : f32 to vector<8x128xf32>
    %27 = arith.mulf %26, %25 : vector<8x128xf32>
    %28 = arith.addf %22, %27 : vector<8x128xf32>
    %c0_10 = arith.constant 0 : index
    %c3 = arith.constant 3 : index
    %29 = memref.load %arg3[%c0_10, %c3] : memref<3x4xf32, #tpu.memory_space<smem>>
    %30 = vector.extract_strided_slice %0 {offsets = [3, 0, 0], sizes = [1, 8, 128], strides = [1, 1, 1]} : vector<4x8x128xf32> to vector<1x8x128xf32>
    %31 = vector.shape_cast %30 : vector<1x8x128xf32> to vector<8x128xf32>
    %32 = vector.broadcast %29 : f32 to vector<8x128xf32>
    %33 = arith.mulf %32, %31 : vector<8x128xf32>
    %34 = arith.addf %28, %33 : vector<8x128xf32>
    %c0_11 = arith.constant 0 : index
    %35 = memref.load %arg4[%c0_11] : memref<3xf32, #tpu.memory_space<smem>>
    %36 = vector.broadcast %35 : f32 to vector<8x128xf32>
    %37 = arith.addf %34, %36 : vector<8x128xf32>
    %c0_12 = arith.constant 0 : index
    %c0_13 = arith.constant 0 : index
    %38 = memref.load %arg5[%c0_12, %c0_13] : memref<3x4xf32, #tpu.memory_space<smem>>
    %39 = vector.extract_strided_slice %1 {offsets = [0, 0, 0], sizes = [1, 128, 128], strides = [1, 1, 1]} : vector<4x128x128xf32> to vector<1x128x128xf32>
    %40 = vector.shape_cast %39 : vector<1x128x128xf32> to vector<128x128xf32>
    %41 = vector.broadcast %38 : f32 to vector<128x128xf32>
    %42 = arith.mulf %41, %40 : vector<128x128xf32>
    %c0_14 = arith.constant 0 : index
    %c1_15 = arith.constant 1 : index
    %43 = memref.load %arg5[%c0_14, %c1_15] : memref<3x4xf32, #tpu.memory_space<smem>>
    %44 = vector.extract_strided_slice %1 {offsets = [1, 0, 0], sizes = [1, 128, 128], strides = [1, 1, 1]} : vector<4x128x128xf32> to vector<1x128x128xf32>
    %45 = vector.shape_cast %44 : vector<1x128x128xf32> to vector<128x128xf32>
    %46 = vector.broadcast %43 : f32 to vector<128x128xf32>
    %47 = arith.mulf %46, %45 : vector<128x128xf32>
    %48 = arith.addf %42, %47 : vector<128x128xf32>
    %c0_16 = arith.constant 0 : index
    %c2_17 = arith.constant 2 : index
    %49 = memref.load %arg5[%c0_16, %c2_17] : memref<3x4xf32, #tpu.memory_space<smem>>
    %50 = vector.extract_strided_slice %1 {offsets = [2, 0, 0], sizes = [1, 128, 128], strides = [1, 1, 1]} : vector<4x128x128xf32> to vector<1x128x128xf32>
    %51 = vector.shape_cast %50 : vector<1x128x128xf32> to vector<128x128xf32>
    %52 = vector.broadcast %49 : f32 to vector<128x128xf32>
    %53 = arith.mulf %52, %51 : vector<128x128xf32>
    %54 = arith.addf %48, %53 : vector<128x128xf32>
    %c0_18 = arith.constant 0 : index
    %c3_19 = arith.constant 3 : index
    %55 = memref.load %arg5[%c0_18, %c3_19] : memref<3x4xf32, #tpu.memory_space<smem>>
    %56 = vector.extract_strided_slice %1 {offsets = [3, 0, 0], sizes = [1, 128, 128], strides = [1, 1, 1]} : vector<4x128x128xf32> to vector<1x128x128xf32>
    %57 = vector.shape_cast %56 : vector<1x128x128xf32> to vector<128x128xf32>
    %58 = vector.broadcast %55 : f32 to vector<128x128xf32>
    %59 = arith.mulf %58, %57 : vector<128x128xf32>
    %60 = arith.addf %54, %59 : vector<128x128xf32>
    %c0_20 = arith.constant 0 : index
    %61 = memref.load %arg6[%c0_20] : memref<3xf32, #tpu.memory_space<smem>>
    %62 = vector.broadcast %61 : f32 to vector<128x128xf32>
    %63 = arith.mulf %62, %11 : vector<128x128xf32>
    %64 = arith.addf %60, %63 : vector<128x128xf32>
    "tpu.trace_start"() <{level = 10 : i32, message = "lk,mk->lm"}> : () -> ()
    %cst_21 = arith.constant dense<0.000000e+00> : vector<8x128xf32>
    %65 = tpu.matmul %37, %64, %cst_21 {dimension_numbers = #tpu.dot_dimension_numbers<[1], [1], [0], [0], [0, 0, 1, 0], [], []>} : vector<8x128xf32>, vector<128x128xf32>, vector<8x128xf32> -> vector<8x128xf32>
    %cst_22 = arith.constant 0.000000e+00 : f32
    "tpu.trace_stop"() : () -> ()
    %66 = vector.broadcast %cst_22 : f32 to vector<8x128xf32>
    %67 = arith.cmpf one, %65, %66 : vector<8x128xf32>
    %68 = arith.extui %67 : vector<8x128xi1> to vector<8x128xi32>
    %69 = arith.sitofp %68 : vector<8x128xi32> to vector<8x128xf32>
    %cst_23 = arith.constant dense<0.000000e+00> : vector<8xf32>
    %70 = vector.multi_reduction <add>, %69, %cst_23 [1] : vector<8x128xf32> to vector<8xf32>
    %71 = vector.shape_cast %70 : vector<8xf32> to vector<8x1xf32>
    %cst_24 = arith.constant 9.99999974E-6 : f32
    %72 = vector.broadcast %cst_24 : f32 to vector<8x1xf32>
    %73 = arith.addf %71, %72 : vector<8x1xf32>
    %74 = vector.broadcast %73 : vector<8x1xf32> to vector<8x128xf32>
    %75 = arith.divf %65, %74 : vector<8x128xf32>
    %c0_25 = arith.constant 0 : index
    %c0_26 = arith.constant 0 : index
    %c0_27 = arith.constant 0 : index
    %76 = vector.load %arg7[%c0_25, %c0_26, %c0_27] : memref<3x128x128xf32, #tpu.memory_space<vmem>>, vector<1x128x128xf32>
    %77 = vector.shape_cast %76 : vector<1x128x128xf32> to vector<128x128xf32>
    %cst_28 = arith.constant dense<0.000000e+00> : vector<8x128xf32>
    %78 = tpu.matmul %75, %77, %cst_28 {dimension_numbers = #tpu.dot_dimension_numbers<[1], [0], [0], [1], [0, 0, 1, 1], [], []>} : vector<8x128xf32>, vector<128x128xf32>, vector<8x128xf32> -> vector<8x128xf32>
    %c0_29 = arith.constant 0 : index
    %c0_30 = arith.constant 0 : index
    %c0_31 = arith.constant 0 : index
    %79 = vector.load %arg8[%c0_29, %c0_30, %c0_31] : memref<3x8x128xf32, #tpu.memory_space<vmem>>, vector<1x8x128xf32>
    %80 = vector.shape_cast %79 : vector<1x8x128xf32> to vector<8x128xf32>
    %cst_32 = arith.constant 0.000000e+00 : f32
    %81 = vector.broadcast %cst_32 : f32 to vector<8x128xf32>
    %82 = arith.cmpf oge, %78, %81 : vector<8x128xf32>
    %cst_33 = arith.constant 2.000000e-01 : f32
    %83 = vector.broadcast %cst_33 : f32 to vector<8x128xf32>
    %84 = arith.mulf %83, %78 : vector<8x128xf32>
    %85 = arith.select %82, %78, %84 : vector<8x128xi1>, vector<8x128xf32>
    %86 = arith.mulf %85, %80 : vector<8x128xf32>
    %87 = arith.addf %86, %80 : vector<8x128xf32>
    %c0_34 = arith.constant 0 : index
    %c0_35 = arith.constant 0 : index
    %c0_36 = arith.constant 0 : index
    %88 = vector.load %arg9[%c0_34, %c0_35, %c0_36] : memref<3x8x128xf32, #tpu.memory_space<vmem>>, vector<1x8x128xf32>
    %89 = vector.shape_cast %88 : vector<1x8x128xf32> to vector<8x128xf32>
    %90 = vector.shape_cast %87 : vector<8x128xf32> to vector<1x8x128xf32>
    tpu.vector_store %arg9[%c0_34, %c0_35, %c0_36], %90 {strides = array<i32>} : memref<3x8x128xf32, #tpu.memory_space<vmem>>, vector<1x8x128xf32>,
    %c1_37 = arith.constant 1 : index
    %c0_38 = arith.constant 0 : index
    %91 = memref.load %arg3[%c1_37, %c0_38] : memref<3x4xf32, #tpu.memory_space<smem>>
    %92 = vector.extract_strided_slice %0 {offsets = [0, 0, 0], sizes = [1, 8, 128], strides = [1, 1, 1]} : vector<4x8x128xf32> to vector<1x8x128xf32>
    %93 = vector.shape_cast %92 : vector<1x8x128xf32> to vector<8x128xf32>
    %94 = vector.broadcast %91 : f32 to vector<8x128xf32>
    %95 = arith.mulf %94, %93 : vector<8x128xf32>
    %c1_39 = arith.constant 1 : index
    %c1_40 = arith.constant 1 : index
    %96 = memref.load %arg3[%c1_39, %c1_40] : memref<3x4xf32, #tpu.memory_space<smem>>
    %97 = vector.extract_strided_slice %0 {offsets = [1, 0, 0], sizes = [1, 8, 128], strides = [1, 1, 1]} : vector<4x8x128xf32> to vector<1x8x128xf32>
    %98 = vector.shape_cast %97 : vector<1x8x128xf32> to vector<8x128xf32>
    %99 = vector.broadcast %96 : f32 to vector<8x128xf32>
    %100 = arith.mulf %99, %98 : vector<8x128xf32>
    %101 = arith.addf %95, %100 : vector<8x128xf32>
    %c1_41 = arith.constant 1 : index
    %c2_42 = arith.constant 2 : index
    %102 = memref.load %arg3[%c1_41, %c2_42] : memref<3x4xf32, #tpu.memory_space<smem>>
    %103 = vector.extract_strided_slice %0 {offsets = [2, 0, 0], sizes = [1, 8, 128], strides = [1, 1, 1]} : vector<4x8x128xf32> to vector<1x8x128xf32>
    %104 = vector.shape_cast %103 : vector<1x8x128xf32> to vector<8x128xf32>
    %105 = vector.broadcast %102 : f32 to vector<8x128xf32>
    %106 = arith.mulf %105, %104 : vector<8x128xf32>
    %107 = arith.addf %101, %106 : vector<8x128xf32>
    %c1_43 = arith.constant 1 : index
    %c3_44 = arith.constant 3 : index
    %108 = memref.load %arg3[%c1_43, %c3_44] : memref<3x4xf32, #tpu.memory_space<smem>>
    %109 = vector.extract_strided_slice %0 {offsets = [3, 0, 0], sizes = [1, 8, 128], strides = [1, 1, 1]} : vector<4x8x128xf32> to vector<1x8x128xf32>
    %110 = vector.shape_cast %109 : vector<1x8x128xf32> to vector<8x128xf32>
    %111 = vector.broadcast %108 : f32 to vector<8x128xf32>
    %112 = arith.mulf %111, %110 : vector<8x128xf32>
    %113 = arith.addf %107, %112 : vector<8x128xf32>
    %c1_45 = arith.constant 1 : index
    %114 = memref.load %arg4[%c1_45] : memref<3xf32, #tpu.memory_space<smem>>
    %115 = vector.broadcast %114 : f32 to vector<8x128xf32>
    %116 = arith.addf %113, %115 : vector<8x128xf32>
    %c1_46 = arith.constant 1 : index
    %c0_47 = arith.constant 0 : index
    %117 = memref.load %arg5[%c1_46, %c0_47] : memref<3x4xf32, #tpu.memory_space<smem>>
    %118 = vector.extract_strided_slice %1 {offsets = [0, 0, 0], sizes = [1, 128, 128], strides = [1, 1, 1]} : vector<4x128x128xf32> to vector<1x128x128xf32>
    %119 = vector.shape_cast %118 : vector<1x128x128xf32> to vector<128x128xf32>
    %120 = vector.broadcast %117 : f32 to vector<128x128xf32>
    %121 = arith.mulf %120, %119 : vector<128x128xf32>
    %c1_48 = arith.constant 1 : index
    %c1_49 = arith.constant 1 : index
    %122 = memref.load %arg5[%c1_48, %c1_49] : memref<3x4xf32, #tpu.memory_space<smem>>
    %123 = vector.extract_strided_slice %1 {offsets = [1, 0, 0], sizes = [1, 128, 128], strides = [1, 1, 1]} : vector<4x128x128xf32> to vector<1x128x128xf32>
    %124 = vector.shape_cast %123 : vector<1x128x128xf32> to vector<128x128xf32>
    %125 = vector.broadcast %122 : f32 to vector<128x128xf32>
    %126 = arith.mulf %125, %124 : vector<128x128xf32>
    %127 = arith.addf %121, %126 : vector<128x128xf32>
    %c1_50 = arith.constant 1 : index
    %c2_51 = arith.constant 2 : index
    %128 = memref.load %arg5[%c1_50, %c2_51] : memref<3x4xf32, #tpu.memory_space<smem>>
    %129 = vector.extract_strided_slice %1 {offsets = [2, 0, 0], sizes = [1, 128, 128], strides = [1, 1, 1]} : vector<4x128x128xf32> to vector<1x128x128xf32>
    %130 = vector.shape_cast %129 : vector<1x128x128xf32> to vector<128x128xf32>
    %131 = vector.broadcast %128 : f32 to vector<128x128xf32>
    %132 = arith.mulf %131, %130 : vector<128x128xf32>
    %133 = arith.addf %127, %132 : vector<128x128xf32>
    %c1_52 = arith.constant 1 : index
    %c3_53 = arith.constant 3 : index
    %134 = memref.load %arg5[%c1_52, %c3_53] : memref<3x4xf32, #tpu.memory_space<smem>>
    %135 = vector.extract_strided_slice %1 {offsets = [3, 0, 0], sizes = [1, 128, 128], strides = [1, 1, 1]} : vector<4x128x128xf32> to vector<1x128x128xf32>
    %136 = vector.shape_cast %135 : vector<1x128x128xf32> to vector<128x128xf32>
    %137 = vector.broadcast %134 : f32 to vector<128x128xf32>
    %138 = arith.mulf %137, %136 : vector<128x128xf32>
    %139 = arith.addf %133, %138 : vector<128x128xf32>
    %c1_54 = arith.constant 1 : index
    %140 = memref.load %arg6[%c1_54] : memref<3xf32, #tpu.memory_space<smem>>
    %141 = vector.broadcast %140 : f32 to vector<128x128xf32>
    %142 = arith.mulf %141, %11 : vector<128x128xf32>
    %143 = arith.addf %139, %142 : vector<128x128xf32>
    "tpu.trace_start"() <{level = 10 : i32, message = "lk,mk->lm"}> : () -> ()
    %cst_55 = arith.constant dense<0.000000e+00> : vector<8x128xf32>
    %144 = tpu.matmul %116, %143, %cst_55 {dimension_numbers = #tpu.dot_dimension_numbers<[1], [1], [0], [0], [0, 0, 1, 0], [], []>} : vector<8x128xf32>, vector<128x128xf32>, vector<8x128xf32> -> vector<8x128xf32>
    %cst_56 = arith.constant 0.000000e+00 : f32
    "tpu.trace_stop"() : () -> ()
    %145 = vector.broadcast %cst_56 : f32 to vector<8x128xf32>
    %146 = arith.cmpf one, %144, %145 : vector<8x128xf32>
    %147 = arith.extui %146 : vector<8x128xi1> to vector<8x128xi32>
    %148 = arith.sitofp %147 : vector<8x128xi32> to vector<8x128xf32>
    %cst_57 = arith.constant dense<0.000000e+00> : vector<8xf32>
    %149 = vector.multi_reduction <add>, %148, %cst_57 [1] : vector<8x128xf32> to vector<8xf32>
    %150 = vector.shape_cast %149 : vector<8xf32> to vector<8x1xf32>
    %cst_58 = arith.constant 9.99999974E-6 : f32
    %151 = vector.broadcast %cst_58 : f32 to vector<8x1xf32>
    %152 = arith.addf %150, %151 : vector<8x1xf32>
    %153 = vector.broadcast %152 : vector<8x1xf32> to vector<8x128xf32>
    %154 = arith.divf %144, %153 : vector<8x128xf32>
    %c1_59 = arith.constant 1 : index
    %c0_60 = arith.constant 0 : index
    %c0_61 = arith.constant 0 : index
    %155 = vector.load %arg7[%c1_59, %c0_60, %c0_61] : memref<3x128x128xf32, #tpu.memory_space<vmem>>, vector<1x128x128xf32>
    %156 = vector.shape_cast %155 : vector<1x128x128xf32> to vector<128x128xf32>
    %cst_62 = arith.constant dense<0.000000e+00> : vector<8x128xf32>
    %157 = tpu.matmul %154, %156, %cst_62 {dimension_numbers = #tpu.dot_dimension_numbers<[1], [0], [0], [1], [0, 0, 1, 1], [], []>} : vector<8x128xf32>, vector<128x128xf32>, vector<8x128xf32> -> vector<8x128xf32>
    %c1_63 = arith.constant 1 : index
    %c0_64 = arith.constant 0 : index
    %c0_65 = arith.constant 0 : index
    %158 = vector.load %arg8[%c1_63, %c0_64, %c0_65] : memref<3x8x128xf32, #tpu.memory_space<vmem>>, vector<1x8x128xf32>
    %159 = vector.shape_cast %158 : vector<1x8x128xf32> to vector<8x128xf32>
    %cst_66 = arith.constant 0.000000e+00 : f32
    %160 = vector.broadcast %cst_66 : f32 to vector<8x128xf32>
    %161 = arith.cmpf oge, %157, %160 : vector<8x128xf32>
    %cst_67 = arith.constant 2.000000e-01 : f32
    %162 = vector.broadcast %cst_67 : f32 to vector<8x128xf32>
    %163 = arith.mulf %162, %157 : vector<8x128xf32>
    %164 = arith.select %161, %157, %163 : vector<8x128xi1>, vector<8x128xf32>
    %165 = arith.mulf %164, %159 : vector<8x128xf32>
    %166 = arith.addf %165, %159 : vector<8x128xf32>
    %c1_68 = arith.constant 1 : index
    %c0_69 = arith.constant 0 : index
    %c0_70 = arith.constant 0 : index
    %167 = vector.load %arg9[%c1_68, %c0_69, %c0_70] : memref<3x8x128xf32, #tpu.memory_space<vmem>>, vector<1x8x128xf32>
    %168 = vector.shape_cast %167 : vector<1x8x128xf32> to vector<8x128xf32>
    %169 = vector.shape_cast %166 : vector<8x128xf32> to vector<1x8x128xf32>
    tpu.vector_store %arg9[%c1_68, %c0_69, %c0_70], %169 {strides = array<i32>} : memref<3x8x128xf32, #tpu.memory_space<vmem>>, vector<1x8x128xf32>,
    %c2_71 = arith.constant 2 : index
    %c0_72 = arith.constant 0 : index
    %170 = memref.load %arg3[%c2_71, %c0_72] : memref<3x4xf32, #tpu.memory_space<smem>>
    %171 = vector.extract_strided_slice %0 {offsets = [0, 0, 0], sizes = [1, 8, 128], strides = [1, 1, 1]} : vector<4x8x128xf32> to vector<1x8x128xf32>
    %172 = vector.shape_cast %171 : vector<1x8x128xf32> to vector<8x128xf32>
    %173 = vector.broadcast %170 : f32 to vector<8x128xf32>
    %174 = arith.mulf %173, %172 : vector<8x128xf32>
    %c2_73 = arith.constant 2 : index
    %c1_74 = arith.constant 1 : index
    %175 = memref.load %arg3[%c2_73, %c1_74] : memref<3x4xf32, #tpu.memory_space<smem>>
    %176 = vector.extract_strided_slice %0 {offsets = [1, 0, 0], sizes = [1, 8, 128], strides = [1, 1, 1]} : vector<4x8x128xf32> to vector<1x8x128xf32>
    %177 = vector.shape_cast %176 : vector<1x8x128xf32> to vector<8x128xf32>
    %178 = vector.broadcast %175 : f32 to vector<8x128xf32>
    %179 = arith.mulf %178, %177 : vector<8x128xf32>
    %180 = arith.addf %174, %179 : vector<8x128xf32>
    %c2_75 = arith.constant 2 : index
    %c2_76 = arith.constant 2 : index
    %181 = memref.load %arg3[%c2_75, %c2_76] : memref<3x4xf32, #tpu.memory_space<smem>>
    %182 = vector.extract_strided_slice %0 {offsets = [2, 0, 0], sizes = [1, 8, 128], strides = [1, 1, 1]} : vector<4x8x128xf32> to vector<1x8x128xf32>
    %183 = vector.shape_cast %182 : vector<1x8x128xf32> to vector<8x128xf32>
    %184 = vector.broadcast %181 : f32 to vector<8x128xf32>
    %185 = arith.mulf %184, %183 : vector<8x128xf32>
    %186 = arith.addf %180, %185 : vector<8x128xf32>
    %c2_77 = arith.constant 2 : index
    %c3_78 = arith.constant 3 : index
    %187 = memref.load %arg3[%c2_77, %c3_78] : memref<3x4xf32, #tpu.memory_space<smem>>
    %188 = vector.extract_strided_slice %0 {offsets = [3, 0, 0], sizes = [1, 8, 128], strides = [1, 1, 1]} : vector<4x8x128xf32> to vector<1x8x128xf32>
    %189 = vector.shape_cast %188 : vector<1x8x128xf32> to vector<8x128xf32>
    %190 = vector.broadcast %187 : f32 to vector<8x128xf32>
    %191 = arith.mulf %190, %189 : vector<8x128xf32>
    %192 = arith.addf %186, %191 : vector<8x128xf32>
    %c2_79 = arith.constant 2 : index
    %193 = memref.load %arg4[%c2_79] : memref<3xf32, #tpu.memory_space<smem>>
    %194 = vector.broadcast %193 : f32 to vector<8x128xf32>
    %195 = arith.addf %192, %194 : vector<8x128xf32>
    %c2_80 = arith.constant 2 : index
    %c0_81 = arith.constant 0 : index
    %196 = memref.load %arg5[%c2_80, %c0_81] : memref<3x4xf32, #tpu.memory_space<smem>>
    %197 = vector.extract_strided_slice %1 {offsets = [0, 0, 0], sizes = [1, 128, 128], strides = [1, 1, 1]} : vector<4x128x128xf32> to vector<1x128x128xf32>
    %198 = vector.shape_cast %197 : vector<1x128x128xf32> to vector<128x128xf32>
    %199 = vector.broadcast %196 : f32 to vector<128x128xf32>
    %200 = arith.mulf %199, %198 : vector<128x128xf32>
    %c2_82 = arith.constant 2 : index
    %c1_83 = arith.constant 1 : index
    %201 = memref.load %arg5[%c2_82, %c1_83] : memref<3x4xf32, #tpu.memory_space<smem>>
    %202 = vector.extract_strided_slice %1 {offsets = [1, 0, 0], sizes = [1, 128, 128], strides = [1, 1, 1]} : vector<4x128x128xf32> to vector<1x128x128xf32>
    %203 = vector.shape_cast %202 : vector<1x128x128xf32> to vector<128x128xf32>
    %204 = vector.broadcast %201 : f32 to vector<128x128xf32>
    %205 = arith.mulf %204, %203 : vector<128x128xf32>
    %206 = arith.addf %200, %205 : vector<128x128xf32>
    %c2_84 = arith.constant 2 : index
    %c2_85 = arith.constant 2 : index
    %207 = memref.load %arg5[%c2_84, %c2_85] : memref<3x4xf32, #tpu.memory_space<smem>>
    %208 = vector.extract_strided_slice %1 {offsets = [2, 0, 0], sizes = [1, 128, 128], strides = [1, 1, 1]} : vector<4x128x128xf32> to vector<1x128x128xf32>
    %209 = vector.shape_cast %208 : vector<1x128x128xf32> to vector<128x128xf32>
    %210 = vector.broadcast %207 : f32 to vector<128x128xf32>
    %211 = arith.mulf %210, %209 : vector<128x128xf32>
    %212 = arith.addf %206, %211 : vector<128x128xf32>
    %c2_86 = arith.constant 2 : index
    %c3_87 = arith.constant 3 : index
    %213 = memref.load %arg5[%c2_86, %c3_87] : memref<3x4xf32, #tpu.memory_space<smem>>
    %214 = vector.extract_strided_slice %1 {offsets = [3, 0, 0], sizes = [1, 128, 128], strides = [1, 1, 1]} : vector<4x128x128xf32> to vector<1x128x128xf32>
    %215 = vector.shape_cast %214 : vector<1x128x128xf32> to vector<128x128xf32>
    %216 = vector.broadcast %213 : f32 to vector<128x128xf32>
    %217 = arith.mulf %216, %215 : vector<128x128xf32>
    %218 = arith.addf %212, %217 : vector<128x128xf32>
    %c2_88 = arith.constant 2 : index
    %219 = memref.load %arg6[%c2_88] : memref<3xf32, #tpu.memory_space<smem>>
    %220 = vector.broadcast %219 : f32 to vector<128x128xf32>
    %221 = arith.mulf %220, %11 : vector<128x128xf32>
    %222 = arith.addf %218, %221 : vector<128x128xf32>
    "tpu.trace_start"() <{level = 10 : i32, message = "lk,mk->lm"}> : () -> ()
    %cst_89 = arith.constant dense<0.000000e+00> : vector<8x128xf32>
    %223 = tpu.matmul %195, %222, %cst_89 {dimension_numbers = #tpu.dot_dimension_numbers<[1], [1], [0], [0], [0, 0, 1, 0], [], []>} : vector<8x128xf32>, vector<128x128xf32>, vector<8x128xf32> -> vector<8x128xf32>
    %cst_90 = arith.constant 0.000000e+00 : f32
    "tpu.trace_stop"() : () -> ()
    %224 = vector.broadcast %cst_90 : f32 to vector<8x128xf32>
    %225 = arith.cmpf one, %223, %224 : vector<8x128xf32>
    %226 = arith.extui %225 : vector<8x128xi1> to vector<8x128xi32>
    %227 = arith.sitofp %226 : vector<8x128xi32> to vector<8x128xf32>
    %cst_91 = arith.constant dense<0.000000e+00> : vector<8xf32>
    %228 = vector.multi_reduction <add>, %227, %cst_91 [1] : vector<8x128xf32> to vector<8xf32>
    %229 = vector.shape_cast %228 : vector<8xf32> to vector<8x1xf32>
    %cst_92 = arith.constant 9.99999974E-6 : f32
    %230 = vector.broadcast %cst_92 : f32 to vector<8x1xf32>
    %231 = arith.addf %229, %230 : vector<8x1xf32>
    %232 = vector.broadcast %231 : vector<8x1xf32> to vector<8x128xf32>
    %233 = arith.divf %223, %232 : vector<8x128xf32>
    %c2_93 = arith.constant 2 : index
    %c0_94 = arith.constant 0 : index
    %c0_95 = arith.constant 0 : index
    %234 = vector.load %arg7[%c2_93, %c0_94, %c0_95] : memref<3x128x128xf32, #tpu.memory_space<vmem>>, vector<1x128x128xf32>
    %235 = vector.shape_cast %234 : vector<1x128x128xf32> to vector<128x128xf32>
    %cst_96 = arith.constant dense<0.000000e+00> : vector<8x128xf32>
    %236 = tpu.matmul %233, %235, %cst_96 {dimension_numbers = #tpu.dot_dimension_numbers<[1], [0], [0], [1], [0, 0, 1, 1], [], []>} : vector<8x128xf32>, vector<128x128xf32>, vector<8x128xf32> -> vector<8x128xf32>
    %c2_97 = arith.constant 2 : index
    %c0_98 = arith.constant 0 : index
    %c0_99 = arith.constant 0 : index
    %237 = vector.load %arg8[%c2_97, %c0_98, %c0_99] : memref<3x8x128xf32, #tpu.memory_space<vmem>>, vector<1x8x128xf32>
    %238 = vector.shape_cast %237 : vector<1x8x128xf32> to vector<8x128xf32>
    %cst_100 = arith.constant 0.000000e+00 : f32
    %239 = vector.broadcast %cst_100 : f32 to vector<8x128xf32>
    %240 = arith.cmpf oge, %236, %239 : vector<8x128xf32>
    %cst_101 = arith.constant 2.000000e-01 : f32
    %241 = vector.broadcast %cst_101 : f32 to vector<8x128xf32>
    %242 = arith.mulf %241, %236 : vector<8x128xf32>
    %243 = arith.select %240, %236, %242 : vector<8x128xi1>, vector<8x128xf32>
    %244 = arith.mulf %243, %238 : vector<8x128xf32>
    %245 = arith.addf %244, %238 : vector<8x128xf32>
    %c2_102 = arith.constant 2 : index
    %c0_103 = arith.constant 0 : index
    %c0_104 = arith.constant 0 : index
    %246 = vector.load %arg9[%c2_102, %c0_103, %c0_104] : memref<3x8x128xf32, #tpu.memory_space<vmem>>, vector<1x8x128xf32>
    %247 = vector.shape_cast %246 : vector<1x8x128xf32> to vector<8x128xf32>
    %248 = vector.shape_cast %245 : vector<8x128xf32> to vector<1x8x128xf32>
    tpu.vector_store %arg9[%c2_102, %c0_103, %c0_104], %248 {strides = array<i32>} : memref<3x8x128xf32, #tpu.memory_space<vmem>>, vector<1x8x128xf32>,
    return
  }
  func.func @transform_0(%arg0: i32) -> (i32, i32, i32) {
    %c0_i32 = arith.constant 0 : i32
    %c0_i32_0 = arith.constant 0 : i32
    %c0_i32_1 = arith.constant 0 : i32
    return %c0_i32, %arg0, %c0_i32_0 : i32, i32, i32
  }
  func.func @transform_1(%arg0: i32) -> (i32, i32, i32) {
    %c0_i32 = arith.constant 0 : i32
    %c0_i32_0 = arith.constant 0 : i32
    %c0_i32_1 = arith.constant 0 : i32
    %c0_i32_2 = arith.constant 0 : i32
    return %c0_i32, %c0_i32_0, %c0_i32_1 : i32, i32, i32
  }
  func.func @transform_2(%arg0: i32) -> (i32, i32) {
    %c0_i32 = arith.constant 0 : i32
    %c0_i32_0 = arith.constant 0 : i32
    %c0_i32_1 = arith.constant 0 : i32
    return %c0_i32, %c0_i32_0 : i32, i32
  }
  func.func @transform_3(%arg0: i32) -> i32 {
    %c0_i32 = arith.constant 0 : i32
    %c0_i32_0 = arith.constant 0 : i32
    return %c0_i32 : i32
  }
  func.func @transform_4(%arg0: i32) -> (i32, i32) {
    %c0_i32 = arith.constant 0 : i32
    %c0_i32_0 = arith.constant 0 : i32
    %c0_i32_1 = arith.constant 0 : i32
    return %c0_i32, %c0_i32_0 : i32, i32
  }
  func.func @transform_5(%arg0: i32) -> i32 {
    %c0_i32 = arith.constant 0 : i32
    %c0_i32_0 = arith.constant 0 : i32
    return %c0_i32 : i32
  }
  func.func @transform_6(%arg0: i32) -> (i32, i32, i32) {
    %c0_i32 = arith.constant 0 : i32
    %c0_i32_0 = arith.constant 0 : i32
    %c0_i32_1 = arith.constant 0 : i32
    %c0_i32_2 = arith.constant 0 : i32
    return %c0_i32, %c0_i32_0, %c0_i32_1 : i32, i32, i32
  }
  func.func @transform_7(%arg0: i32) -> (i32, i32, i32) {
    %c0_i32 = arith.constant 0 : i32
    %c0_i32_0 = arith.constant 0 : i32
    %c0_i32_1 = arith.constant 0 : i32
    return %c0_i32, %arg0, %c0_i32_0 : i32, i32, i32
  }
  func.func @transform_8(%arg0: i32) -> (i32, i32, i32) {
    %c0_i32 = arith.constant 0 : i32
    %c0_i32_0 = arith.constant 0 : i32
    %c0_i32_1 = arith.constant 0 : i32
    return %c0_i32, %arg0, %c0_i32_0 : i32, i32, i32
  }
}

</mosaic_0001>

<bundles_post_ra>
// kernel: squeeze.8
= control target key start
LH: loop header
LB: loop body
LE: loop exit
PB: predicated region body
PF: predicated region fallthrough
CT: control target
= control target key end

     0   :  { %s443_s17 = smov 78   ;;  %s444_s18 = smov 72   ;;  %vm182_vm0 = vcmask 23552   ;;  %vm188_vm1 = vcmask 663152   ;;  %vm194_vm2 = vcmask 638552   ;;  %vm200_vm3 = vcmask 613952   ;;  %s590_s0 = inlined_call_operand.vmem [shape: f32[1,4,9,3,3], index: 0, kind: input, shape index: {}]   ;;  %s591_s1 = inlined_call_operand.vmem [shape: f32[4,1,81], index: 1, kind: output, shape index: {}]  }
   0x1   :  { %v382_v0 = vld [vmem:[%s590_s0 + $0x8c] sm:$0xf]  ;;  %v391_v1 = vld [vmem:[%s590_s0 + $0x68] sm:$0xf]  ;;  %v400_v2 = vld [vmem:[%s590_s0 + $0x44] sm:$0xf] }
   0x2   :  { %9 = vst [vmem:[#allocation1 + $0x118] sm:$0xf] %v382_v0  ;;  %54 = vst [vmem:[#allocation1 + $0xd0] sm:$0xf] %v391_v1  ;;  %v409_v3 = vld [vmem:[%s590_s0 + $0x20] sm:$0xf] }
   0x3   :  { %99 = vst [vmem:[#allocation1 + $0x88] sm:$0xf] %v400_v2  ;;  %v383_v4 = vld [vmem:[%s590_s0 + $0x88] sm:$0xf]  ;;  %144 = vst [vmem:[#allocation1 + $0x40] sm:$0xf] %v409_v3 }
   0x4   :  { %14 = vst [vmem:[#allocation1 + $0x110] sm:$0xf] %v383_v4  ;;  %v392_v5 = vld [vmem:[%s590_s0 + $0x64] sm:$0xf]  ;;  %v401_v6 = vld [vmem:[%s590_s0 + $0x40] sm:$0xf] }
   0x5   :  { %59 = vst [vmem:[#allocation1 + $0xc8] sm:$0xf] %v392_v5  ;;  %104 = vst [vmem:[#allocation1 + $0x80] sm:$0xf] %v401_v6  ;;  %v410_v7 = vld [vmem:[%s590_s0 + $0x1c] sm:$0xf] }
   0x6   :  { %v384_v8 = vld [vmem:[%s590_s0 + $0x84] sm:$0xf]  ;;  %149 = vst [vmem:[#allocation1 + $0x38] sm:$0xf] %v410_v7  ;;  %v393_v9 = vld [vmem:[%s590_s0 + $0x60] sm:$0xf] }
   0x7   :  { %19 = vst [vmem:[#allocation1 + $0x108] sm:$0xf] %v384_v8  ;;  %v402_v10 = vld [vmem:[%s590_s0 + $0x3c] sm:$0xf]  ;;  %v411_v11 = vld [vmem:[%s590_s0 + $0x18] sm:$0xf] }
   0x8   :  { %64 = vst [vmem:[#allocation1 + $0xc0] sm:$0xf] %v393_v9  ;;  %109 = vst [vmem:[#allocation1 + $0x78] sm:$0xf] %v402_v10  ;;  %v385_v12 = vld [vmem:[%s590_s0 + $0x80] sm:$0xf] }
   0x9   :  { %154 = vst [vmem:[#allocation1 + $0x30] sm:$0xf] %v411_v11  ;;  %v394_v13 = vld [vmem:[%s590_s0 + $0x5c] sm:$0xf]  ;;  %24 = vst [vmem:[#allocation1 + $0x100] sm:$0xf] %v385_v12 }
   0xa   :  { %69 = vst [vmem:[#allocation1 + $0xb8] sm:$0xf] %v394_v13  ;;  %v403_v14 = vld [vmem:[%s590_s0 + $0x38] sm:$0xf]  ;;  %v412_v15 = vld [vmem:[%s590_s0 + $0x14] sm:$0xf] }
   0xb   :  { %114 = vst [vmem:[#allocation1 + $0x70] sm:$0xf] %v403_v14  ;;  %159 = vst [vmem:[#allocation1 + $0x28] sm:$0xf] %v412_v15  ;;  %v386_v16 = vld [vmem:[%s590_s0 + $0x7c] sm:$0xf] }
   0xc   :  { %v395_v17 = vld [vmem:[%s590_s0 + $0x58] sm:$0xf]  ;;  %29 = vst [vmem:[#allocation1 + $0xf8] sm:$0xf] %v386_v16  ;;  %v404_v18 = vld [vmem:[%s590_s0 + $0x34] sm:$0xf] }
   0xd   :  { %74 = vst [vmem:[#allocation1 + $0xb0] sm:$0xf] %v395_v17  ;;  %v413_v19 = vld [vmem:[%s590_s0 + $0x10] sm:$0xf]  ;;  %119 = vst [vmem:[#allocation1 + $0x68] sm:$0xf] %v404_v18 }
   0xe   :  { %v185_v20 = vld [vmem:[#allocation1 + $0x42] ss:$72 sm:$0xf]   ;;  %v197_v21 = vld [vmem:[#allocation1 + $0x40] ss:$72 sm:$0xf]  }
   0xf   :  { %164 = vst [vmem:[#allocation1 + $0x20] sm:$0xf] %v413_v19  ;;  %186 = vrot.lane.b32.xlu0 %v185_v20, %s443_s17  ;;  %198 = vrot.lane.b32.xlu1 %v197_v21, %s444_s18  ;;  %v387_v22 = vld [vmem:[%s590_s0 + $0x78] sm:$0xf]  ;;  %s445_s21 = smov 75   ;;  %s446_s22 = smov 69  }
  0x10   :  { %v191_v23 = vld [vmem:[#allocation1 + $0x41] ss:$72 sm:$0xf]   ;;  %v203_v24 = vld [vmem:[#allocation1 + $0x3a] ss:$72 sm:$0xf]  }
  0x11   :  { %34 = vst [vmem:[#allocation1 + $0xf0] sm:$0xf] %v387_v22  ;;  %v209_v25 = vld [vmem:[#allocation1 + $0x39] ss:$72 sm:$0xf]   ;;  %s447_s27 = smov 66  }
  0x12   :  { %v215_v26 = vld [vmem:[#allocation1 + $0x38] ss:$72 sm:$0xf]   ;;  %v396_v27 = vld [vmem:[%s590_s0 + $0x54] sm:$0xf]  ;;  %s448_s28 = smov 63  }
  0x13   :  { %192 = vrot.lane.b32.xlu0 %v191_v23, %s445_s21  ;;  %204 = vrot.lane.b32.xlu1 %v203_v24, %s446_s22  ;;  %79 = vst [vmem:[#allocation1 + $0xa8] sm:$0xf] %v396_v27  ;;  %v221_v28 = vld [vmem:[#allocation1 + $0x32] ss:$72 sm:$0xf]   ;;  %s449_s18 = smov 60  }
  0x14   :  { %v227_v29 = vld [vmem:[#allocation1 + $0x31] ss:$72 sm:$0xf]   ;;  %v414_v31 = vld [vmem:[%s590_s0 + $0xc] sm:$0xf]  ;;  %s450_s19 = smov 57  }
  0x15   :  { %v405_v30 = vld [vmem:[%s590_s0 + $0x30] sm:$0xf]  ;;  %v388_v32 = vld [vmem:[%s590_s0 + $0x74] sm:$0xf]  ;;  %169 = vst [vmem:[#allocation1 + $0x18] sm:$0xf] %v414_v31 }
  0x16   :  { %124 = vst [vmem:[#allocation1 + $0x60] sm:$0xf] %v405_v30  ;;  %39 = vst [vmem:[#allocation1 + $0xe8] sm:$0xf] %v388_v32  ;;  %v397_v33 = vld [vmem:[%s590_s0 + $0x50] sm:$0xf] }
  0x17   :  { %210 = vrot.lane.b32.xlu0 %v209_v25, %s447_s27  ;;  %216 = vrot.lane.b32.xlu1 %v215_v26, %s448_s28  ;;  %v406_v34 = vld [vmem:[%s590_s0 + $0x2c] sm:$0xf]  ;;  %v415_v35 = vld [vmem:[%s590_s0 + $0x8] sm:$0xf]  ;;  %84 = vst [vmem:[#allocation1 + $0xa0] sm:$0xf] %v397_v33 }
  0x18   :  { %129 = vst [vmem:[#allocation1 + $0x58] sm:$0xf] %v406_v34  ;;  %174 = vst [vmem:[#allocation1 + $0x10] sm:$0xf] %v415_v35  ;;  %v389_v36 = vld [vmem:[%s590_s0 + $0x70] sm:$0xf] }
  0x19   :  { %v398_v37 = vld [vmem:[%s590_s0 + $0x4c] sm:$0xf]  ;;  %v233_v38 = vld [vmem:[#allocation1 + $0x30] ss:$72 sm:$0xf]   ;;  %s452_s28 = smov 51  }
  0x1a   :  { %v239_v39 = vld [vmem:[#allocation1 + $0x2a] ss:$72 sm:$0xf]   ;;  %44 = vst [vmem:[#allocation1 + $0xe0] sm:$0xf] %v389_v36  ;;  %s453_s29 = smov 48  }
  0x1b   :  { %89 = vst [vmem:[#allocation1 + $0x98] sm:$0xf] %v398_v37  ;;  %v407_v40 = vld [vmem:[%s590_s0 + $0x28] sm:$0xf]  ;;  %v416_v41 = vld [vmem:[%s590_s0 + $0x4] sm:$0xf]  ;;  %222 = vrot.lane.b32.xlu0 %v221_v28, %s449_s18  ;;  %228 = vrot.lane.b32.xlu1 %v227_v29, %s450_s19 }
  0x1c   :  { %134 = vst [vmem:[#allocation1 + $0x50] sm:$0xf] %v407_v40  ;;  %178 = vst [vmem:[#allocation1 + $0x8] sm:$0xf] %v416_v41  ;;  %v390_v42 = vld [vmem:[%s590_s0 + $0x6c] sm:$0xf] }
  0x1d   :  { %v399_v43 = vld [vmem:[%s590_s0 + $0x48] sm:$0xf]  ;;  %49 = vst [vmem:[#allocation1 + $0xd8] sm:$0xf] %v390_v42  ;;  %v408_v44 = vld [vmem:[%s590_s0 + $0x24] sm:$0xf] }
  0x1e   :  { %94 = vst [vmem:[#allocation1 + $0x90] sm:$0xf] %v399_v43  ;;  %v179_v45 = vld [vmem:[%s590_s0] sm:$0xf]  ;;  %139 = vst [vmem:[#allocation1 + $0x48] sm:$0xf] %v408_v44 }
  0x1f   :  { %180 = vst [vmem:[#allocation1] sm:$0xf] %v179_v45  ;;  %s451_s0 = smov 54   ;;  %240 = vrot.lane.b32.xlu1 %v239_v39, %s452_s28  ;;  %v245_v46 = vld [vmem:[#allocation1 + $0x29] ss:$72 sm:$0xf]  }
  0x20   :  { %234 = vrot.lane.b32.xlu0 %v233_v38, %s451_s0  ;;  %v251_v47 = vld [vmem:[#allocation1 + $0x28] ss:$72 sm:$0xf]   ;;  %s454_s30 = smov 45   ;;  %s455_s2 = smov 42   ;;  %vm206_vm4 = vcmask 589352  }
  0x21   :  { %v257_v48 = vld [vmem:[#allocation1 + $0x22] ss:$72 sm:$0xf]   ;;  %v263_v49 = vld [vmem:[#allocation1 + $0x21] ss:$72 sm:$0xf]  }
  0x22   :  { %s456_s3 = smov 39   ;;  %v269_v51 = vld [vmem:[#allocation1 + $0x20] ss:$72 sm:$0xf]   ;;  %s457_s4 = smov 36   ;;  %vm212_vm5 = vcmask 564752  }
  0x23   :  { %252 = vrot.lane.b32.xlu1 %v251_v47, %s454_s30  ;;  %v275_v52 = vld [vmem:[#allocation1 + $0x1a] ss:$72 sm:$0xf]   ;;  %s458_s5 = smov 33   ;;  %s459_s6 = smov 30   ;;  %vm218_vm6 = vcmask 540152  }
  0x24   :  { %246 = vrot.lane.b32.xlu0 %v245_v46, %s453_s29  ;;  %v281_v53 = vld [vmem:[#allocation1 + $0x19] ss:$72 sm:$0xf]   ;;  %v287_v54 = vld [vmem:[#allocation1 + $0x18] ss:$72 sm:$0xf]  }
  0x25   :  { %s460_s7 = smov 27   ;;  %v293_v55 = vld [vmem:[#allocation1 + $0x12] ss:$72 sm:$0xf]   ;;  %s461_s8 = smov 24   ;;  %vm224_vm7 = vcmask 515552  }
  0x26   :  { %v181_v50 = vld [vmem:[#allocation1] ss:$72 sm:$0xf]   ;;  %v299_v56 = vld [vmem:[#allocation1 + $0x11] ss:$72 sm:$0xf]  }
  0x27   :  { %183 = vst.msk [vmem:[#allocation0] sm:$0xf] %vm182_vm0, %v181_v50   ;;  %264 = vrot.lane.b32.xlu1 %v263_v49, %s456_s3  ;;  %s462_s9 = smov 21   ;;  %v305_v57 = vld [vmem:[#allocation1 + $0x10] ss:$72 sm:$0xf]  }
  0x28   :  { %258 = vrot.lane.b32.xlu0 %v257_v48, %s455_s2  ;;  %v311_v58 = vld [vmem:[#allocation1 + $0xa] ss:$72 sm:$0xf]   ;;  %s463_s10 = smov 18   ;;  %s464_s11 = smov 15   ;;  %vm230_vm8 = vcmask 490952  }
  0x29   :  { %v317_v59 = vld [vmem:[#allocation1 + $0x9] ss:$72 sm:$0xf]   ;;  %v323_v60 = vld [vmem:[#allocation1 + $0x8] ss:$72 sm:$0xf]  }
  0x2a   :  { %s465_s12 = smov 12   ;;  %s466_s13 = smov 9   ;;  %v329_v61 = vld [vmem:[#allocation1 + $0x2] ss:$72 sm:$0xf]   ;;  %vm236_vm9 = vcmask 466352  }
  0x2b   :  { %276 = vrot.lane.b32.xlu1 %v275_v52, %s458_s5  ;;  %v335_v62 = vld [vmem:[#allocation1 + $0x1] ss:$72 sm:$0xf]   ;;  %s467_s14 = smov 6   ;;  %s468_s15 = smov 3   ;;  %vm242_vm10 = vcmask 441752  }
  0x2c   :  { %270 = vrot.lane.b32.xlu0 %v269_v51, %s457_s4  ;;  %vm248_vm11 = vcmask 417152   ;;  %vm254_vm12 = vcmask 392552   ;;  %vm260_vm13 = vcmask 367952   ;;  %vm266_vm14 = vcmask 343352  }
  0x2d   :  { %vm272_vm15 = vcmask 318752   ;;  %vm278_vm0 = vcmask 294152  }
  0x2f   :  { %288 = vrot.lane.b32.xlu1 %v287_v54, %s460_s7 }
  0x30   :  { %282 = vrot.lane.b32.xlu0 %v281_v53, %s459_s6 }
  0x33   :  { %300 = vrot.lane.b32.xlu1 %v299_v56, %s462_s9 }
  0x34   :  { %294 = vrot.lane.b32.xlu0 %v293_v55, %s461_s8 }
  0x37   :  { %312 = vrot.lane.b32.xlu1 %v311_v58, %s464_s11 }
  0x38   :  { %306 = vrot.lane.b32.xlu0 %v305_v57, %s463_s10 }
  0x3b   :  { %324 = vrot.lane.b32.xlu1 %v323_v60, %s466_s13 }
  0x3c   :  { %318 = vrot.lane.b32.xlu0 %v317_v59, %s465_s12 }
  0x3f   :  { %336 = vrot.lane.b32.xlu1 %v335_v62, %s468_s15 }
  0x40   :  { %330 = vrot.lane.b32.xlu0 %v329_v61, %s467_s14 }
  0x81   :  { %v187_v63 = vpop.permute.xlu0 %186   ;;  %v199_v0 = vpop.permute.xlu1 %198  }
  0x82   :  { %189 = vst.msk [vmem:[#allocation0] sm:$0xf] %vm188_vm1, %v187_v63   ;;  %vm284_vm1 = vcmask 269552  }
  0x85   :  { %v193_v1 = vpop.permute.xlu0 %192   ;;  %v205_v2 = vpop.permute.xlu1 %204  }
  0x86   :  { %195 = vst.msk [vmem:[#allocation0] sm:$0xf] %vm194_vm2, %v193_v1   ;;  %vm290_vm2 = vcmask 244952  }
  0x87   :  { %201 = vst.msk [vmem:[#allocation0] sm:$0xf] %vm200_vm3, %v199_v0   ;;  %vm296_vm3 = vcmask 220352  }
  0x88   :  { %207 = vst.msk [vmem:[#allocation0] sm:$0xf] %vm206_vm4, %v205_v2   ;;  %vm302_vm4 = vcmask 195752  }
  0x89   :  { %v211_v3 = vpop.permute.xlu0 %210   ;;  %v217_v4 = vpop.permute.xlu1 %216  }
  0x8a   :  { %213 = vst.msk [vmem:[#allocation0] sm:$0xf] %vm212_vm5, %v211_v3   ;;  %vm308_vm5 = vcmask 171152  }
  0x8b   :  { %219 = vst.msk [vmem:[#allocation0] sm:$0xf] %vm218_vm6, %v217_v4   ;;  %vm314_vm6 = vcmask 146552  }
  0x8d   :  { %v223_v5 = vpop.permute.xlu0 %222   ;;  %v229_v6 = vpop.permute.xlu1 %228  }
  0x8e   :  { %225 = vst.msk [vmem:[#allocation0] sm:$0xf] %vm224_vm7, %v223_v5   ;;  %vm320_vm7 = vcmask 121952  }
  0x8f   :  { %231 = vst.msk [vmem:[#allocation0] sm:$0xf] %vm230_vm8, %v229_v6   ;;  %vm326_vm8 = vcmask 97352  }
  0x91   :  { %v241_v8 = vpop.permute.xlu1 %240  }
  0x92   :  { %v235_v7 = vpop.permute.xlu0 %234  }
  0x93   :  { %237 = vst.msk [vmem:[#allocation0] sm:$0xf] %vm236_vm9, %v235_v7   ;;  %vm332_vm9 = vcmask 72752  }
  0x94   :  { %243 = vst.msk [vmem:[#allocation0] sm:$0xf] %vm242_vm10, %v241_v8   ;;  %vm338_vm10 = vcmask 48152  }
  0x95   :  { %v253_v10 = vpop.permute.xlu1 %252  }
  0x96   :  { %v247_v9 = vpop.permute.xlu0 %246  }
  0x97   :  { %249 = vst.msk [vmem:[#allocation0] sm:$0xf] %vm248_vm11, %v247_v9  }
  0x98   :  { %255 = vst.msk [vmem:[#allocation0] sm:$0xf] %vm254_vm12, %v253_v10  }
  0x99   :  { %v265_v12 = vpop.permute.xlu1 %264  }
  0x9a   :  { %v259_v11 = vpop.permute.xlu0 %258  }
  0x9b   :  { %261 = vst.msk [vmem:[#allocation0] sm:$0xf] %vm260_vm13, %v259_v11  }
  0x9c   :  { %267 = vst.msk [vmem:[#allocation0] sm:$0xf] %vm266_vm14, %v265_v12  }
  0x9d   :  { %v277_v14 = vpop.permute.xlu1 %276  }
  0x9e   :  { %v271_v13 = vpop.permute.xlu0 %270  }
  0x9f   :  { %273 = vst.msk [vmem:[#allocation0] sm:$0xf] %vm272_vm15, %v271_v13  }
  0xa0   :  { %279 = vst.msk [vmem:[#allocation0] sm:$0xf] %vm278_vm0, %v277_v14  }
  0xa1   :  { %v289_v16 = vpop.permute.xlu1 %288  }
  0xa2   :  { %v283_v15 = vpop.permute.xlu0 %282  }
  0xa3   :  { %285 = vst.msk [vmem:[#allocation0] sm:$0xf] %vm284_vm1, %v283_v15  }
  0xa4   :  { %291 = vst.msk [vmem:[#allocation0] sm:$0xf] %vm290_vm2, %v289_v16  }
  0xa5   :  { %v301_v18 = vpop.permute.xlu1 %300  }
  0xa6   :  { %v295_v17 = vpop.permute.xlu0 %294  }
  0xa7   :  { %297 = vst.msk [vmem:[#allocation0] sm:$0xf] %vm296_vm3, %v295_v17  }
  0xa8   :  { %303 = vst.msk [vmem:[#allocation0] sm:$0xf] %vm302_vm4, %v301_v18  }
  0xa9   :  { %v313_v20 = vpop.permute.xlu1 %312  }
  0xaa   :  { %v307_v19 = vpop.permute.xlu0 %306  }
  0xab   :  { %309 = vst.msk [vmem:[#allocation0] sm:$0xf] %vm308_vm5, %v307_v19  }
  0xac   :  { %315 = vst.msk [vmem:[#allocation0] sm:$0xf] %vm314_vm6, %v313_v20  }
  0xad   :  { %v325_v22 = vpop.permute.xlu1 %324  }
  0xae   :  { %v319_v21 = vpop.permute.xlu0 %318  }
  0xaf   :  { %321 = vst.msk [vmem:[#allocation0] sm:$0xf] %vm320_vm7, %v319_v21  }
  0xb0   :  { %327 = vst.msk [vmem:[#allocation0] sm:$0xf] %vm326_vm8, %v325_v22  }
  0xb1   :  { %v337_v24 = vpop.permute.xlu1 %336  }
  0xb2   :  { %v331_v23 = vpop.permute.xlu0 %330  }
  0xb3   :  { %333 = vst.msk [vmem:[#allocation0] sm:$0xf] %vm332_vm9, %v331_v23  }
  0xb4   :  { %339 = vst.msk [vmem:[#allocation0] sm:$0xf] %vm338_vm10, %v337_v24  }
  0xbb   :  { %v344_v25 = vld [vmem:[#allocation0] sm:$0xf] }
  0xbc   :  { %347 = vst [vmem:[%s591_s1] sm:$0xf] %v344_v25 }

// kernel: squeeze.9
= control target key start
LH: loop header
LB: loop body
LE: loop exit
PB: predicated region body
PF: predicated region fallthrough
CT: control target
= control target key end

     0   :  { %s1248_s8 = smov 119   ;;  %vm3_vm0 = vcmask 72704   ;;  %s1756_s0 = inlined_call_operand.vmem [shape: f32[3,18,6,6], index: 0, kind: input, shape index: {}]   ;;  %s1757_s1 = inlined_call_operand.vmem [shape: f32[3,2,9,4,9], index: 1, kind: output, shape index: {}]  }
   0x1   :  { %v1128_v0 = vld.sshfl [vmem:[%s1756_s0 + $0x14] sm:$0xff pattern:$0x98765410]   ;;  %v125_v1 = vld.sshfl [vmem:[%s1756_s0] sm:$0xff pattern:$0x98543210]  }
   0x2   :  { %144 = vrot.lane.b32.xlu1 %v1128_v0, %s1248_s8  ;;  %126 = vrot.lane.b32.xlu0 %v125_v1, %s1248_s8  ;;  %v1129_v2 = vld.sshfl [vmem:[%s1756_s0 + $0x20] sm:$0xff pattern:$0x98543210]   ;;  %v1127_v3 = vld.sshfl [vmem:[%s1756_s0 + $0xa] sm:$0xff pattern:$0x98763210]  }
   0x3   :  { %v1131_v4 = vld.sshfl [vmem:[%s1756_s0 + $0x34] sm:$0xff pattern:$0x98765410]   ;;  %v1130_v5 = vld.sshfl [vmem:[%s1756_s0 + $0x2a] sm:$0xff pattern:$0x98763210]  }
   0x4   :  { %v1111_v6 = vld [vmem:[%s1756_s0 + $0x10] sm:$0x3f]   ;;  %v1112_v7 = vld [vmem:[%s1756_s0 + $0x18] sm:$0x3f]   ;;  %v2_v9 = vld [vmem:[%s1756_s0] sm:$0x3f]  }
   0x5   :  { %v1133_v8 = vld.sshfl [vmem:[%s1756_s0 + $0x4a] sm:$0xff pattern:$0x98763210]   ;;  %19 = vst.msk [vmem:[#allocation0 + $0x60] ss:$8 sm:$0x30] %vm3_vm0, %v1111_v6  }
   0x6   :  { %153 = vrot.lane.b32.xlu1 %v1129_v2, %s1248_s8  ;;  %135 = vrot.lane.b32.xlu0 %v1127_v3, %s1248_s8  ;;  %24 = vst.msk [vmem:[#allocation0 + $0x90] ss:$8 sm:$0xf] %vm3_vm0, %v1112_v7   ;;  %26 = vst.msk [vmem:[#allocation0 + $0x90] ss:$8 sm:$0x30] %vm3_vm0, %v1112_v7  }
   0x7   :  { %17 = vst.msk [vmem:[#allocation0 + $0x60] ss:$8 sm:$0xf] %vm3_vm0, %v1111_v6   ;;  %v1110_v10 = vld [vmem:[%s1756_s0 + $0x8] sm:$0x3f]  }
   0x8   :  { %v1113_v11 = vld [vmem:[%s1756_s0 + $0x20] sm:$0x3f]   ;;  %4 = vst.msk [vmem:[#allocation0] ss:$8 sm:$0xf] %vm3_vm0, %v2_v9  }
   0x9   :  { %5 = vst.msk [vmem:[#allocation0] ss:$8 sm:$0x30] %vm3_vm0, %v2_v9   ;;  %10 = vst.msk [vmem:[#allocation0 + $0x30] ss:$8 sm:$0xf] %vm3_vm0, %v1110_v10  }
   0xa   :  { %171 = vrot.lane.b32.xlu1 %v1131_v4, %s1248_s8  ;;  %12 = vst.msk [vmem:[#allocation0 + $0x30] ss:$8 sm:$0x30] %vm3_vm0, %v1110_v10   ;;  %31 = vst.msk [vmem:[#allocation0 + $0xc0] ss:$8 sm:$0xf] %vm3_vm0, %v1113_v11   ;;  %162 = vrot.lane.b32.xlu0 %v1130_v5, %s1248_s8 }
   0xb   :  { %33 = vst.msk [vmem:[#allocation0 + $0xc0] ss:$8 sm:$0x30] %vm3_vm0, %v1113_v11   ;;  %v1114_v12 = vld [vmem:[%s1756_s0 + $0x28] sm:$0x3f]  }
   0xc   :  { %v1115_v13 = vld [vmem:[%s1756_s0 + $0x30] sm:$0x3f]   ;;  %v1116_v14 = vld [vmem:[%s1756_s0 + $0x38] sm:$0x3f]   ;;  %v1118_v15 = vld [vmem:[%s1756_s0 + $0x48] sm:$0x3f]  }
   0xd   :  { %38 = vst.msk [vmem:[#allocation0 + $0xf0] ss:$8 sm:$0xf] %vm3_vm0, %v1114_v12   ;;  %40 = vst.msk [vmem:[#allocation0 + $0xf0] ss:$8 sm:$0x30] %vm3_vm0, %v1114_v12  }
   0xe   :  { %47 = vst.msk [vmem:[#allocation0 + $0x120] ss:$8 sm:$0x30] %vm3_vm0, %v1115_v13   ;;  %52 = vst.msk [vmem:[#allocation0 + $0x150] ss:$8 sm:$0xf] %vm3_vm0, %v1116_v14   ;;  %189 = vrot.lane.b32.xlu1 %v1133_v8, %s1248_s8 }
   0xf   :  { %54 = vst.msk [vmem:[#allocation0 + $0x150] ss:$8 sm:$0x30] %vm3_vm0, %v1116_v14   ;;  %45 = vst.msk [vmem:[#allocation0 + $0x120] ss:$8 sm:$0xf] %vm3_vm0, %v1115_v13  }
  0x10   :  { %v1119_v16 = vld [vmem:[%s1756_s0 + $0x50] sm:$0x3f]   ;;  %v1117_v17 = vld [vmem:[%s1756_s0 + $0x40] sm:$0x3f]   ;;  %v1122_v20 = vld [vmem:[%s1756_s0 + $0x68] sm:$0x3f]  }
  0x11   :  { %v1132_v18 = vld.sshfl [vmem:[%s1756_s0 + $0x40] sm:$0xff pattern:$0x98543210]   ;;  %66 = vst.msk [vmem:[#allocation0 + $0x1b0] ss:$8 sm:$0xf] %vm3_vm0, %v1118_v15  }
  0x12   :  { %68 = vst.msk [vmem:[#allocation0 + $0x1b0] ss:$8 sm:$0x30] %vm3_vm0, %v1118_v15   ;;  %73 = vst.msk [vmem:[#allocation0 + $0x1e0] ss:$8 sm:$0xf] %vm3_vm0, %v1119_v16   ;;  %180 = vrot.lane.b32.xlu0 %v1132_v18, %s1248_s8 }
  0x13   :  { %75 = vst.msk [vmem:[#allocation0 + $0x1e0] ss:$8 sm:$0x30] %vm3_vm0, %v1119_v16   ;;  %59 = vst.msk [vmem:[#allocation0 + $0x180] ss:$8 sm:$0xf] %vm3_vm0, %v1117_v17  }
  0x14   :  { %61 = vst.msk [vmem:[#allocation0 + $0x180] ss:$8 sm:$0x30] %vm3_vm0, %v1117_v17   ;;  %v1121_v19 = vld [vmem:[%s1756_s0 + $0x60] sm:$0x3f]  }
  0x15   :  { %v1120_v21 = vld [vmem:[%s1756_s0 + $0x58] sm:$0x3f]   ;;  %87 = vst.msk [vmem:[#allocation0 + $0x240] ss:$8 sm:$0xf] %vm3_vm0, %v1121_v19  }
  0x16   :  { %89 = vst.msk [vmem:[#allocation0 + $0x240] ss:$8 sm:$0x30] %vm3_vm0, %v1121_v19   ;;  %94 = vst.msk [vmem:[#allocation0 + $0x270] ss:$8 sm:$0xf] %vm3_vm0, %v1122_v20  }
  0x17   :  { %96 = vst.msk [vmem:[#allocation0 + $0x270] ss:$8 sm:$0x30] %vm3_vm0, %v1122_v20   ;;  %80 = vst.msk [vmem:[#allocation0 + $0x210] ss:$8 sm:$0xf] %vm3_vm0, %v1120_v21  }
  0x18   :  { %82 = vst.msk [vmem:[#allocation0 + $0x210] ss:$8 sm:$0x30] %vm3_vm0, %v1120_v21   ;;  %v1135_v22 = vld.sshfl [vmem:[%s1756_s0 + $0x60] sm:$0xff pattern:$0x98543210]  }
  0x19   :  { %v1134_v23 = vld.sshfl [vmem:[%s1756_s0 + $0x54] sm:$0xff pattern:$0x98765410]   ;;  %207 = vrot.lane.b32.xlu1 %v1135_v22, %s1248_s8  ;;  %v1136_v27 = vld.sshfl [vmem:[%s1756_s0 + $0x6a] sm:$0xff pattern:$0x98763210]  }
  0x1a   :  { %v1123_v24 = vld [vmem:[%s1756_s0 + $0x70] sm:$0x3f]   ;;  %v1124_v25 = vld [vmem:[%s1756_s0 + $0x78] sm:$0x3f]   ;;  %198 = vrot.lane.b32.xlu0 %v1134_v23, %s1248_s8  ;;  %v1139_v28 = vld [vmem:[%s1756_s0 + $0x8a] sm:$0xf]  }
  0x1b   :  { %v1137_v26 = vld.sshfl [vmem:[%s1756_s0 + $0x74] sm:$0xff pattern:$0x98765410]   ;;  %103 = vst.msk [vmem:[#allocation0 + $0x2a0] ss:$8 sm:$0x30] %vm3_vm0, %v1123_v24  }
  0x1c   :  { %108 = vst.msk [vmem:[#allocation0 + $0x2d0] ss:$8 sm:$0xf] %vm3_vm0, %v1124_v25   ;;  %110 = vst.msk [vmem:[#allocation0 + $0x2d0] ss:$8 sm:$0x30] %vm3_vm0, %v1124_v25  }
  0x1d   :  { %101 = vst.msk [vmem:[#allocation0 + $0x2a0] ss:$8 sm:$0xf] %vm3_vm0, %v1123_v24   ;;  %225 = vrot.lane.b32.xlu1 %v1137_v26, %s1248_s8  ;;  %v1126_v29 = vld [vmem:[%s1756_s0 + $0x88] sm:$0x3f]  }
  0x1e   :  { %216 = vrot.lane.b32.xlu0 %v1136_v27, %s1248_s8  ;;  %v1125_v30 = vld [vmem:[%s1756_s0 + $0x80] sm:$0x3f]   ;;  %122 = vst.msk [vmem:[#allocation0 + $0x330] ss:$8 sm:$0xf] %vm3_vm0, %v1126_v29  }
  0x1f   :  { %v1138_v31 = vld.sshfl [vmem:[%s1756_s0 + $0x80] sm:$0xff pattern:$0x98543210]   ;;  %124 = vst.msk [vmem:[#allocation0 + $0x330] ss:$8 sm:$0x30] %vm3_vm0, %v1126_v29  }
  0x20   :  { %115 = vst.msk [vmem:[#allocation0 + $0x300] ss:$8 sm:$0xf] %vm3_vm0, %v1125_v30   ;;  %117 = vst.msk [vmem:[#allocation0 + $0x300] ss:$8 sm:$0x30] %vm3_vm0, %v1125_v30  }
  0x21   :  { %243 = vrot.lane.b32.xlu1 %v1139_v28, %s1248_s8 }
  0x22   :  { %234 = vrot.lane.b32.xlu0 %v1138_v31, %s1248_s8 }
  0x74   :  { %v145_v32 = vpop.permute.xlu1 %144   ;;  %v127_v33 = vpop.permute.xlu0 %126  }
  0x75   :  { %148 = vst.msk [vmem:[#allocation0 + $0x81] ss:$8 sm:$0xf] %vm3_vm0, %v145_v32   ;;  %150 = vst.msk [vmem:[#allocation0 + $0x81] ss:$8 sm:$0xf0] %vm3_vm0, %v145_v32  }
  0x76   :  { %130 = vst.msk [vmem:[#allocation0 + $0x1] ss:$8 sm:$0xf] %vm3_vm0, %v127_v33   ;;  %132 = vst.msk [vmem:[#allocation0 + $0x1] ss:$8 sm:$0xf0] %vm3_vm0, %v127_v33  }
  0x78   :  { %v154_v34 = vpop.permute.xlu1 %153   ;;  %v136_v35 = vpop.permute.xlu0 %135  }
  0x79   :  { %157 = vst.msk [vmem:[#allocation0 + $0xc1] ss:$8 sm:$0xf] %vm3_vm0, %v154_v34   ;;  %159 = vst.msk [vmem:[#allocation0 + $0xc1] ss:$8 sm:$0xf0] %vm3_vm0, %v154_v34  }
  0x7a   :  { %139 = vst.msk [vmem:[#allocation0 + $0x41] ss:$8 sm:$0xf] %vm3_vm0, %v136_v35   ;;  %141 = vst.msk [vmem:[#allocation0 + $0x41] ss:$8 sm:$0xf0] %vm3_vm0, %v136_v35  }
  0x7c   :  { %v361_v36 = vld [vmem:[#allocation0 + $0x80] sm:$0x3]  ;;  %v368_v37 = vld [vmem:[#allocation0 + $0x88] sm:$0x3]  ;;  %v375_v38 = vld [vmem:[#allocation0 + $0x90] sm:$0x3]  ;;  %v172_v39 = vpop.permute.xlu1 %171   ;;  %v163_v43 = vpop.permute.xlu0 %162  }
  0x7d   :  { %1155 = vst [vmem:[%s1757_s1 + $0x20] sm:$0x3] %v361_v36  ;;  %1156 = vst [vmem:[%s1757_s1 + $0x22] sm:$0x3] %v368_v37  ;;  %v382_v40 = vld [vmem:[#allocation0 + $0x98] sm:$0x3] }
  0x7e   :  { %1157 = vst [vmem:[%s1757_s1 + $0x24] sm:$0x3] %v375_v38  ;;  %v389_v41 = vld [vmem:[#allocation0 + $0xa0] sm:$0x3]  ;;  %v396_v42 = vld [vmem:[#allocation0 + $0xa8] sm:$0x3] }
  0x7f   :  { %175 = vst.msk [vmem:[#allocation0 + $0x141] ss:$8 sm:$0xf] %vm3_vm0, %v172_v39   ;;  %177 = vst.msk [vmem:[#allocation0 + $0x141] ss:$8 sm:$0xf0] %vm3_vm0, %v172_v39  }
  0x80   :  { %1158 = vst [vmem:[%s1757_s1 + $0x26] sm:$0x3] %v382_v40  ;;  %1159 = vst [vmem:[%s1757_s1 + $0x28] sm:$0x3] %v389_v41  ;;  %v403_v44 = vld [vmem:[#allocation0 + $0xb0] sm:$0x3]  ;;  %v190_v53 = vpop.permute.xlu1 %189  }
  0x81   :  { %1160 = vst [vmem:[%s1757_s1 + $0x2a] sm:$0x3] %v396_v42  ;;  %v410_v45 = vld [vmem:[#allocation0 + $0xb8] sm:$0x3]  ;;  %v252_v46 = vld [vmem:[#allocation0] sm:$0x3] }
  0x82   :  { %166 = vst.msk [vmem:[#allocation0 + $0x101] ss:$8 sm:$0xf] %vm3_vm0, %v163_v43   ;;  %168 = vst.msk [vmem:[#allocation0 + $0x101] ss:$8 sm:$0xf0] %vm3_vm0, %v163_v43  }
  0x83   :  { %1161 = vst [vmem:[%s1757_s1 + $0x2c] sm:$0x3] %v403_v44  ;;  %1162 = vst [vmem:[%s1757_s1 + $0x2e] sm:$0x3] %v410_v45  ;;  %v257_v47 = vld [vmem:[#allocation0 + $0x8] sm:$0x3] }
  0x84   :  { %255 = vst [vmem:[%s1757_s1] sm:$0x3] %v252_v46  ;;  %v263_v48 = vld [vmem:[#allocation0 + $0x10] sm:$0x3]  ;;  %v270_v49 = vld [vmem:[#allocation0 + $0x18] sm:$0x3]  ;;  %v181_v57 = vpop.permute.xlu0 %180  }
  0x85   :  { %1140 = vst [vmem:[%s1757_s1 + $0x2] sm:$0x3] %v257_v47  ;;  %1141 = vst [vmem:[%s1757_s1 + $0x4] sm:$0x3] %v263_v48  ;;  %v277_v50 = vld [vmem:[#allocation0 + $0x20] sm:$0x3] }
  0x86   :  { %1142 = vst [vmem:[%s1757_s1 + $0x6] sm:$0x3] %v270_v49  ;;  %v284_v51 = vld [vmem:[#allocation0 + $0x28] sm:$0x3]  ;;  %v291_v52 = vld [vmem:[#allocation0 + $0x30] sm:$0x3] }
  0x87   :  { %1143 = vst [vmem:[%s1757_s1 + $0x8] sm:$0x3] %v277_v50  ;;  %1144 = vst [vmem:[%s1757_s1 + $0xa] sm:$0x3] %v284_v51  ;;  %v298_v54 = vld [vmem:[#allocation0 + $0x38] sm:$0x3] }
  0x88   :  { %1145 = vst [vmem:[%s1757_s1 + $0xc] sm:$0x3] %v291_v52  ;;  %v417_v55 = vld [vmem:[#allocation0 + $0xc0] sm:$0x3]  ;;  %v424_v56 = vld [vmem:[#allocation0 + $0xc8] sm:$0x3] }
  0x89   :  { %193 = vst.msk [vmem:[#allocation0 + $0x1c1] ss:$8 sm:$0xf] %vm3_vm0, %v190_v53   ;;  %195 = vst.msk [vmem:[#allocation0 + $0x1c1] ss:$8 sm:$0xf0] %vm3_vm0, %v190_v53  }
  0x8a   :  { %1146 = vst [vmem:[%s1757_s1 + $0xe] sm:$0x3] %v298_v54  ;;  %1163 = vst [vmem:[%s1757_s1 + $0x30] sm:$0x3] %v417_v55  ;;  %v431_v58 = vld [vmem:[#allocation0 + $0xd0] sm:$0x3] }
  0x8b   :  { %1164 = vst [vmem:[%s1757_s1 + $0x32] sm:$0x3] %v424_v56  ;;  %v438_v59 = vld [vmem:[#allocation0 + $0xd8] sm:$0x3]  ;;  %v445_v60 = vld [vmem:[#allocation0 + $0xe0] sm:$0x3]  ;;  %v208_v3 = vpop.permute.xlu1 %207  }
  0x8c   :  { %184 = vst.msk [vmem:[#allocation0 + $0x181] ss:$8 sm:$0xf] %vm3_vm0, %v181_v57   ;;  %186 = vst.msk [vmem:[#allocation0 + $0x181] ss:$8 sm:$0xf0] %vm3_vm0, %v181_v57   ;;  %v199_v7 = vpop.permute.xlu0 %198  }
  0x8d   :  { %1165 = vst [vmem:[%s1757_s1 + $0x34] sm:$0x3] %v431_v58  ;;  %1166 = vst [vmem:[%s1757_s1 + $0x36] sm:$0x3] %v438_v59  ;;  %v452_v61 = vld [vmem:[#allocation0 + $0xe8] sm:$0x3] }
  0x8e   :  { %1167 = vst [vmem:[%s1757_s1 + $0x38] sm:$0x3] %v445_v60  ;;  %v459_v62 = vld [vmem:[#allocation0 + $0xf0] sm:$0x3]  ;;  %v466_v63 = vld [vmem:[#allocation0 + $0xf8] sm:$0x3] }
  0x8f   :  { %1168 = vst [vmem:[%s1757_s1 + $0x3a] sm:$0x3] %v452_v61  ;;  %1169 = vst [vmem:[%s1757_s1 + $0x3c] sm:$0x3] %v459_v62  ;;  %v305_v0 = vld [vmem:[#allocation0 + $0x40] sm:$0x3]  ;;  %v226_v17 = vpop.permute.xlu1 %225  }
  0x90   :  { %1170 = vst [vmem:[%s1757_s1 + $0x3e] sm:$0x3] %v466_v63  ;;  %v312_v1 = vld [vmem:[#allocation0 + $0x48] sm:$0x3]  ;;  %v319_v2 = vld [vmem:[#allocation0 + $0x50] sm:$0x3]  ;;  %v217_v21 = vpop.permute.xlu0 %216  }
  0x91   :  { %1147 = vst [vmem:[%s1757_s1 + $0x10] sm:$0x3] %v305_v0  ;;  %1148 = vst [vmem:[%s1757_s1 + $0x12] sm:$0x3] %v312_v1  ;;  %v326_v4 = vld [vmem:[#allocation0 + $0x58] sm:$0x3] }
  0x92   :  { %1149 = vst [vmem:[%s1757_s1 + $0x14] sm:$0x3] %v319_v2  ;;  %v333_v5 = vld [vmem:[#allocation0 + $0x60] sm:$0x3]  ;;  %v340_v6 = vld [vmem:[#allocation0 + $0x68] sm:$0x3] }
  0x93   :  { %211 = vst.msk [vmem:[#allocation0 + $0x241] ss:$8 sm:$0xf] %vm3_vm0, %v208_v3   ;;  %213 = vst.msk [vmem:[#allocation0 + $0x241] ss:$8 sm:$0xf0] %vm3_vm0, %v208_v3   ;;  %v244_v31 = vpop.permute.xlu1 %243  }
  0x94   :  { %1150 = vst [vmem:[%s1757_s1 + $0x16] sm:$0x3] %v326_v4  ;;  %1151 = vst [vmem:[%s1757_s1 + $0x18] sm:$0x3] %v333_v5  ;;  %v347_v8 = vld [vmem:[#allocation0 + $0x70] sm:$0x3]  ;;  %v235_v35 = vpop.permute.xlu0 %234  }
  0x95   :  { %1152 = vst [vmem:[%s1757_s1 + $0x1a] sm:$0x3] %v340_v6  ;;  %v354_v9 = vld [vmem:[#allocation0 + $0x78] sm:$0x3]  ;;  %v529_v10 = vld [vmem:[#allocation0 + $0x140] sm:$0x3] }
  0x96   :  { %202 = vst.msk [vmem:[#allocation0 + $0x201] ss:$8 sm:$0xf] %vm3_vm0, %v199_v7   ;;  %204 = vst.msk [vmem:[#allocation0 + $0x201] ss:$8 sm:$0xf0] %vm3_vm0, %v199_v7  }
  0x97   :  { %1153 = vst [vmem:[%s1757_s1 + $0x1c] sm:$0x3] %v347_v8  ;;  %1154 = vst [vmem:[%s1757_s1 + $0x1e] sm:$0x3] %v354_v9  ;;  %v536_v11 = vld [vmem:[#allocation0 + $0x148] sm:$0x3] }
  0x98   :  { %1179 = vst [vmem:[%s1757_s1 + $0x50] sm:$0x3] %v529_v10  ;;  %v543_v12 = vld [vmem:[#allocation0 + $0x150] sm:$0x3]  ;;  %v550_v13 = vld [vmem:[#allocation0 + $0x158] sm:$0x3] }
  0x99   :  { %1180 = vst [vmem:[%s1757_s1 + $0x52] sm:$0x3] %v536_v11  ;;  %1181 = vst [vmem:[%s1757_s1 + $0x54] sm:$0x3] %v543_v12  ;;  %v557_v14 = vld [vmem:[#allocation0 + $0x160] sm:$0x3] }
  0x9a   :  { %1182 = vst [vmem:[%s1757_s1 + $0x56] sm:$0x3] %v550_v13  ;;  %v564_v15 = vld [vmem:[#allocation0 + $0x168] sm:$0x3]  ;;  %v571_v16 = vld [vmem:[#allocation0 + $0x170] sm:$0x3] }
  0x9b   :  { %1183 = vst [vmem:[%s1757_s1 + $0x58] sm:$0x3] %v557_v14  ;;  %1184 = vst [vmem:[%s1757_s1 + $0x5a] sm:$0x3] %v564_v15  ;;  %v578_v18 = vld [vmem:[#allocation0 + $0x178] sm:$0x3] }
  0x9c   :  { %1185 = vst [vmem:[%s1757_s1 + $0x5c] sm:$0x3] %v571_v16  ;;  %v473_v19 = vld [vmem:[#allocation0 + $0x100] sm:$0x3]  ;;  %v480_v20 = vld [vmem:[#allocation0 + $0x108] sm:$0x3] }
  0x9d   :  { %229 = vst.msk [vmem:[#allocation0 + $0x2c1] ss:$8 sm:$0xf] %vm3_vm0, %v226_v17   ;;  %231 = vst.msk [vmem:[#allocation0 + $0x2c1] ss:$8 sm:$0xf0] %vm3_vm0, %v226_v17  }
  0x9e   :  { %1186 = vst [vmem:[%s1757_s1 + $0x5e] sm:$0x3] %v578_v18  ;;  %1171 = vst [vmem:[%s1757_s1 + $0x40] sm:$0x3] %v473_v19  ;;  %v487_v22 = vld [vmem:[#allocation0 + $0x110] sm:$0x3] }
  0x9f   :  { %1172 = vst [vmem:[%s1757_s1 + $0x42] sm:$0x3] %v480_v20  ;;  %v494_v23 = vld [vmem:[#allocation0 + $0x118] sm:$0x3]  ;;  %v501_v24 = vld [vmem:[#allocation0 + $0x120] sm:$0x3] }
  0xa0   :  { %220 = vst.msk [vmem:[#allocation0 + $0x281] ss:$8 sm:$0xf] %vm3_vm0, %v217_v21   ;;  %222 = vst.msk [vmem:[#allocation0 + $0x281] ss:$8 sm:$0xf0] %vm3_vm0, %v217_v21  }
  0xa1   :  { %1173 = vst [vmem:[%s1757_s1 + $0x44] sm:$0x3] %v487_v22  ;;  %1174 = vst [vmem:[%s1757_s1 + $0x46] sm:$0x3] %v494_v23  ;;  %v508_v25 = vld [vmem:[#allocation0 + $0x128] sm:$0x3] }
  0xa2   :  { %1175 = vst [vmem:[%s1757_s1 + $0x48] sm:$0x3] %v501_v24  ;;  %v515_v26 = vld [vmem:[#allocation0 + $0x130] sm:$0x3]  ;;  %v522_v27 = vld [vmem:[#allocation0 + $0x138] sm:$0x3] }
  0xa3   :  { %1176 = vst [vmem:[%s1757_s1 + $0x4a] sm:$0x3] %v508_v25  ;;  %1177 = vst [vmem:[%s1757_s1 + $0x4c] sm:$0x3] %v515_v26  ;;  %v641_v28 = vld [vmem:[#allocation0 + $0x1c0] sm:$0x3] }
  0xa4   :  { %1178 = vst [vmem:[%s1757_s1 + $0x4e] sm:$0x3] %v522_v27  ;;  %v648_v29 = vld [vmem:[#allocation0 + $0x1c8] sm:$0x3]  ;;  %v655_v30 = vld [vmem:[#allocation0 + $0x1d0] sm:$0x3] }
  0xa5   :  { %1195 = vst [vmem:[%s1757_s1 + $0x70] sm:$0x3] %v641_v28  ;;  %1196 = vst [vmem:[%s1757_s1 + $0x72] sm:$0x3] %v648_v29  ;;  %v662_v32 = vld [vmem:[#allocation0 + $0x1d8] sm:$0x3] }
  0xa6   :  { %1197 = vst [vmem:[%s1757_s1 + $0x74] sm:$0x3] %v655_v30  ;;  %v669_v33 = vld [vmem:[#allocation0 + $0x1e0] sm:$0x3]  ;;  %v676_v34 = vld [vmem:[#allocation0 + $0x1e8] sm:$0x3] }
  0xa7   :  { %247 = vst.msk [vmem:[#allocation0 + $0x341] ss:$8 sm:$0xf] %vm3_vm0, %v244_v31   ;;  %1198 = vst [vmem:[%s1757_s1 + $0x76] sm:$0x3] %v662_v32 }
  0xa8   :  { %1199 = vst [vmem:[%s1757_s1 + $0x78] sm:$0x3] %v669_v33  ;;  %1200 = vst [vmem:[%s1757_s1 + $0x7a] sm:$0x3] %v676_v34  ;;  %v683_v36 = vld [vmem:[#allocation0 + $0x1f0] sm:$0x3] }
  0xa9   :  { %v690_v37 = vld [vmem:[#allocation0 + $0x1f8] sm:$0x3]  ;;  %v585_v38 = vld [vmem:[#allocation0 + $0x180] sm:$0x3]  ;;  %1201 = vst [vmem:[%s1757_s1 + $0x7c] sm:$0x3] %v683_v36 }
  0xaa   :  { %238 = vst.msk [vmem:[#allocation0 + $0x301] ss:$8 sm:$0xf] %vm3_vm0, %v235_v35   ;;  %240 = vst.msk [vmem:[#allocation0 + $0x301] ss:$8 sm:$0xf0] %vm3_vm0, %v235_v35  }
  0xab   :  { %1202 = vst [vmem:[%s1757_s1 + $0x7e] sm:$0x3] %v690_v37  ;;  %1187 = vst [vmem:[%s1757_s1 + $0x60] sm:$0x3] %v585_v38  ;;  %v592_v39 = vld [vmem:[#allocation0 + $0x188] sm:$0x3] }
  0xac   :  { %v599_v40 = vld [vmem:[#allocation0 + $0x190] sm:$0x3]  ;;  %v606_v41 = vld [vmem:[#allocation0 + $0x198] sm:$0x3]  ;;  %1188 = vst [vmem:[%s1757_s1 + $0x62] sm:$0x3] %v592_v39 }
  0xad   :  { %1189 = vst [vmem:[%s1757_s1 + $0x64] sm:$0x3] %v599_v40  ;;  %1190 = vst [vmem:[%s1757_s1 + $0x66] sm:$0x3] %v606_v41  ;;  %v613_v42 = vld [vmem:[#allocation0 + $0x1a0] sm:$0x3] }
  0xae   :  { %v620_v43 = vld [vmem:[#allocation0 + $0x1a8] sm:$0x3]  ;;  %v627_v44 = vld [vmem:[#allocation0 + $0x1b0] sm:$0x3]  ;;  %1191 = vst [vmem:[%s1757_s1 + $0x68] sm:$0x3] %v613_v42 }
  0xaf   :  { %1192 = vst [vmem:[%s1757_s1 + $0x6a] sm:$0x3] %v620_v43  ;;  %1193 = vst [vmem:[%s1757_s1 + $0x6c] sm:$0x3] %v627_v44  ;;  %v634_v45 = vld [vmem:[#allocation0 + $0x1b8] sm:$0x3] }
  0xb0   :  { %v753_v46 = vld [vmem:[#allocation0 + $0x240] sm:$0x3]  ;;  %v760_v47 = vld [vmem:[#allocation0 + $0x248] sm:$0x3]  ;;  %1194 = vst [vmem:[%s1757_s1 + $0x6e] sm:$0x3] %v634_v45 }
  0xb1   :  { %1211 = vst [vmem:[%s1757_s1 + $0x90] sm:$0x3] %v753_v46  ;;  %1212 = vst [vmem:[%s1757_s1 + $0x92] sm:$0x3] %v760_v47  ;;  %v767_v48 = vld [vmem:[#allocation0 + $0x250] sm:$0x3] }
  0xb2   :  { %v774_v49 = vld [vmem:[#allocation0 + $0x258] sm:$0x3]  ;;  %v781_v50 = vld [vmem:[#allocation0 + $0x260] sm:$0x3]  ;;  %1213 = vst [vmem:[%s1757_s1 + $0x94] sm:$0x3] %v767_v48 }
  0xb3   :  { %1214 = vst [vmem:[%s1757_s1 + $0x96] sm:$0x3] %v774_v49  ;;  %1215 = vst [vmem:[%s1757_s1 + $0x98] sm:$0x3] %v781_v50  ;;  %v788_v51 = vld [vmem:[#allocation0 + $0x268] sm:$0x3] }
  0xb4   :  { %v795_v52 = vld [vmem:[#allocation0 + $0x270] sm:$0x3]  ;;  %v802_v53 = vld [vmem:[#allocation0 + $0x278] sm:$0x3]  ;;  %1216 = vst [vmem:[%s1757_s1 + $0x9a] sm:$0x3] %v788_v51 }
  0xb5   :  { %1217 = vst [vmem:[%s1757_s1 + $0x9c] sm:$0x3] %v795_v52  ;;  %1218 = vst [vmem:[%s1757_s1 + $0x9e] sm:$0x3] %v802_v53  ;;  %v697_v54 = vld [vmem:[#allocation0 + $0x200] sm:$0x3] }
  0xb6   :  { %v704_v55 = vld [vmem:[#allocation0 + $0x208] sm:$0x3]  ;;  %v711_v56 = vld [vmem:[#allocation0 + $0x210] sm:$0x3]  ;;  %1203 = vst [vmem:[%s1757_s1 + $0x80] sm:$0x3] %v697_v54 }
  0xb7   :  { %1204 = vst [vmem:[%s1757_s1 + $0x82] sm:$0x3] %v704_v55  ;;  %1205 = vst [vmem:[%s1757_s1 + $0x84] sm:$0x3] %v711_v56  ;;  %v718_v57 = vld [vmem:[#allocation0 + $0x218] sm:$0x3] }
  0xb8   :  { %v725_v58 = vld [vmem:[#allocation0 + $0x220] sm:$0x3]  ;;  %v732_v59 = vld [vmem:[#allocation0 + $0x228] sm:$0x3]  ;;  %1206 = vst [vmem:[%s1757_s1 + $0x86] sm:$0x3] %v718_v57 }
  0xb9   :  { %1207 = vst [vmem:[%s1757_s1 + $0x88] sm:$0x3] %v725_v58  ;;  %1208 = vst [vmem:[%s1757_s1 + $0x8a] sm:$0x3] %v732_v59  ;;  %v739_v60 = vld [vmem:[#allocation0 + $0x230] sm:$0x3] }
  0xba   :  { %v746_v61 = vld [vmem:[#allocation0 + $0x238] sm:$0x3]  ;;  %v865_v62 = vld [vmem:[#allocation0 + $0x2c0] sm:$0x3]  ;;  %1209 = vst [vmem:[%s1757_s1 + $0x8c] sm:$0x3] %v739_v60 }
  0xbb   :  { %1210 = vst [vmem:[%s1757_s1 + $0x8e] sm:$0x3] %v746_v61  ;;  %1227 = vst [vmem:[%s1757_s1 + $0xb0] sm:$0x3] %v865_v62  ;;  %v872_v63 = vld [vmem:[#allocation0 + $0x2c8] sm:$0x3] }
  0xbc   :  { %v879_v0 = vld [vmem:[#allocation0 + $0x2d0] sm:$0x3]  ;;  %v886_v1 = vld [vmem:[#allocation0 + $0x2d8] sm:$0x3]  ;;  %1228 = vst [vmem:[%s1757_s1 + $0xb2] sm:$0x3] %v872_v63 }
  0xbd   :  { %1229 = vst [vmem:[%s1757_s1 + $0xb4] sm:$0x3] %v879_v0  ;;  %1230 = vst [vmem:[%s1757_s1 + $0xb6] sm:$0x3] %v886_v1  ;;  %v893_v2 = vld [vmem:[#allocation0 + $0x2e0] sm:$0x3] }
  0xbe   :  { %v900_v3 = vld [vmem:[#allocation0 + $0x2e8] sm:$0x3]  ;;  %v907_v4 = vld [vmem:[#allocation0 + $0x2f0] sm:$0x3]  ;;  %1231 = vst [vmem:[%s1757_s1 + $0xb8] sm:$0x3] %v893_v2 }
  0xbf   :  { %1232 = vst [vmem:[%s1757_s1 + $0xba] sm:$0x3] %v900_v3  ;;  %1233 = vst [vmem:[%s1757_s1 + $0xbc] sm:$0x3] %v907_v4  ;;  %v914_v5 = vld [vmem:[#allocation0 + $0x2f8] sm:$0x3] }
  0xc0   :  { %v809_v6 = vld [vmem:[#allocation0 + $0x280] sm:$0x3]  ;;  %v816_v7 = vld [vmem:[#allocation0 + $0x288] sm:$0x3]  ;;  %1234 = vst [vmem:[%s1757_s1 + $0xbe] sm:$0x3] %v914_v5 }
  0xc1   :  { %1219 = vst [vmem:[%s1757_s1 + $0xa0] sm:$0x3] %v809_v6  ;;  %1220 = vst [vmem:[%s1757_s1 + $0xa2] sm:$0x3] %v816_v7  ;;  %v823_v8 = vld [vmem:[#allocation0 + $0x290] sm:$0x3] }
  0xc2   :  { %v830_v9 = vld [vmem:[#allocation0 + $0x298] sm:$0x3]  ;;  %v837_v10 = vld [vmem:[#allocation0 + $0x2a0] sm:$0x3]  ;;  %1221 = vst [vmem:[%s1757_s1 + $0xa4] sm:$0x3] %v823_v8 }
  0xc3   :  { %1222 = vst [vmem:[%s1757_s1 + $0xa6] sm:$0x3] %v830_v9  ;;  %1223 = vst [vmem:[%s1757_s1 + $0xa8] sm:$0x3] %v837_v10  ;;  %v844_v11 = vld [vmem:[#allocation0 + $0x2a8] sm:$0x3] }
  0xc4   :  { %v851_v12 = vld [vmem:[#allocation0 + $0x2b0] sm:$0x3]  ;;  %v858_v13 = vld [vmem:[#allocation0 + $0x2b8] sm:$0x3]  ;;  %1224 = vst [vmem:[%s1757_s1 + $0xaa] sm:$0x3] %v844_v11 }
  0xc5   :  { %1225 = vst [vmem:[%s1757_s1 + $0xac] sm:$0x3] %v851_v12  ;;  %1226 = vst [vmem:[%s1757_s1 + $0xae] sm:$0x3] %v858_v13  ;;  %v977_v14 = vld [vmem:[#allocation0 + $0x340] sm:$0x3] }
  0xc6   :  { %v984_v15 = vld [vmem:[#allocation0 + $0x348] sm:$0x3]  ;;  %v991_v16 = vld [vmem:[#allocation0 + $0x350] sm:$0x3]  ;;  %1243 = vst [vmem:[%s1757_s1 + $0xd0] sm:$0x3] %v977_v14 }
  0xc7   :  { %1244 = vst [vmem:[%s1757_s1 + $0xd2] sm:$0x3] %v984_v15  ;;  %1245 = vst [vmem:[%s1757_s1 + $0xd4] sm:$0x3] %v991_v16  ;;  %v998_v17 = vld [vmem:[#allocation0 + $0x358] sm:$0x3] }
  0xc8   :  { %v921_v18 = vld [vmem:[#allocation0 + $0x300] sm:$0x3]  ;;  %v928_v19 = vld [vmem:[#allocation0 + $0x308] sm:$0x3]  ;;  %1246 = vst [vmem:[%s1757_s1 + $0xd6] sm:$0x3] %v998_v17 }
  0xc9   :  { %1235 = vst [vmem:[%s1757_s1 + $0xc0] sm:$0x3] %v921_v18  ;;  %1236 = vst [vmem:[%s1757_s1 + $0xc2] sm:$0x3] %v928_v19  ;;  %v935_v20 = vld [vmem:[#allocation0 + $0x310] sm:$0x3] }
  0xca   :  { %v942_v21 = vld [vmem:[#allocation0 + $0x318] sm:$0x3]  ;;  %v949_v22 = vld [vmem:[#allocation0 + $0x320] sm:$0x3]  ;;  %1237 = vst [vmem:[%s1757_s1 + $0xc4] sm:$0x3] %v935_v20 }
  0xcb   :  { %1238 = vst [vmem:[%s1757_s1 + $0xc6] sm:$0x3] %v942_v21  ;;  %1239 = vst [vmem:[%s1757_s1 + $0xc8] sm:$0x3] %v949_v22  ;;  %v956_v23 = vld [vmem:[#allocation0 + $0x328] sm:$0x3] }
  0xcc   :  { %v963_v24 = vld [vmem:[#allocation0 + $0x330] sm:$0x3]  ;;  %v970_v25 = vld [vmem:[#allocation0 + $0x338] sm:$0x3]  ;;  %1240 = vst [vmem:[%s1757_s1 + $0xca] sm:$0x3] %v956_v23 }
  0xcd   :  { %1241 = vst [vmem:[%s1757_s1 + $0xcc] sm:$0x3] %v963_v24  ;;  %1242 = vst [vmem:[%s1757_s1 + $0xce] sm:$0x3] %v970_v25 }

// kernel: squeeze.7
= control target key start
LH: loop header
LB: loop body
LE: loop exit
PB: predicated region body
PF: predicated region fallthrough
CT: control target
= control target key end

     0   :  { %vm182_vm0 = vcmask 72704   ;;  %s1883_s23 = smov 119   ;;  %s2524_s0 = inlined_call_operand.vmem [shape: f32[1,4,18,6,6], index: 0, kind: input, shape index: {}]   ;;  %s2525_s1 = inlined_call_operand.vmem [shape: f32[4,2,9,4,9], index: 1, kind: output, shape index: {}]  }
   0x1   :  { %v1738_v0 = vld [vmem:[%s2524_s0 + $0x4] sm:$0xf]  ;;  %v179_v1 = vld [vmem:[%s2524_s0] sm:$0xf]  ;;  %v1734_v2 = vld [vmem:[%s2524_s0 + $0x14] sm:$0xf] }
   0x2   :  { %178 = vst [vmem:[#allocation1 + $0x8] sm:$0xf] %v1738_v0  ;;  %180 = vst [vmem:[#allocation1] sm:$0xf] %v179_v1  ;;  %v1735_v3 = vld [vmem:[%s2524_s0 + $0x10] sm:$0xf] }
   0x3   :  { %v1736_v4 = vld [vmem:[%s2524_s0 + $0xc] sm:$0xf]  ;;  %159 = vst [vmem:[#allocation1 + $0x28] sm:$0xf] %v1734_v2  ;;  %164 = vst [vmem:[#allocation1 + $0x20] sm:$0xf] %v1735_v3 }
   0x4   :  { %169 = vst [vmem:[#allocation1 + $0x18] sm:$0xf] %v1736_v4  ;;  %v1737_v5 = vld [vmem:[%s2524_s0 + $0x8] sm:$0xf]  ;;  %v1732_v6 = vld [vmem:[%s2524_s0 + $0x1c] sm:$0xf] }
   0x5   :  { %v1733_v7 = vld [vmem:[%s2524_s0 + $0x18] sm:$0xf]  ;;  %174 = vst [vmem:[#allocation1 + $0x10] sm:$0xf] %v1737_v5  ;;  %149 = vst [vmem:[#allocation1 + $0x38] sm:$0xf] %v1732_v6 }
   0x6   :  { %154 = vst [vmem:[#allocation1 + $0x30] sm:$0xf] %v1733_v7  ;;  %v1730_v8 = vld [vmem:[%s2524_s0 + $0x24] sm:$0xf]  ;;  %v1731_v9 = vld [vmem:[%s2524_s0 + $0x20] sm:$0xf] }
   0x7   :  { %v1728_v10 = vld [vmem:[%s2524_s0 + $0x2c] sm:$0xf]  ;;  %139 = vst [vmem:[#allocation1 + $0x48] sm:$0xf] %v1730_v8  ;;  %144 = vst [vmem:[#allocation1 + $0x40] sm:$0xf] %v1731_v9 }
   0x8   :  { %129 = vst [vmem:[#allocation1 + $0x58] sm:$0xf] %v1728_v10  ;;  %v1729_v11 = vld [vmem:[%s2524_s0 + $0x28] sm:$0xf]  ;;  %v1726_v12 = vld [vmem:[%s2524_s0 + $0x34] sm:$0xf] }
   0x9   :  { %v1727_v13 = vld [vmem:[%s2524_s0 + $0x30] sm:$0xf]  ;;  %134 = vst [vmem:[#allocation1 + $0x50] sm:$0xf] %v1729_v11  ;;  %119 = vst [vmem:[#allocation1 + $0x68] sm:$0xf] %v1726_v12 }
   0xa   :  { %124 = vst [vmem:[#allocation1 + $0x60] sm:$0xf] %v1727_v13  ;;  %v1724_v14 = vld [vmem:[%s2524_s0 + $0x3c] sm:$0xf]  ;;  %v1725_v15 = vld [vmem:[%s2524_s0 + $0x38] sm:$0xf] }
   0xb   :  { %v1722_v16 = vld [vmem:[%s2524_s0 + $0x44] sm:$0xf]  ;;  %109 = vst [vmem:[#allocation1 + $0x78] sm:$0xf] %v1724_v14  ;;  %114 = vst [vmem:[#allocation1 + $0x70] sm:$0xf] %v1725_v15 }
   0xc   :  { %99 = vst [vmem:[#allocation1 + $0x88] sm:$0xf] %v1722_v16  ;;  %v1723_v17 = vld [vmem:[%s2524_s0 + $0x40] sm:$0xf]  ;;  %v1720_v18 = vld [vmem:[%s2524_s0 + $0x4c] sm:$0xf] }
   0xd   :  { %v1721_v19 = vld [vmem:[%s2524_s0 + $0x48] sm:$0xf]  ;;  %104 = vst [vmem:[#allocation1 + $0x80] sm:$0xf] %v1723_v17  ;;  %89 = vst [vmem:[#allocation1 + $0x98] sm:$0xf] %v1720_v18 }
   0xe   :  { %94 = vst [vmem:[#allocation1 + $0x90] sm:$0xf] %v1721_v19  ;;  %v1718_v20 = vld [vmem:[%s2524_s0 + $0x54] sm:$0xf]  ;;  %v1719_v21 = vld [vmem:[%s2524_s0 + $0x50] sm:$0xf] }
   0xf   :  { %v1716_v22 = vld [vmem:[%s2524_s0 + $0x5c] sm:$0xf]  ;;  %v181_v23 = vld [vmem:[#allocation1] sm:$0xf]   ;;  %79 = vst [vmem:[#allocation1 + $0xa8] sm:$0xf] %v1718_v20 }
  0x10   :  { %v359_v24 = vld.sshfl [vmem:[#allocation1] sm:$0xff pattern:$0xba983210]   ;;  %84 = vst [vmem:[#allocation1 + $0xa0] sm:$0xf] %v1719_v21 }
  0x11   :  { %69 = vst [vmem:[#allocation1 + $0xb8] sm:$0xf] %v1716_v22  ;;  %183 = vst.msk [vmem:[#allocation0] ss:$8 sm:$0xf] %vm182_vm0, %v181_v23   ;;  %360 = vrot.lane.b32.xlu0 %v359_v24, %s1883_s23 }
  0x12   :  { %v185_v25 = vld [vmem:[#allocation1 + $0x8] sm:$0xf]   ;;  %v200_v26 = vld [vmem:[#allocation1 + $0x20] sm:$0xf]   ;;  %v190_v29 = vld [vmem:[#allocation1 + $0x10] sm:$0xf]  }
  0x13   :  { %v205_v27 = vld [vmem:[#allocation1 + $0x28] sm:$0xf]   ;;  %188 = vst.msk [vmem:[#allocation0 + $0x20] ss:$8 sm:$0xf] %vm182_vm0, %v185_v25  }
  0x14   :  { %203 = vst.msk [vmem:[#allocation0 + $0x80] ss:$8 sm:$0xf] %vm182_vm0, %v200_v26   ;;  %v377_v28 = vld.sshfl [vmem:[#allocation1 + $0x20] sm:$0xff pattern:$0xba983210]  }
  0x15   :  { %208 = vst.msk [vmem:[#allocation0 + $0xa0] ss:$8 sm:$0xf] %vm182_vm0, %v205_v27   ;;  %378 = vrot.lane.b32.xlu1 %v377_v28, %s1883_s23  ;;  %193 = vst.msk [vmem:[#allocation0 + $0x40] ss:$8 sm:$0xf] %vm182_vm0, %v190_v29  }
  0x16   :  { %v368_v30 = vld.sshfl [vmem:[#allocation1 + $0x10] sm:$0xff pattern:$0xba983210]   ;;  %v220_v35 = vld [vmem:[#allocation1 + $0x40] sm:$0xf]  }
  0x17   :  { %v195_v31 = vld [vmem:[#allocation1 + $0x18] sm:$0xf]   ;;  %v210_v32 = vld [vmem:[#allocation1 + $0x30] sm:$0xf]   ;;  %369 = vrot.lane.b32.xlu0 %v368_v30, %s1883_s23  ;;  %v225_v36 = vld [vmem:[#allocation1 + $0x48] sm:$0xf]  }
  0x18   :  { %198 = vst.msk [vmem:[#allocation0 + $0x60] ss:$8 sm:$0xf] %vm182_vm0, %v195_v31   ;;  %v386_v33 = vld.sshfl [vmem:[#allocation1 + $0x30] sm:$0xff pattern:$0xba983210]  }
  0x19   :  { %213 = vst.msk [vmem:[#allocation0 + $0xc0] ss:$8 sm:$0xf] %vm182_vm0, %v210_v32   ;;  %v215_v34 = vld [vmem:[#allocation1 + $0x38] sm:$0xf]   ;;  %387 = vrot.lane.b32.xlu1 %v386_v33, %s1883_s23 }
  0x1a   :  { %218 = vst.msk [vmem:[#allocation0 + $0xe0] ss:$8 sm:$0xf] %vm182_vm0, %v215_v34   ;;  %223 = vst.msk [vmem:[#allocation0 + $0x100] ss:$8 sm:$0xf] %vm182_vm0, %v220_v35  }
  0x1b   :  { %v395_v37 = vld.sshfl [vmem:[#allocation1 + $0x40] sm:$0xff pattern:$0xba983210]   ;;  %228 = vst.msk [vmem:[#allocation0 + $0x120] ss:$8 sm:$0xf] %vm182_vm0, %v225_v36  }
  0x1c   :  { %v230_v38 = vld [vmem:[#allocation1 + $0x50] sm:$0xf]   ;;  %v235_v39 = vld [vmem:[#allocation1 + $0x58] sm:$0xf]   ;;  %v240_v41 = vld [vmem:[#allocation1 + $0x60] sm:$0xf]   ;;  %396 = vrot.lane.b32.xlu0 %v395_v37, %s1883_s23 }
  0x1d   :  { %233 = vst.msk [vmem:[#allocation0 + $0x140] ss:$8 sm:$0xf] %vm182_vm0, %v230_v38   ;;  %v404_v40 = vld.sshfl [vmem:[#allocation1 + $0x50] sm:$0xff pattern:$0xba983210]  }
  0x1e   :  { %238 = vst.msk [vmem:[#allocation0 + $0x160] ss:$8 sm:$0xf] %vm182_vm0, %v235_v39   ;;  %243 = vst.msk [vmem:[#allocation0 + $0x180] ss:$8 sm:$0xf] %vm182_vm0, %v240_v41   ;;  %405 = vrot.lane.b32.xlu1 %v404_v40, %s1883_s23 }
  0x1f   :  { %v245_v42 = vld [vmem:[#allocation1 + $0x68] sm:$0xf]   ;;  %v250_v43 = vld [vmem:[#allocation1 + $0x70] sm:$0xf]   ;;  %v255_v44 = vld [vmem:[#allocation1 + $0x78] sm:$0xf]  }
  0x20   :  { %v413_v45 = vld.sshfl [vmem:[#allocation1 + $0x60] sm:$0xff pattern:$0xba983210]   ;;  %248 = vst.msk [vmem:[#allocation0 + $0x1a0] ss:$8 sm:$0xf] %vm182_vm0, %v245_v42  }
  0x21   :  { %253 = vst.msk [vmem:[#allocation0 + $0x1c0] ss:$8 sm:$0xf] %vm182_vm0, %v250_v43   ;;  %258 = vst.msk [vmem:[#allocation0 + $0x1e0] ss:$8 sm:$0xf] %vm182_vm0, %v255_v44   ;;  %414 = vrot.lane.b32.xlu0 %v413_v45, %s1883_s23 }
  0x22   :  { %v260_v46 = vld [vmem:[#allocation1 + $0x80] sm:$0xf]   ;;  %v422_v47 = vld.sshfl [vmem:[#allocation1 + $0x70] sm:$0xff pattern:$0xba983210]  }
  0x23   :  { %263 = vst.msk [vmem:[#allocation0 + $0x200] ss:$8 sm:$0xf] %vm182_vm0, %v260_v46   ;;  %v265_v48 = vld [vmem:[#allocation1 + $0x88] sm:$0xf]   ;;  %423 = vrot.lane.b32.xlu1 %v422_v47, %s1883_s23 }
  0x24   :  { %v431_v49 = vld.sshfl [vmem:[#allocation1 + $0x80] sm:$0xff pattern:$0xba983210]   ;;  %268 = vst.msk [vmem:[#allocation0 + $0x220] ss:$8 sm:$0xf] %vm182_vm0, %v265_v48  }
  0x25   :  { %v270_v50 = vld [vmem:[#allocation1 + $0x90] sm:$0xf]   ;;  %v275_v51 = vld [vmem:[#allocation1 + $0x98] sm:$0xf]   ;;  %v280_v52 = vld [vmem:[#allocation1 + $0xa0] sm:$0xf]   ;;  %432 = vrot.lane.b32.xlu0 %v431_v49, %s1883_s23 }
  0x26   :  { %273 = vst.msk [vmem:[#allocation0 + $0x240] ss:$8 sm:$0xf] %vm182_vm0, %v270_v50   ;;  %v285_v53 = vld [vmem:[#allocation1 + $0xa8] sm:$0xf]  }
  0x27   :  { %v440_v54 = vld.sshfl [vmem:[#allocation1 + $0x90] sm:$0xff pattern:$0xba983210]   ;;  %278 = vst.msk [vmem:[#allocation0 + $0x260] ss:$8 sm:$0xf] %vm182_vm0, %v275_v51  }
  0x28   :  { %283 = vst.msk [vmem:[#allocation0 + $0x280] ss:$8 sm:$0xf] %vm182_vm0, %v280_v52   ;;  %288 = vst.msk [vmem:[#allocation0 + $0x2a0] ss:$8 sm:$0xf] %vm182_vm0, %v285_v53   ;;  %441 = vrot.lane.b32.xlu1 %v440_v54, %s1883_s23 }
  0x29   :  { %v1717_v55 = vld [vmem:[%s2524_s0 + $0x58] sm:$0xf]  ;;  %v1714_v57 = vld [vmem:[%s2524_s0 + $0x64] sm:$0xf]  ;;  %v1715_v58 = vld [vmem:[%s2524_s0 + $0x60] sm:$0xf] }
  0x2a   :  { %74 = vst [vmem:[#allocation1 + $0xb0] sm:$0xf] %v1717_v55  ;;  %v295_v56 = vld [vmem:[#allocation1 + $0xb8] sm:$0xf]   ;;  %59 = vst [vmem:[#allocation1 + $0xc8] sm:$0xf] %v1714_v57 }
  0x2b   :  { %v449_v59 = vld.sshfl [vmem:[#allocation1 + $0xa0] sm:$0xff pattern:$0xba983210]   ;;  %298 = vst.msk [vmem:[#allocation0 + $0x2e0] ss:$8 sm:$0xf] %vm182_vm0, %v295_v56  }
  0x2c   :  { %64 = vst [vmem:[#allocation1 + $0xc0] sm:$0xf] %v1715_v58  ;;  %v1712_v60 = vld [vmem:[%s2524_s0 + $0x6c] sm:$0xf]  ;;  %v1713_v61 = vld [vmem:[%s2524_s0 + $0x68] sm:$0xf]  ;;  %450 = vrot.lane.b32.xlu0 %v449_v59, %s1883_s23 }
  0x2d   :  { %v1710_v62 = vld [vmem:[%s2524_s0 + $0x74] sm:$0xf]  ;;  %49 = vst [vmem:[#allocation1 + $0xd8] sm:$0xf] %v1712_v60  ;;  %54 = vst [vmem:[#allocation1 + $0xd0] sm:$0xf] %v1713_v61 }
  0x2e   :  { %39 = vst [vmem:[#allocation1 + $0xe8] sm:$0xf] %v1710_v62  ;;  %v1711_v63 = vld [vmem:[%s2524_s0 + $0x70] sm:$0xf]  ;;  %v1708_v0 = vld [vmem:[%s2524_s0 + $0x7c] sm:$0xf] }
  0x2f   :  { %v1709_v1 = vld [vmem:[%s2524_s0 + $0x78] sm:$0xf]  ;;  %44 = vst [vmem:[#allocation1 + $0xe0] sm:$0xf] %v1711_v63  ;;  %29 = vst [vmem:[#allocation1 + $0xf8] sm:$0xf] %v1708_v0 }
  0x30   :  { %34 = vst [vmem:[#allocation1 + $0xf0] sm:$0xf] %v1709_v1  ;;  %v1706_v2 = vld [vmem:[%s2524_s0 + $0x84] sm:$0xf]  ;;  %v1707_v3 = vld [vmem:[%s2524_s0 + $0x80] sm:$0xf] }
  0x31   :  { %v1704_v4 = vld [vmem:[%s2524_s0 + $0x8c] sm:$0xf]  ;;  %19 = vst [vmem:[#allocation1 + $0x108] sm:$0xf] %v1706_v2  ;;  %24 = vst [vmem:[#allocation1 + $0x100] sm:$0xf] %v1707_v3 }
  0x32   :  { %9 = vst [vmem:[#allocation1 + $0x118] sm:$0xf] %v1704_v4  ;;  %v1705_v5 = vld [vmem:[%s2524_s0 + $0x88] sm:$0xf]  ;;  %v290_v6 = vld [vmem:[#allocation1 + $0xb0] sm:$0xf]  }
  0x33   :  { %14 = vst [vmem:[#allocation1 + $0x110] sm:$0xf] %v1705_v5  ;;  %v458_v7 = vld.sshfl [vmem:[#allocation1 + $0xb0] sm:$0xff pattern:$0xba983210]  }
  0x34   :  { %293 = vst.msk [vmem:[#allocation0 + $0x2c0] ss:$8 sm:$0xf] %vm182_vm0, %v290_v6   ;;  %459 = vrot.lane.b32.xlu1 %v458_v7, %s1883_s23  ;;  %v300_v8 = vld [vmem:[#allocation1 + $0xc0] sm:$0xf]  }
  0x35   :  { %v467_v9 = vld.sshfl [vmem:[#allocation1 + $0xc0] sm:$0xff pattern:$0xba983210]   ;;  %303 = vst.msk [vmem:[#allocation0 + $0x300] ss:$8 sm:$0xf] %vm182_vm0, %v300_v8  }
  0x36   :  { %v305_v10 = vld [vmem:[#allocation1 + $0xc8] sm:$0xf]   ;;  %v310_v11 = vld [vmem:[#allocation1 + $0xd0] sm:$0xf]   ;;  %v315_v12 = vld [vmem:[#allocation1 + $0xd8] sm:$0xf]   ;;  %468 = vrot.lane.b32.xlu0 %v467_v9, %s1883_s23 }
  0x37   :  { %308 = vst.msk [vmem:[#allocation0 + $0x320] ss:$8 sm:$0xf] %vm182_vm0, %v305_v10   ;;  %313 = vst.msk [vmem:[#allocation0 + $0x340] ss:$8 sm:$0xf] %vm182_vm0, %v310_v11  }
  0x38   :  { %v476_v13 = vld.sshfl [vmem:[#allocation1 + $0xd0] sm:$0xff pattern:$0xba983210]   ;;  %318 = vst.msk [vmem:[#allocation0 + $0x360] ss:$8 sm:$0xf] %vm182_vm0, %v315_v12  }
  0x39   :  { %v320_v14 = vld [vmem:[#allocation1 + $0xe0] sm:$0xf]   ;;  %v325_v16 = vld [vmem:[#allocation1 + $0xe8] sm:$0xf]   ;;  %477 = vrot.lane.b32.xlu1 %v476_v13, %s1883_s23  ;;  %v330_v17 = vld [vmem:[#allocation1 + $0xf0] sm:$0xf]  }
  0x3a   :  { %323 = vst.msk [vmem:[#allocation0 + $0x380] ss:$8 sm:$0xf] %vm182_vm0, %v320_v14   ;;  %v485_v15 = vld.sshfl [vmem:[#allocation1 + $0xe0] sm:$0xff pattern:$0xba983210]  }
  0x3b   :  { %328 = vst.msk [vmem:[#allocation0 + $0x3a0] ss:$8 sm:$0xf] %vm182_vm0, %v325_v16   ;;  %v494_v18 = vld.sshfl [vmem:[#allocation1 + $0xf0] sm:$0xff pattern:$0xba983210]   ;;  %486 = vrot.lane.b32.xlu0 %v485_v15, %s1883_s23 }
  0x3c   :  { %333 = vst.msk [vmem:[#allocation0 + $0x3c0] ss:$8 sm:$0xf] %vm182_vm0, %v330_v17   ;;  %v335_v19 = vld [vmem:[#allocation1 + $0xf8] sm:$0xf]  }
  0x3d   :  { %v340_v20 = vld [vmem:[#allocation1 + $0x100] sm:$0xf]   ;;  %v345_v21 = vld [vmem:[#allocation1 + $0x108] sm:$0xf]   ;;  %v350_v22 = vld [vmem:[#allocation1 + $0x110] sm:$0xf]   ;;  %495 = vrot.lane.b32.xlu1 %v494_v18, %s1883_s23 }
  0x3e   :  { %338 = vst.msk [vmem:[#allocation0 + $0x3e0] ss:$8 sm:$0xf] %vm182_vm0, %v335_v19   ;;  %343 = vst.msk [vmem:[#allocation0 + $0x400] ss:$8 sm:$0xf] %vm182_vm0, %v340_v20  }
  0x3f   :  { %348 = vst.msk [vmem:[#allocation0 + $0x420] ss:$8 sm:$0xf] %vm182_vm0, %v345_v21   ;;  %v503_v23 = vld.sshfl [vmem:[#allocation1 + $0x100] sm:$0xff pattern:$0xba983210]  }
  0x40   :  { %353 = vst.msk [vmem:[#allocation0 + $0x440] ss:$8 sm:$0xf] %vm182_vm0, %v350_v22   ;;  %v355_v24 = vld [vmem:[#allocation1 + $0x118] sm:$0xf]   ;;  %504 = vrot.lane.b32.xlu0 %v503_v23, %s1883_s23 }
  0x41   :  { %358 = vst.msk [vmem:[#allocation0 + $0x460] ss:$8 sm:$0xf] %vm182_vm0, %v355_v24   ;;  %v512_v25 = vld.sshfl [vmem:[#allocation1 + $0x110] sm:$0xff pattern:$0xba983210]  }
  0x42   :  { %513 = vrot.lane.b32.xlu1 %v512_v25, %s1883_s23 }
  0x83   :  { %v361_v26 = vpop.permute.xlu0 %360  }
  0x84   :  { %364 = vst.msk [vmem:[#allocation0 + $0x1] ss:$8 sm:$0xf] %vm182_vm0, %v361_v26   ;;  %366 = vst.msk [vmem:[#allocation0 + $0x1] ss:$8 sm:$0xf0] %vm182_vm0, %v361_v26  }
  0x87   :  { %v379_v27 = vpop.permute.xlu1 %378  }
  0x88   :  { %382 = vst.msk [vmem:[#allocation0 + $0x81] ss:$8 sm:$0xf] %vm182_vm0, %v379_v27   ;;  %384 = vst.msk [vmem:[#allocation0 + $0x81] ss:$8 sm:$0xf0] %vm182_vm0, %v379_v27  }
  0x89   :  { %v370_v28 = vpop.permute.xlu0 %369  }
  0x8a   :  { %373 = vst.msk [vmem:[#allocation0 + $0x41] ss:$8 sm:$0xf] %vm182_vm0, %v370_v28   ;;  %375 = vst.msk [vmem:[#allocation0 + $0x41] ss:$8 sm:$0xf0] %vm182_vm0, %v370_v28  }
  0x8b   :  { %v388_v29 = vpop.permute.xlu1 %387   ;;  %v524_v30 = vld [vmem:[#allocation0] sm:$0x3]  ;;  %v529_v31 = vld [vmem:[#allocation0 + $0x8] sm:$0x3]  ;;  %v535_v32 = vld [vmem:[#allocation0 + $0x10] sm:$0x3] }
  0x8c   :  { %391 = vst.msk [vmem:[#allocation0 + $0xc1] ss:$8 sm:$0xf] %vm182_vm0, %v388_v29   ;;  %393 = vst.msk [vmem:[#allocation0 + $0xc1] ss:$8 sm:$0xf0] %vm182_vm0, %v388_v29  }
  0x8d   :  { %527 = vst [vmem:[%s2525_s1] sm:$0x3] %v524_v30  ;;  %1739 = vst [vmem:[%s2525_s1 + $0x2] sm:$0x3] %v529_v31  ;;  %v542_v34 = vld [vmem:[#allocation0 + $0x18] sm:$0x3] }
  0x8e   :  { %v397_v33 = vpop.permute.xlu0 %396   ;;  %1740 = vst [vmem:[%s2525_s1 + $0x4] sm:$0x3] %v535_v32  ;;  %v549_v35 = vld [vmem:[#allocation0 + $0x20] sm:$0x3]  ;;  %v556_v36 = vld [vmem:[#allocation0 + $0x28] sm:$0x3] }
  0x8f   :  { %400 = vst.msk [vmem:[#allocation0 + $0x101] ss:$8 sm:$0xf] %vm182_vm0, %v397_v33   ;;  %402 = vst.msk [vmem:[#allocation0 + $0x101] ss:$8 sm:$0xf0] %vm182_vm0, %v397_v33  }
  0x90   :  { %1741 = vst [vmem:[%s2525_s1 + $0x6] sm:$0x3] %v542_v34  ;;  %1742 = vst [vmem:[%s2525_s1 + $0x8] sm:$0x3] %v549_v35  ;;  %v563_v37 = vld [vmem:[#allocation0 + $0x30] sm:$0x3]  ;;  %v406_v40 = vpop.permute.xlu1 %405  }
  0x91   :  { %1743 = vst [vmem:[%s2525_s1 + $0xa] sm:$0x3] %v556_v36  ;;  %v570_v38 = vld [vmem:[#allocation0 + $0x38] sm:$0x3]  ;;  %v633_v39 = vld [vmem:[#allocation0 + $0x80] sm:$0x3] }
  0x92   :  { %1744 = vst [vmem:[%s2525_s1 + $0xc] sm:$0x3] %v563_v37  ;;  %1745 = vst [vmem:[%s2525_s1 + $0xe] sm:$0x3] %v570_v38  ;;  %v640_v41 = vld [vmem:[#allocation0 + $0x88] sm:$0x3] }
  0x93   :  { %1754 = vst [vmem:[%s2525_s1 + $0x20] sm:$0x3] %v633_v39  ;;  %v647_v42 = vld [vmem:[#allocation0 + $0x90] sm:$0x3]  ;;  %v654_v43 = vld [vmem:[#allocation0 + $0x98] sm:$0x3]  ;;  %v415_v47 = vpop.permute.xlu0 %414  }
  0x94   :  { %409 = vst.msk [vmem:[#allocation0 + $0x141] ss:$8 sm:$0xf] %vm182_vm0, %v406_v40   ;;  %411 = vst.msk [vmem:[#allocation0 + $0x141] ss:$8 sm:$0xf0] %vm182_vm0, %v406_v40  }
  0x95   :  { %1755 = vst [vmem:[%s2525_s1 + $0x22] sm:$0x3] %v640_v41  ;;  %1756 = vst [vmem:[%s2525_s1 + $0x24] sm:$0x3] %v647_v42  ;;  %v661_v44 = vld [vmem:[#allocation0 + $0xa0] sm:$0x3]  ;;  %v424_v54 = vpop.permute.xlu1 %423  }
  0x96   :  { %1757 = vst [vmem:[%s2525_s1 + $0x26] sm:$0x3] %v654_v43  ;;  %v668_v45 = vld [vmem:[#allocation0 + $0xa8] sm:$0x3]  ;;  %v675_v46 = vld [vmem:[#allocation0 + $0xb0] sm:$0x3] }
  0x97   :  { %1758 = vst [vmem:[%s2525_s1 + $0x28] sm:$0x3] %v661_v44  ;;  %1759 = vst [vmem:[%s2525_s1 + $0x2a] sm:$0x3] %v668_v45  ;;  %v682_v48 = vld [vmem:[#allocation0 + $0xb8] sm:$0x3]  ;;  %v433_v61 = vpop.permute.xlu0 %432  }
  0x98   :  { %1760 = vst [vmem:[%s2525_s1 + $0x2c] sm:$0x3] %v675_v46  ;;  %v577_v49 = vld [vmem:[#allocation0 + $0x40] sm:$0x3]  ;;  %v584_v50 = vld [vmem:[#allocation0 + $0x48] sm:$0x3] }
  0x99   :  { %418 = vst.msk [vmem:[#allocation0 + $0x181] ss:$8 sm:$0xf] %vm182_vm0, %v415_v47   ;;  %420 = vst.msk [vmem:[#allocation0 + $0x181] ss:$8 sm:$0xf0] %vm182_vm0, %v415_v47  }
  0x9a   :  { %1761 = vst [vmem:[%s2525_s1 + $0x2e] sm:$0x3] %v682_v48  ;;  %1746 = vst [vmem:[%s2525_s1 + $0x10] sm:$0x3] %v577_v49  ;;  %v591_v51 = vld [vmem:[#allocation0 + $0x50] sm:$0x3]  ;;  %v442_v4 = vpop.permute.xlu1 %441  }
  0x9b   :  { %1747 = vst [vmem:[%s2525_s1 + $0x12] sm:$0x3] %v584_v50  ;;  %v598_v52 = vld [vmem:[#allocation0 + $0x58] sm:$0x3]  ;;  %v605_v53 = vld [vmem:[#allocation0 + $0x60] sm:$0x3] }
  0x9c   :  { %1748 = vst [vmem:[%s2525_s1 + $0x14] sm:$0x3] %v591_v51  ;;  %1749 = vst [vmem:[%s2525_s1 + $0x16] sm:$0x3] %v598_v52  ;;  %v612_v55 = vld [vmem:[#allocation0 + $0x68] sm:$0x3] }
  0x9d   :  { %1750 = vst [vmem:[%s2525_s1 + $0x18] sm:$0x3] %v605_v53  ;;  %v619_v56 = vld [vmem:[#allocation0 + $0x70] sm:$0x3]  ;;  %v626_v57 = vld [vmem:[#allocation0 + $0x78] sm:$0x3] }
  0x9e   :  { %427 = vst.msk [vmem:[#allocation0 + $0x1c1] ss:$8 sm:$0xf] %vm182_vm0, %v424_v54   ;;  %429 = vst.msk [vmem:[#allocation0 + $0x1c1] ss:$8 sm:$0xf0] %vm182_vm0, %v424_v54   ;;  %v451_v11 = vpop.permute.xlu0 %450  }
  0x9f   :  { %1751 = vst [vmem:[%s2525_s1 + $0x1a] sm:$0x3] %v612_v55  ;;  %1752 = vst [vmem:[%s2525_s1 + $0x1c] sm:$0x3] %v619_v56  ;;  %v689_v58 = vld [vmem:[#allocation0 + $0xc0] sm:$0x3] }
  0xa0   :  { %1753 = vst [vmem:[%s2525_s1 + $0x1e] sm:$0x3] %v626_v57  ;;  %v696_v59 = vld [vmem:[#allocation0 + $0xc8] sm:$0x3]  ;;  %v703_v60 = vld [vmem:[#allocation0 + $0xd0] sm:$0x3] }
  0xa1   :  { %1762 = vst [vmem:[%s2525_s1 + $0x30] sm:$0x3] %v689_v58  ;;  %1763 = vst [vmem:[%s2525_s1 + $0x32] sm:$0x3] %v696_v59  ;;  %v710_v62 = vld [vmem:[#allocation0 + $0xd8] sm:$0x3] }
  0xa2   :  { %1764 = vst [vmem:[%s2525_s1 + $0x34] sm:$0x3] %v703_v60  ;;  %v717_v63 = vld [vmem:[#allocation0 + $0xe0] sm:$0x3]  ;;  %v724_v0 = vld [vmem:[#allocation0 + $0xe8] sm:$0x3] }
  0xa3   :  { %436 = vst.msk [vmem:[#allocation0 + $0x201] ss:$8 sm:$0xf] %vm182_vm0, %v433_v61   ;;  %438 = vst.msk [vmem:[#allocation0 + $0x201] ss:$8 sm:$0xf0] %vm182_vm0, %v433_v61  }
  0xa4   :  { %1765 = vst [vmem:[%s2525_s1 + $0x36] sm:$0x3] %v710_v62  ;;  %1766 = vst [vmem:[%s2525_s1 + $0x38] sm:$0x3] %v717_v63  ;;  %v731_v1 = vld [vmem:[#allocation0 + $0xf0] sm:$0x3] }
  0xa5   :  { %1767 = vst [vmem:[%s2525_s1 + $0x3a] sm:$0x3] %v724_v0  ;;  %v738_v2 = vld [vmem:[#allocation0 + $0xf8] sm:$0x3]  ;;  %v745_v3 = vld [vmem:[#allocation0 + $0x100] sm:$0x3] }
  0xa6   :  { %1768 = vst [vmem:[%s2525_s1 + $0x3c] sm:$0x3] %v731_v1  ;;  %1769 = vst [vmem:[%s2525_s1 + $0x3e] sm:$0x3] %v738_v2  ;;  %v752_v5 = vld [vmem:[#allocation0 + $0x108] sm:$0x3]  ;;  %v460_v18 = vpop.permute.xlu1 %459  }
  0xa7   :  { %1770 = vst [vmem:[%s2525_s1 + $0x40] sm:$0x3] %v745_v3  ;;  %v759_v6 = vld [vmem:[#allocation0 + $0x110] sm:$0x3]  ;;  %v766_v7 = vld [vmem:[#allocation0 + $0x118] sm:$0x3] }
  0xa8   :  { %445 = vst.msk [vmem:[#allocation0 + $0x241] ss:$8 sm:$0xf] %vm182_vm0, %v442_v4   ;;  %447 = vst.msk [vmem:[#allocation0 + $0x241] ss:$8 sm:$0xf0] %vm182_vm0, %v442_v4   ;;  %v469_v25 = vpop.permute.xlu0 %468  }
  0xa9   :  { %1771 = vst [vmem:[%s2525_s1 + $0x42] sm:$0x3] %v752_v5  ;;  %1772 = vst [vmem:[%s2525_s1 + $0x44] sm:$0x3] %v759_v6  ;;  %v773_v8 = vld [vmem:[#allocation0 + $0x120] sm:$0x3] }
  0xaa   :  { %1773 = vst [vmem:[%s2525_s1 + $0x46] sm:$0x3] %v766_v7  ;;  %v780_v9 = vld [vmem:[#allocation0 + $0x128] sm:$0x3]  ;;  %v787_v10 = vld [vmem:[#allocation0 + $0x130] sm:$0x3] }
  0xab   :  { %1774 = vst [vmem:[%s2525_s1 + $0x48] sm:$0x3] %v773_v8  ;;  %1775 = vst [vmem:[%s2525_s1 + $0x4a] sm:$0x3] %v780_v9  ;;  %v794_v12 = vld [vmem:[#allocation0 + $0x138] sm:$0x3]  ;;  %v478_v32 = vpop.permute.xlu1 %477  }
  0xac   :  { %1776 = vst [vmem:[%s2525_s1 + $0x4c] sm:$0x3] %v787_v10  ;;  %v801_v13 = vld [vmem:[#allocation0 + $0x140] sm:$0x3]  ;;  %v808_v14 = vld [vmem:[#allocation0 + $0x148] sm:$0x3] }
  0xad   :  { %454 = vst.msk [vmem:[#allocation0 + $0x281] ss:$8 sm:$0xf] %vm182_vm0, %v451_v11   ;;  %456 = vst.msk [vmem:[#allocation0 + $0x281] ss:$8 sm:$0xf0] %vm182_vm0, %v451_v11   ;;  %v487_v39 = vpop.permute.xlu0 %486  }
  0xae   :  { %1777 = vst [vmem:[%s2525_s1 + $0x4e] sm:$0x3] %v794_v12  ;;  %1778 = vst [vmem:[%s2525_s1 + $0x50] sm:$0x3] %v801_v13  ;;  %v815_v15 = vld [vmem:[#allocation0 + $0x150] sm:$0x3] }
  0xaf   :  { %1779 = vst [vmem:[%s2525_s1 + $0x52] sm:$0x3] %v808_v14  ;;  %v822_v16 = vld [vmem:[#allocation0 + $0x158] sm:$0x3]  ;;  %v829_v17 = vld [vmem:[#allocation0 + $0x160] sm:$0x3]  ;;  %v496_v46 = vpop.permute.xlu1 %495  }
  0xb0   :  { %1780 = vst [vmem:[%s2525_s1 + $0x54] sm:$0x3] %v815_v15  ;;  %1781 = vst [vmem:[%s2525_s1 + $0x56] sm:$0x3] %v822_v16  ;;  %v836_v19 = vld [vmem:[#allocation0 + $0x168] sm:$0x3] }
  0xb1   :  { %1782 = vst [vmem:[%s2525_s1 + $0x58] sm:$0x3] %v829_v17  ;;  %v843_v20 = vld [vmem:[#allocation0 + $0x170] sm:$0x3]  ;;  %v850_v21 = vld [vmem:[#allocation0 + $0x178] sm:$0x3] }
  0xb2   :  { %463 = vst.msk [vmem:[#allocation0 + $0x2c1] ss:$8 sm:$0xf] %vm182_vm0, %v460_v18   ;;  %465 = vst.msk [vmem:[#allocation0 + $0x2c1] ss:$8 sm:$0xf0] %vm182_vm0, %v460_v18   ;;  %v505_v53 = vpop.permute.xlu0 %504  }
  0xb3   :  { %1783 = vst [vmem:[%s2525_s1 + $0x5a] sm:$0x3] %v836_v19  ;;  %1784 = vst [vmem:[%s2525_s1 + $0x5c] sm:$0x3] %v843_v20  ;;  %v857_v22 = vld [vmem:[#allocation0 + $0x180] sm:$0x3] }
  0xb4   :  { %1785 = vst [vmem:[%s2525_s1 + $0x5e] sm:$0x3] %v850_v21  ;;  %v864_v23 = vld [vmem:[#allocation0 + $0x188] sm:$0x3]  ;;  %v871_v24 = vld [vmem:[#allocation0 + $0x190] sm:$0x3]  ;;  %v514_v60 = vpop.permute.xlu1 %513  }
  0xb5   :  { %1786 = vst [vmem:[%s2525_s1 + $0x60] sm:$0x3] %v857_v22  ;;  %1787 = vst [vmem:[%s2525_s1 + $0x62] sm:$0x3] %v864_v23  ;;  %v878_v26 = vld [vmem:[#allocation0 + $0x198] sm:$0x3] }
  0xb6   :  { %1788 = vst [vmem:[%s2525_s1 + $0x64] sm:$0x3] %v871_v24  ;;  %v885_v27 = vld [vmem:[#allocation0 + $0x1a0] sm:$0x3]  ;;  %v892_v28 = vld [vmem:[#allocation0 + $0x1a8] sm:$0x3] }
  0xb7   :  { %472 = vst.msk [vmem:[#allocation0 + $0x301] ss:$8 sm:$0xf] %vm182_vm0, %v469_v25   ;;  %474 = vst.msk [vmem:[#allocation0 + $0x301] ss:$8 sm:$0xf0] %vm182_vm0, %v469_v25  }
  0xb8   :  { %1789 = vst [vmem:[%s2525_s1 + $0x66] sm:$0x3] %v878_v26  ;;  %1790 = vst [vmem:[%s2525_s1 + $0x68] sm:$0x3] %v885_v27  ;;  %v899_v29 = vld [vmem:[#allocation0 + $0x1b0] sm:$0x3] }
  0xb9   :  { %1791 = vst [vmem:[%s2525_s1 + $0x6a] sm:$0x3] %v892_v28  ;;  %v906_v30 = vld [vmem:[#allocation0 + $0x1b8] sm:$0x3]  ;;  %v913_v31 = vld [vmem:[#allocation0 + $0x1c0] sm:$0x3] }
  0xba   :  { %1792 = vst [vmem:[%s2525_s1 + $0x6c] sm:$0x3] %v899_v29  ;;  %1793 = vst [vmem:[%s2525_s1 + $0x6e] sm:$0x3] %v906_v30  ;;  %v920_v33 = vld [vmem:[#allocation0 + $0x1c8] sm:$0x3] }
  0xbb   :  { %1794 = vst [vmem:[%s2525_s1 + $0x70] sm:$0x3] %v913_v31  ;;  %v927_v34 = vld [vmem:[#allocation0 + $0x1d0] sm:$0x3]  ;;  %v934_v35 = vld [vmem:[#allocation0 + $0x1d8] sm:$0x3] }
  0xbc   :  { %481 = vst.msk [vmem:[#allocation0 + $0x341] ss:$8 sm:$0xf] %vm182_vm0, %v478_v32   ;;  %483 = vst.msk [vmem:[#allocation0 + $0x341] ss:$8 sm:$0xf0] %vm182_vm0, %v478_v32  }
  0xbd   :  { %1795 = vst [vmem:[%s2525_s1 + $0x72] sm:$0x3] %v920_v33  ;;  %1796 = vst [vmem:[%s2525_s1 + $0x74] sm:$0x3] %v927_v34  ;;  %v941_v36 = vld [vmem:[#allocation0 + $0x1e0] sm:$0x3] }
  0xbe   :  { %1797 = vst [vmem:[%s2525_s1 + $0x76] sm:$0x3] %v934_v35  ;;  %v948_v37 = vld [vmem:[#allocation0 + $0x1e8] sm:$0x3]  ;;  %v955_v38 = vld [vmem:[#allocation0 + $0x1f0] sm:$0x3] }
  0xbf   :  { %1798 = vst [vmem:[%s2525_s1 + $0x78] sm:$0x3] %v941_v36  ;;  %1799 = vst [vmem:[%s2525_s1 + $0x7a] sm:$0x3] %v948_v37  ;;  %v962_v40 = vld [vmem:[#allocation0 + $0x1f8] sm:$0x3] }
  0xc0   :  { %1800 = vst [vmem:[%s2525_s1 + $0x7c] sm:$0x3] %v955_v38  ;;  %v969_v41 = vld [vmem:[#allocation0 + $0x200] sm:$0x3]  ;;  %v976_v42 = vld [vmem:[#allocation0 + $0x208] sm:$0x3] }
  0xc1   :  { %490 = vst.msk [vmem:[#allocation0 + $0x381] ss:$8 sm:$0xf] %vm182_vm0, %v487_v39   ;;  %492 = vst.msk [vmem:[#allocation0 + $0x381] ss:$8 sm:$0xf0] %vm182_vm0, %v487_v39  }
  0xc2   :  { %1801 = vst [vmem:[%s2525_s1 + $0x7e] sm:$0x3] %v962_v40  ;;  %1802 = vst [vmem:[%s2525_s1 + $0x80] sm:$0x3] %v969_v41  ;;  %v983_v43 = vld [vmem:[#allocation0 + $0x210] sm:$0x3] }
  0xc3   :  { %1803 = vst [vmem:[%s2525_s1 + $0x82] sm:$0x3] %v976_v42  ;;  %v990_v44 = vld [vmem:[#allocation0 + $0x218] sm:$0x3]  ;;  %v997_v45 = vld [vmem:[#allocation0 + $0x220] sm:$0x3] }
  0xc4   :  { %1804 = vst [vmem:[%s2525_s1 + $0x84] sm:$0x3] %v983_v43  ;;  %1805 = vst [vmem:[%s2525_s1 + $0x86] sm:$0x3] %v990_v44  ;;  %v1004_v47 = vld [vmem:[#allocation0 + $0x228] sm:$0x3] }
  0xc5   :  { %1806 = vst [vmem:[%s2525_s1 + $0x88] sm:$0x3] %v997_v45  ;;  %v1011_v48 = vld [vmem:[#allocation0 + $0x230] sm:$0x3]  ;;  %v1018_v49 = vld [vmem:[#allocation0 + $0x238] sm:$0x3] }
  0xc6   :  { %499 = vst.msk [vmem:[#allocation0 + $0x3c1] ss:$8 sm:$0xf] %vm182_vm0, %v496_v46   ;;  %501 = vst.msk [vmem:[#allocation0 + $0x3c1] ss:$8 sm:$0xf0] %vm182_vm0, %v496_v46  }
  0xc7   :  { %1807 = vst [vmem:[%s2525_s1 + $0x8a] sm:$0x3] %v1004_v47  ;;  %1808 = vst [vmem:[%s2525_s1 + $0x8c] sm:$0x3] %v1011_v48  ;;  %v1025_v50 = vld [vmem:[#allocation0 + $0x240] sm:$0x3] }
  0xc8   :  { %1809 = vst [vmem:[%s2525_s1 + $0x8e] sm:$0x3] %v1018_v49  ;;  %v1032_v51 = vld [vmem:[#allocation0 + $0x248] sm:$0x3]  ;;  %v1039_v52 = vld [vmem:[#allocation0 + $0x250] sm:$0x3] }
  0xc9   :  { %1810 = vst [vmem:[%s2525_s1 + $0x90] sm:$0x3] %v1025_v50  ;;  %1811 = vst [vmem:[%s2525_s1 + $0x92] sm:$0x3] %v1032_v51  ;;  %v1046_v54 = vld [vmem:[#allocation0 + $0x258] sm:$0x3] }
  0xca   :  { %1812 = vst [vmem:[%s2525_s1 + $0x94] sm:$0x3] %v1039_v52  ;;  %v1053_v55 = vld [vmem:[#allocation0 + $0x260] sm:$0x3]  ;;  %v1060_v56 = vld [vmem:[#allocation0 + $0x268] sm:$0x3] }
  0xcb   :  { %508 = vst.msk [vmem:[#allocation0 + $0x401] ss:$8 sm:$0xf] %vm182_vm0, %v505_v53   ;;  %510 = vst.msk [vmem:[#allocation0 + $0x401] ss:$8 sm:$0xf0] %vm182_vm0, %v505_v53  }
  0xcc   :  { %1813 = vst [vmem:[%s2525_s1 + $0x96] sm:$0x3] %v1046_v54  ;;  %1814 = vst [vmem:[%s2525_s1 + $0x98] sm:$0x3] %v1053_v55  ;;  %v1067_v57 = vld [vmem:[#allocation0 + $0x270] sm:$0x3] }
  0xcd   :  { %1815 = vst [vmem:[%s2525_s1 + $0x9a] sm:$0x3] %v1060_v56  ;;  %v1074_v58 = vld [vmem:[#allocation0 + $0x278] sm:$0x3]  ;;  %v1081_v59 = vld [vmem:[#allocation0 + $0x280] sm:$0x3] }
  0xce   :  { %1816 = vst [vmem:[%s2525_s1 + $0x9c] sm:$0x3] %v1067_v57  ;;  %1817 = vst [vmem:[%s2525_s1 + $0x9e] sm:$0x3] %v1074_v58  ;;  %v1088_v61 = vld [vmem:[#allocation0 + $0x288] sm:$0x3] }
  0xcf   :  { %1818 = vst [vmem:[%s2525_s1 + $0xa0] sm:$0x3] %v1081_v59  ;;  %v1095_v62 = vld [vmem:[#allocation0 + $0x290] sm:$0x3]  ;;  %v1102_v63 = vld [vmem:[#allocation0 + $0x298] sm:$0x3] }
  0xd0   :  { %517 = vst.msk [vmem:[#allocation0 + $0x441] ss:$8 sm:$0xf] %vm182_vm0, %v514_v60   ;;  %519 = vst.msk [vmem:[#allocation0 + $0x441] ss:$8 sm:$0xf0] %vm182_vm0, %v514_v60  }
  0xd1   :  { %1819 = vst [vmem:[%s2525_s1 + $0xa2] sm:$0x3] %v1088_v61  ;;  %1820 = vst [vmem:[%s2525_s1 + $0xa4] sm:$0x3] %v1095_v62  ;;  %v1109_v0 = vld [vmem:[#allocation0 + $0x2a0] sm:$0x3] }
  0xd2   :  { %1821 = vst [vmem:[%s2525_s1 + $0xa6] sm:$0x3] %v1102_v63  ;;  %v1116_v1 = vld [vmem:[#allocation0 + $0x2a8] sm:$0x3]  ;;  %v1123_v2 = vld [vmem:[#allocation0 + $0x2b0] sm:$0x3] }
  0xd3   :  { %1822 = vst [vmem:[%s2525_s1 + $0xa8] sm:$0x3] %v1109_v0  ;;  %1823 = vst [vmem:[%s2525_s1 + $0xaa] sm:$0x3] %v1116_v1  ;;  %v1130_v3 = vld [vmem:[#allocation0 + $0x2b8] sm:$0x3] }
  0xd4   :  { %1824 = vst [vmem:[%s2525_s1 + $0xac] sm:$0x3] %v1123_v2  ;;  %v1137_v4 = vld [vmem:[#allocation0 + $0x2c0] sm:$0x3]  ;;  %v1144_v5 = vld [vmem:[#allocation0 + $0x2c8] sm:$0x3] }
  0xd5   :  { %1825 = vst [vmem:[%s2525_s1 + $0xae] sm:$0x3] %v1130_v3  ;;  %1826 = vst [vmem:[%s2525_s1 + $0xb0] sm:$0x3] %v1137_v4  ;;  %v1151_v6 = vld [vmem:[#allocation0 + $0x2d0] sm:$0x3] }
  0xd6   :  { %1827 = vst [vmem:[%s2525_s1 + $0xb2] sm:$0x3] %v1144_v5  ;;  %v1158_v7 = vld [vmem:[#allocation0 + $0x2d8] sm:$0x3]  ;;  %v1165_v8 = vld [vmem:[#allocation0 + $0x2e0] sm:$0x3] }
  0xd7   :  { %1828 = vst [vmem:[%s2525_s1 + $0xb4] sm:$0x3] %v1151_v6  ;;  %1829 = vst [vmem:[%s2525_s1 + $0xb6] sm:$0x3] %v1158_v7  ;;  %v1172_v9 = vld [vmem:[#allocation0 + $0x2e8] sm:$0x3] }
  0xd8   :  { %1830 = vst [vmem:[%s2525_s1 + $0xb8] sm:$0x3] %v1165_v8  ;;  %v1179_v10 = vld [vmem:[#allocation0 + $0x2f0] sm:$0x3]  ;;  %v1186_v11 = vld [vmem:[#allocation0 + $0x2f8] sm:$0x3] }
  0xd9   :  { %1831 = vst [vmem:[%s2525_s1 + $0xba] sm:$0x3] %v1172_v9  ;;  %1832 = vst [vmem:[%s2525_s1 + $0xbc] sm:$0x3] %v1179_v10  ;;  %v1193_v12 = vld [vmem:[#allocation0 + $0x300] sm:$0x3] }
  0xda   :  { %1833 = vst [vmem:[%s2525_s1 + $0xbe] sm:$0x3] %v1186_v11  ;;  %v1200_v13 = vld [vmem:[#allocation0 + $0x308] sm:$0x3]  ;;  %v1207_v14 = vld [vmem:[#allocation0 + $0x310] sm:$0x3] }
  0xdb   :  { %1834 = vst [vmem:[%s2525_s1 + $0xc0] sm:$0x3] %v1193_v12  ;;  %1835 = vst [vmem:[%s2525_s1 + $0xc2] sm:$0x3] %v1200_v13  ;;  %v1214_v15 = vld [vmem:[#allocation0 + $0x318] sm:$0x3] }
  0xdc   :  { %1836 = vst [vmem:[%s2525_s1 + $0xc4] sm:$0x3] %v1207_v14  ;;  %v1221_v16 = vld [vmem:[#allocation0 + $0x320] sm:$0x3]  ;;  %v1228_v17 = vld [vmem:[#allocation0 + $0x328] sm:$0x3] }
  0xdd   :  { %1837 = vst [vmem:[%s2525_s1 + $0xc6] sm:$0x3] %v1214_v15  ;;  %1838 = vst [vmem:[%s2525_s1 + $0xc8] sm:$0x3] %v1221_v16  ;;  %v1235_v18 = vld [vmem:[#allocation0 + $0x330] sm:$0x3] }
  0xde   :  { %1839 = vst [vmem:[%s2525_s1 + $0xca] sm:$0x3] %v1228_v17  ;;  %v1242_v19 = vld [vmem:[#allocation0 + $0x338] sm:$0x3]  ;;  %v1249_v20 = vld [vmem:[#allocation0 + $0x340] sm:$0x3] }
  0xdf   :  { %1840 = vst [vmem:[%s2525_s1 + $0xcc] sm:$0x3] %v1235_v18  ;;  %1841 = vst [vmem:[%s2525_s1 + $0xce] sm:$0x3] %v1242_v19  ;;  %v1256_v21 = vld [vmem:[#allocation0 + $0x348] sm:$0x3] }
  0xe0   :  { %1842 = vst [vmem:[%s2525_s1 + $0xd0] sm:$0x3] %v1249_v20  ;;  %v1263_v22 = vld [vmem:[#allocation0 + $0x350] sm:$0x3]  ;;  %v1270_v23 = vld [vmem:[#allocation0 + $0x358] sm:$0x3] }
  0xe1   :  { %1843 = vst [vmem:[%s2525_s1 + $0xd2] sm:$0x3] %v1256_v21  ;;  %1844 = vst [vmem:[%s2525_s1 + $0xd4] sm:$0x3] %v1263_v22  ;;  %v1277_v24 = vld [vmem:[#allocation0 + $0x360] sm:$0x3] }
  0xe2   :  { %1845 = vst [vmem:[%s2525_s1 + $0xd6] sm:$0x3] %v1270_v23  ;;  %v1284_v25 = vld [vmem:[#allocation0 + $0x368] sm:$0x3]  ;;  %v1291_v26 = vld [vmem:[#allocation0 + $0x370] sm:$0x3] }
  0xe3   :  { %1846 = vst [vmem:[%s2525_s1 + $0xd8] sm:$0x3] %v1277_v24  ;;  %1847 = vst [vmem:[%s2525_s1 + $0xda] sm:$0x3] %v1284_v25  ;;  %v1298_v27 = vld [vmem:[#allocation0 + $0x378] sm:$0x3] }
  0xe4   :  { %1848 = vst [vmem:[%s2525_s1 + $0xdc] sm:$0x3] %v1291_v26  ;;  %v1305_v28 = vld [vmem:[#allocation0 + $0x380] sm:$0x3]  ;;  %v1312_v29 = vld [vmem:[#allocation0 + $0x388] sm:$0x3] }
  0xe5   :  { %1849 = vst [vmem:[%s2525_s1 + $0xde] sm:$0x3] %v1298_v27  ;;  %1850 = vst [vmem:[%s2525_s1 + $0xe0] sm:$0x3] %v1305_v28  ;;  %v1319_v30 = vld [vmem:[#allocation0 + $0x390] sm:$0x3] }
  0xe6   :  { %1851 = vst [vmem:[%s2525_s1 + $0xe2] sm:$0x3] %v1312_v29  ;;  %v1326_v31 = vld [vmem:[#allocation0 + $0x398] sm:$0x3]  ;;  %v1333_v32 = vld [vmem:[#allocation0 + $0x3a0] sm:$0x3] }
  0xe7   :  { %1852 = vst [vmem:[%s2525_s1 + $0xe4] sm:$0x3] %v1319_v30  ;;  %1853 = vst [vmem:[%s2525_s1 + $0xe6] sm:$0x3] %v1326_v31  ;;  %v1340_v33 = vld [vmem:[#allocation0 + $0x3a8] sm:$0x3] }
  0xe8   :  { %1854 = vst [vmem:[%s2525_s1 + $0xe8] sm:$0x3] %v1333_v32  ;;  %v1347_v34 = vld [vmem:[#allocation0 + $0x3b0] sm:$0x3]  ;;  %v1354_v35 = vld [vmem:[#allocation0 + $0x3b8] sm:$0x3] }
  0xe9   :  { %1855 = vst [vmem:[%s2525_s1 + $0xea] sm:$0x3] %v1340_v33  ;;  %1856 = vst [vmem:[%s2525_s1 + $0xec] sm:$0x3] %v1347_v34  ;;  %v1361_v36 = vld [vmem:[#allocation0 + $0x3c0] sm:$0x3] }
  0xea   :  { %1857 = vst [vmem:[%s2525_s1 + $0xee] sm:$0x3] %v1354_v35  ;;  %v1368_v37 = vld [vmem:[#allocation0 + $0x3c8] sm:$0x3]  ;;  %v1375_v38 = vld [vmem:[#allocation0 + $0x3d0] sm:$0x3] }
  0xeb   :  { %1858 = vst [vmem:[%s2525_s1 + $0xf0] sm:$0x3] %v1361_v36  ;;  %1859 = vst [vmem:[%s2525_s1 + $0xf2] sm:$0x3] %v1368_v37  ;;  %v1382_v39 = vld [vmem:[#allocation0 + $0x3d8] sm:$0x3] }
  0xec   :  { %1860 = vst [vmem:[%s2525_s1 + $0xf4] sm:$0x3] %v1375_v38  ;;  %v1389_v40 = vld [vmem:[#allocation0 + $0x3e0] sm:$0x3]  ;;  %v1396_v41 = vld [vmem:[#allocation0 + $0x3e8] sm:$0x3] }
  0xed   :  { %1861 = vst [vmem:[%s2525_s1 + $0xf6] sm:$0x3] %v1382_v39  ;;  %1862 = vst [vmem:[%s2525_s1 + $0xf8] sm:$0x3] %v1389_v40  ;;  %v1403_v42 = vld [vmem:[#allocation0 + $0x3f0] sm:$0x3] }
  0xee   :  { %1863 = vst [vmem:[%s2525_s1 + $0xfa] sm:$0x3] %v1396_v41  ;;  %v1410_v43 = vld [vmem:[#allocation0 + $0x3f8] sm:$0x3]  ;;  %v1417_v44 = vld [vmem:[#allocation0 + $0x400] sm:$0x3] }
  0xef   :  { %1864 = vst [vmem:[%s2525_s1 + $0xfc] sm:$0x3] %v1403_v42  ;;  %1865 = vst [vmem:[%s2525_s1 + $0xfe] sm:$0x3] %v1410_v43  ;;  %v1424_v45 = vld [vmem:[#allocation0 + $0x408] sm:$0x3] }
  0xf0   :  { %1866 = vst [vmem:[%s2525_s1 + $0x100] sm:$0x3] %v1417_v44  ;;  %v1431_v46 = vld [vmem:[#allocation0 + $0x410] sm:$0x3]  ;;  %v1438_v47 = vld [vmem:[#allocation0 + $0x418] sm:$0x3] }
  0xf1   :  { %1867 = vst [vmem:[%s2525_s1 + $0x102] sm:$0x3] %v1424_v45  ;;  %1868 = vst [vmem:[%s2525_s1 + $0x104] sm:$0x3] %v1431_v46  ;;  %v1445_v48 = vld [vmem:[#allocation0 + $0x420] sm:$0x3] }
  0xf2   :  { %1869 = vst [vmem:[%s2525_s1 + $0x106] sm:$0x3] %v1438_v47  ;;  %v1452_v49 = vld [vmem:[#allocation0 + $0x428] sm:$0x3]  ;;  %v1459_v50 = vld [vmem:[#allocation0 + $0x430] sm:$0x3] }
  0xf3   :  { %1870 = vst [vmem:[%s2525_s1 + $0x108] sm:$0x3] %v1445_v48  ;;  %1871 = vst [vmem:[%s2525_s1 + $0x10a] sm:$0x3] %v1452_v49  ;;  %v1466_v51 = vld [vmem:[#allocation0 + $0x438] sm:$0x3] }
  0xf4   :  { %1872 = vst [vmem:[%s2525_s1 + $0x10c] sm:$0x3] %v1459_v50  ;;  %v1473_v52 = vld [vmem:[#allocation0 + $0x440] sm:$0x3]  ;;  %v1480_v53 = vld [vmem:[#allocation0 + $0x448] sm:$0x3] }
  0xf5   :  { %1873 = vst [vmem:[%s2525_s1 + $0x10e] sm:$0x3] %v1466_v51  ;;  %1874 = vst [vmem:[%s2525_s1 + $0x110] sm:$0x3] %v1473_v52  ;;  %v1487_v54 = vld [vmem:[#allocation0 + $0x450] sm:$0x3] }
  0xf6   :  { %1875 = vst [vmem:[%s2525_s1 + $0x112] sm:$0x3] %v1480_v53  ;;  %v1494_v55 = vld [vmem:[#allocation0 + $0x458] sm:$0x3]  ;;  %v1501_v56 = vld [vmem:[#allocation0 + $0x460] sm:$0x3] }
  0xf7   :  { %1876 = vst [vmem:[%s2525_s1 + $0x114] sm:$0x3] %v1487_v54  ;;  %1877 = vst [vmem:[%s2525_s1 + $0x116] sm:$0x3] %v1494_v55  ;;  %v1508_v57 = vld [vmem:[#allocation0 + $0x468] sm:$0x3] }
  0xf8   :  { %1878 = vst [vmem:[%s2525_s1 + $0x118] sm:$0x3] %v1501_v56  ;;  %v1515_v58 = vld [vmem:[#allocation0 + $0x470] sm:$0x3]  ;;  %v1522_v59 = vld [vmem:[#allocation0 + $0x478] sm:$0x3] }
  0xf9   :  { %1879 = vst [vmem:[%s2525_s1 + $0x11a] sm:$0x3] %v1508_v57  ;;  %1880 = vst [vmem:[%s2525_s1 + $0x11c] sm:$0x3] %v1515_v58 }
  0xfa   :  { %1881 = vst [vmem:[%s2525_s1 + $0x11e] sm:$0x3] %v1522_v59 }

// kernel: across_attention_multi_forward.1
= control target key start
LH: loop header
LB: loop body
LE: loop exit
PB: predicated region body
PF: predicated region fallthrough
CT: control target
= control target key end

     0   :  { %13 = vsyncpa [#allocation3], 0  ;;  %s3111_s0 = inlined_call_operand.vmem [shape: f32[4,8,128], index: 0, kind: input, shape index: {}]   ;;  %s3112_s1 = inlined_call_operand.vmem [shape: f32[4,128,128], index: 1, kind: input, shape index: {}]   ;;  %s3113_s2 = inlined_call_operand.vmem [shape: f32[3,4], index: 2, kind: input, shape index: {}]   ;;  %s3114_s3 = inlined_call_operand.vmem [shape: f32[3], index: 3, kind: input, shape index: {}]   ;;  %s3115_s4 = inlined_call_operand.vmem [shape: f32[3,4], index: 4, kind: input, shape index: {}]   ;;  %s3116_s5 = inlined_call_operand.vmem [shape: f32[3], index: 5, kind: input, shape index: {}]   ;;  %s3117_s6 = inlined_call_operand.vmem [shape: f32[3,128,128], index: 6, kind: input, shape index: {}]   ;;  %s3118_s7 = inlined_call_operand.vmem [shape: f32[3,8,128], index: 7, kind: input, shape index: {}]   ;;  %s3119_s8 = inlined_call_operand.vmem [shape: f32[3,8,128], index: 8, kind: output, shape index: {}]  }
   0x1   :  { %14 = vsyncpa [#allocation5], 0  ;;  %s36_s29 = sshll.u32 %s3114_s3, 4  ;;  %s37_s29 = int_to_ptr.vmem [resolvable:$true] %s36_s29 }
   0x2   :  { %15 = vsyncpa [#allocation8], 0  ;;  %s26_s10 = sshll.u32 %s3113_s2, 4  ;;  %s1712_s11 = scalar_lea.vmem %s37_s29, 16  ;;  %s27_s10 = int_to_ptr.vmem [resolvable:$true] %s26_s10 }
   0x3   :  { %p1713_p0 = scmp.ne.s32.totalorder %s37_s29, %s1712_s11  ;;  %p1717_p1 = scmp.lt.s32.totalorder %s37_s29, %s37_s29 }
   0x4   :  { %p1718_p2 = scmp.lt.s32.totalorder %s1712_s11, %s1712_s11 }
   0x6   :  { %p1719_p3 = por %p1718_p2, %p1717_p1 }
   0x8   :  { %p1720_p4 = pnand %p1719_p3, %p1713_p0 }
   0xa   :  { %1723 = shalt.err (!%p1720_p4)
}
   0xb   :  { %s1766_s12 = smov [#allocation4]   ;;  %s1724_s13 = scalar_lea.vmem %s27_s10, 64 }
   0xc   :  { %39 = dma.vmem_to_smem %s37_s29, 16, %s1766_s12, [#allocation5]  }
   0xd   :  { %p1725_p5 = scmp.ne.s32.totalorder %s27_s10, %s1724_s13  ;;  %p1729_p6 = scmp.lt.s32.totalorder %s27_s10, %s27_s10 }
   0xe   :  { %p1730_p7 = scmp.lt.s32.totalorder %s1724_s13, %s1724_s13 }
  0x10   :  { %p1731_p8 = por %p1730_p7, %p1729_p6 }
  0x12   :  { %p1732_p9 = pnand %p1731_p8, %p1725_p5 }
  0x14   :  { %1735 = shalt.err (!%p1732_p9)
}
  0x15   :  { %s1767_s3 = smov [#allocation2]   ;;  %s46_s15 = sshll.u32 %s3115_s4, 4  ;;  %s47_s15 = int_to_ptr.vmem [resolvable:$true] %s46_s15 }
  0x16   :  { %29 = dma.vmem_to_smem %s27_s10, 64, %s1767_s3, [#allocation3]  }
  0x17   :  { %s56_s18 = sshll.u32 %s3116_s5, 4  ;;  %s1736_s19 = scalar_lea.vmem %s47_s15, 64  ;;  %s57_s18 = int_to_ptr.vmem [resolvable:$true] %s56_s18 }
  0x18   :  { %p1737_p10 = scmp.ne.s32.totalorder %s47_s15, %s1736_s19  ;;  %p1741_p11 = scmp.lt.s32.totalorder %s47_s15, %s47_s15 }
  0x19   :  { %p1742_p12 = scmp.lt.s32.totalorder %s1736_s19, %s1736_s19 }
  0x1b   :  { %p1743_p13 = por %p1742_p12, %p1741_p11 }
  0x1d   :  { %p1744_p0 = pnand %p1743_p13, %p1737_p10 }
  0x1f   :  { %1747 = shalt.err (!%p1744_p0)
}
  0x20   :  { %s1768_s20 = smov [#allocation6]   ;;  %s1748_s21 = scalar_lea.vmem %s57_s18, 16 }
  0x21   :  { %49 = dma.vmem_to_smem %s47_s15, 64, %s1768_s20, [#allocation5]  }
  0x22   :  { %p1749_p1 = scmp.ne.s32.totalorder %s57_s18, %s1748_s21  ;;  %p1753_p2 = scmp.lt.s32.totalorder %s57_s18, %s57_s18 }
  0x23   :  { %p1754_p3 = scmp.lt.s32.totalorder %s1748_s21, %s1748_s21 }
  0x25   :  { %p1755_p4 = por %p1754_p3, %p1753_p2 }
  0x27   :  { %p1756_p5 = pnand %p1755_p4, %p1749_p1 }
  0x29   :  { %1759 = shalt.err (!%p1756_p5)
}
  0x2a   :  { %s1769_s4 = smov [#allocation7]  }
  0x2b   :  { %59 = dma.vmem_to_smem %s57_s18, 16, %s1769_s4, [#allocation8]  }
  0x2c   :  { %1760 = dma.done.wait [#allocation3], 64  }
  0x2d   :  { %1761 = vsyncadd [#allocation3], 4294967232 }
  0x2e   :  { %1762 = dma.done.wait [#allocation5], 80  }
  0x2f   :  { %1763 = vsyncadd [#allocation5], 4294967216 }
  0x30   :  { %1764 = dma.done.wait [#allocation8], 16  }
  0x31   :  { %1765 = vsyncadd [#allocation8], 4294967280 }
  0x32   :  { %76 = sfence }
  0x33   :  { %s231_s5 = sld [smem:[#allocation6]]  ;;  %v3121_v0 = vmov 0.0   ;;  %vm1771_vm0 = vmmov 0   ;;  %v1838_v1 = vld [vmem:[%s3112_s1 + $0x78] sm:$0xff]  ;;  %v1845_v2 = vld [vmem:[%s3112_s1 + $0x70] sm:$0xff]  ;;  %v1850_v3 = vld [vmem:[%s3112_s1 + $0x68] sm:$0xff] }
  0x34   :  { %1422 = vmatprep.subr.mxu0 %v3121_v0  ;;  %s1258_s22 = sld [smem:[#allocation6 + $0x1]]  ;;  %1457 = vmatprep.subr.mxu1 %v3121_v0  ;;  %v1855_v4 = vld [vmem:[%s3112_s1 + $0xf8] sm:$0xff]  ;;  %v1860_v5 = vld [vmem:[%s3112_s1 + $0xf0] sm:$0xff]  ;;  %v1865_v6 = vld [vmem:[%s3112_s1 + $0xe8] sm:$0xff] }
  0x35   :  { %s1259_s23 = sld [smem:[#allocation6 + $0x2]]  ;;  %1454 = vmatprep.mubr.msk.f32.mxu0 %vm1771_vm0, %v3121_v0  ;;  %1489 = vmatprep.mubr.msk.f32.mxu1 %vm1771_vm0, %v3121_v0  ;;  %v1870_v7 = vld [vmem:[%s3112_s1 + $0x178] sm:$0xff]  ;;  %v1877_v9 = vld [vmem:[%s3112_s1 + $0x170] sm:$0xff]  ;;  %v1882_v10 = vld [vmem:[%s3112_s1 + $0x168] sm:$0xff] }
  0x36   :  { %s1260_s24 = sld [smem:[#allocation6 + $0x3]]  ;;  %v1887_v11 = vld [vmem:[%s3112_s1 + $0x1f8] sm:$0xff]  ;;  %v1904_v18 = vld [vmem:[%s3112_s1 + $0x1f0] sm:$0xff]  ;;  %v1924_v29 = vld [vmem:[%s3112_s1 + $0x1e8] sm:$0xff] }
  0x37   :  { %s1840_s27 = sld [smem:[#allocation7]]  ;;  %v1935_v35 = vld [vmem:[%s3112_s1 + $0x60] sm:$0xff]  ;;  %v1960_v45 = vld [vmem:[%s3112_s1 + $0x58] sm:$0xff]  ;;  %v1977_v50 = vld [vmem:[%s3112_s1 + $0x50] sm:$0xff] }
  0x38   :  { %v1942_v40 = vld [vmem:[%s3112_s1 + $0xe0] sm:$0xff]  ;;  %v1965_v46 = vld [vmem:[%s3112_s1 + $0xd8] sm:$0xff]  ;;  %v1982_v51 = vld [vmem:[%s3112_s1 + $0xd0] sm:$0xff]  ;;  %s2243_s12 = sld [smem:[#allocation2]] }
  0x39   :  { %v1872_v8 = vstv %s231_s5  ;;  %v1947_v41 = vld [vmem:[%s3112_s1 + $0x160] sm:$0xff]  ;;  %v1972_v49 = vld [vmem:[%s3112_s1 + $0x158] sm:$0xff]  ;;  %v2002_v59 = vld [vmem:[%s3112_s1 + $0x150] sm:$0xff]  ;;  %s2251_s2 = sld [smem:[#allocation2 + $0x1]] }
  0x3a   :  { %v248_v12 = vmul.f32 %v1872_v8, %v1838_v1  ;;  %v1891_v13 = vstv %s1258_s22  ;;  %v247_v14 = vmul.f32 %v1872_v8, %v1845_v2  ;;  %v246_v15 = vmul.f32 %v1872_v8, %v1850_v3  ;;  %v1955_v44 = vld [vmem:[%s3112_s1 + $0x1e0] sm:$0xff]  ;;  %v1990_v54 = vld [vmem:[%s3112_s1 + $0x1d8] sm:$0xff]  ;;  %v2007_v60 = vld [vmem:[%s3112_s1 + $0x48] sm:$0xff]  ;;  %s2288_s22 = sld [smem:[#allocation2 + $0x2]] }
  0x3b   :  { %v266_v16 = vmul.f32 %v1891_v13, %v1855_v4  ;;  %v1899_v17 = vstv %s1259_s23  ;;  %v265_v19 = vmul.f32 %v1891_v13, %v1860_v5  ;;  %v264_v20 = vmul.f32 %v1891_v13, %v1865_v6  ;;  %v2012_v61 = vld [vmem:[%s3112_s1 + $0xc8] sm:$0xff]  ;;  %s2327_s13 = sld [smem:[#allocation2 + $0x3]] }
  0x3c   :  { %v300_v21 = vmul.f32 %v1899_v17, %v1870_v7  ;;  %v1912_v22 = vstv %s1260_s24  ;;  %v299_v23 = vmul.f32 %v1899_v17, %v1877_v9  ;;  %v298_v24 = vmul.f32 %v1899_v17, %v1882_v10  ;;  %s228_s17 = sld [smem:[#allocation4]] }
  0x3d   :  { %v282_v25 = vadd.f32 %v266_v16, %v248_v12  ;;  %v334_v26 = vmul.f32 %v1912_v22, %v1887_v11  ;;  %v3120_v27 = vstv %s1840_s27  ;;  %v281_v28 = vadd.f32 %v265_v19, %v247_v14  ;;  %s1267_s30 = sld [smem:[#allocation6 + $0x80]] }
  0x3e   :  { %v333_v30 = vmul.f32 %v1912_v22, %v1904_v18  ;;  %v280_v31 = vadd.f32 %v264_v20, %v246_v15  ;;  %v1930_v33 = vmul.f32 0.0, %v3120_v27  ;;  %v332_v37 = vmul.f32 %v1912_v22, %v1924_v29  ;;  %v2026_v20 = vld [vmem:[%s3112_s1 + $0x1d0] sm:$0xff]  ;;  %s1268_s9 = sld [smem:[#allocation6 + $0x81]] }
  0x3f   :  { %v316_v32 = vadd.f32 %v300_v21, %v282_v25  ;;  %v315_v34 = vadd.f32 %v299_v23, %v281_v28  ;;  %v245_v42 = vmul.f32 %v1872_v8, %v1935_v35  ;;  %v263_v48 = vmul.f32 %v1891_v13, %v1942_v40  ;;  %v2042_v28 = vld [vmem:[%s3112_s1 + $0x40] sm:$0xff]  ;;  %s1269_s10 = sld [smem:[#allocation6 + $0x82]] }
  0x40   :  { %v314_v36 = vadd.f32 %v298_v24, %v280_v31  ;;  %v297_v53 = vmul.f32 %v1899_v17, %v1947_v41  ;;  %v331_v56 = vmul.f32 %v1912_v22, %v1955_v44  ;;  %v244_v57 = vmul.f32 %v1872_v8, %v1960_v45  ;;  %v2033_v24 = vld [vmem:[%s3112_s1 + $0x148] sm:$0xff]  ;;  %s1270_s11 = sld [smem:[#allocation6 + $0x83]] }
  0x41   :  { %v350_v38 = vadd.f32 %v334_v26, %v316_v32  ;;  %v349_v39 = vadd.f32 %v333_v30, %v315_v34  ;;  %v279_v55 = vadd.f32 %v263_v48, %v245_v42  ;;  %v262_v58 = vmul.f32 %v1891_v13, %v1965_v46  ;;  %v2048_v32 = vld [vmem:[%s3112_s1 + $0xc0] sm:$0xff]  ;;  %s2457_s25 = sld [smem:[#allocation7 + $0x1]] }
  0x42   :  { %v348_v47 = vadd.f32 %v332_v37, %v314_v36  ;;  %v296_v62 = vmul.f32 %v1899_v17, %v1972_v49  ;;  %v243_v63 = vmul.f32 %v1872_v8, %v1977_v50  ;;  %v261_v12 = vmul.f32 %v1891_v13, %v1982_v51  ;;  %v2065_v48 = vld [vmem:[%s3112_s1 + $0x140] sm:$0xff]  ;;  %s2582_s26 = sld [smem:[#allocation2 + $0x80]] }
  0x43   :  { %v384_v43 = vadd.f32 %v1930_v33, %v350_v38  ;;  %v383_v52 = vadd.f32 %v1930_v33, %v349_v39  ;;  %v313_v15 = vadd.f32 %v297_v53, %v279_v55  ;;  %v278_v16 = vadd.f32 %v262_v58, %v244_v57  ;;  %v2072_v53 = vld [vmem:[%s3112_s1 + $0x38] sm:$0xff]  ;;  %s1263_s28 = sld [smem:[#allocation2 + $0x81]] }
  0x44   :  { %v382_v14 = vadd.f32 %v1930_v33, %v348_v47  ;;  %v330_v19 = vmul.f32 %v1912_v22, %v1990_v54  ;;  %v277_v21 = vadd.f32 %v261_v12, %v243_v63  ;;  %v295_v23 = vmul.f32 %v1899_v17, %v2002_v59  ;;  %v2060_v47 = vld [vmem:[%s3112_s1 + $0x1c8] sm:$0xff]  ;;  %v2078_v55 = vld [vmem:[%s3112_s1 + $0xb8] sm:$0xff]  ;;  %s1264_s29 = sld [smem:[#allocation2 + $0x82]] }
  0x45   :  { %1423 = vmatpush3.xpose.msra.mxu0 %v384_v43  ;;  %v242_v25 = vmul.f32 %v1872_v8, %v2007_v60  ;;  %v260_v26 = vmul.f32 %v1891_v13, %v2012_v61  ;;  %v347_v30 = vadd.f32 %v331_v56, %v313_v15  ;;  %v312_v31 = vadd.f32 %v296_v62, %v278_v16  ;;  %v2095_v16 = vld [vmem:[%s3112_s1 + $0x138] sm:$0xff]  ;;  %s1296_s23 = sld [smem:[#allocation6 + $0x100]] }
  0x46   :  { %1424 = vmatprep.subr.mxu0 %v3121_v0  ;;  %v329_v34 = vmul.f32 %v1912_v22, %v2026_v20  ;;  %v294_v37 = vmul.f32 %v1899_v17, %v2033_v24  ;;  %v241_v38 = vmul.f32 %v1872_v8, %v2042_v28  ;;  %v311_v43 = vadd.f32 %v295_v23, %v277_v21  ;;  %v2102_v21 = vld [vmem:[%s3112_s1 + $0x30] sm:$0xff]  ;;  %s1297_s24 = sld [smem:[#allocation6 + $0x101]] }
  0x47   :  { %v276_v36 = vadd.f32 %v260_v26, %v242_v25  ;;  %v381_v39 = vadd.f32 %v1930_v33, %v347_v30  ;;  %v346_v42 = vadd.f32 %v330_v19, %v312_v31  ;;  %v328_v57 = vmul.f32 %v1912_v22, %v2060_v47  ;;  %v2108_v23 = vld [vmem:[%s3112_s1 + $0xb0] sm:$0xff]  ;;  %s2996_s21 = sld [smem:[#allocation2 + $0x103]] }
  0x48   :  { %v293_v58 = vmul.f32 %v1899_v17, %v2065_v48  ;;  %v240_v62 = vmul.f32 %v1872_v8, %v2072_v53  ;;  %v345_v12 = vadd.f32 %v329_v34, %v311_v43  ;;  %v258_v19 = vmul.f32 %v1891_v13, %v2078_v55  ;;  %3148 = vst [vmem:[#allocation12_spill] sm:$0xff] %v2108_v23  ;;  %v2132_v43 = vld [vmem:[%s3112_s1 + $0x28] sm:$0xff] }
  0x49   :  { %1425 = vmatpush3.xpose.msra.mxu0 %v383_v52  ;;  %v259_v52 = vmul.f32 %v1891_v13, %v2048_v32  ;;  %v310_v56 = vadd.f32 %v294_v37, %v276_v36  ;;  %v380_v63 = vadd.f32 %v1930_v33, %v346_v42  ;;  %v292_v30 = vmul.f32 %v1899_v17, %v2095_v16  ;;  %v2120_v37 = vld [vmem:[%s3112_s1 + $0x1b8] sm:$0xff] }
  0x4a   :  { %1426 = vmatprep.subr.mxu0 %v3121_v0  ;;  %v239_v31 = vmul.f32 %v1872_v8, %v2102_v21  ;;  %v379_v34 = vadd.f32 %v1930_v33, %v345_v12  ;;  %3149 = vst [vmem:[#allocation13_spill] sm:$0xff] %v2120_v37  ;;  %v257_v42 = vmul.f32 %v1891_v13, %v2108_v23  ;;  %3151 = vst [vmem:[#allocation15_spill] sm:$0xff] %v2132_v43  ;;  %v2309_v23 = vld [vmem:[%s3112_s1 + $0x100] sm:$0xff] }
  0x4b   :  { %v275_v15 = vadd.f32 %v259_v52, %v241_v38  ;;  %v344_v25 = vadd.f32 %v328_v57, %v310_v56  ;;  %v274_v38 = vadd.f32 %v258_v19, %v240_v62  ;;  %v2138_v52 = vld [vmem:[%s3112_s1 + $0xa8] sm:$0xff]  ;;  %v326_v57 = vmul.f32 %v1912_v22, %v2120_v37  ;;  %v2182_v37 = vld [vmem:[%s3112_s1 + $0x120] sm:$0xff] }
  0x4c   :  { %3152 = vst [vmem:[#allocation16_spill] sm:$0xff] %v2138_v52  ;;  %v273_v19 = vadd.f32 %v257_v42, %v239_v31  ;;  %v256_v27 = vmul.f32 %v1891_v13, %v2138_v52  ;;  %3158 = vst [vmem:[#allocation21_spill] sm:$0xff] %v2182_v37 }
  0x4d   :  { %1427 = vmatpush3.xpose.msra.mxu0 %v382_v14  ;;  %v2090_v14 = vld [vmem:[%s3112_s1 + $0x1c0] sm:$0xff]  ;;  %v309_v36 = vadd.f32 %v293_v58, %v275_v15  ;;  %v378_v56 = vadd.f32 %v1930_v33, %v344_v25  ;;  %v2146_v58 = vld [vmem:[%s3112_s1 + $0x1b0] sm:$0xff]  ;;  %v308_v15 = vadd.f32 %v292_v30, %v274_v38  ;;  %v2155_v25 = vld [vmem:[%s3112_s1 + $0x128] sm:$0xff] }
  0x4e   :  { %1428 = vmatprep.subr.mxu0 %v3121_v0  ;;  %v327_v26 = vmul.f32 %v1912_v22, %v2090_v14  ;;  %3153 = vst [vmem:[#allocation17_spill] sm:$0xff] %v2146_v58  ;;  %3154 = vst [vmem:[#allocation18_spill] sm:$0xff] %v2155_v25  ;;  %v325_v30 = vmul.f32 %v1912_v22, %v2146_v58  ;;  %v290_v31 = vmul.f32 %v1899_v17, %v2155_v25  ;;  %v2187_v25 = vld [vmem:[%s3112_s1 + $0x18] sm:$0xff] }
  0x4f   :  { %v342_v52 = vadd.f32 %v326_v57, %v308_v15  ;;  %3159 = vst [vmem:[#allocation22_spill] sm:$0xff] %v2187_v25  ;;  %v2192_v58 = vld [vmem:[%s3112_s1 + $0x98] sm:$0xff] }
  0x50   :  { %v343_v12 = vadd.f32 %v327_v26, %v309_v36  ;;  %v3157_v26 = vmov 0.0   ;;  %3160 = vst [vmem:[#allocation23_spill] sm:$0xff] %v2192_v58  ;;  %v254_v15 = vmul.f32 %v1891_v13, %v2192_v58 }
  0x51   :  { %1429 = vmatpush3.xpose.msra.mxu0 %v381_v39  ;;  %v2125_v39 = vld [vmem:[%s3112_s1 + $0x130] sm:$0xff] }
  0x52   :  { %1430 = vmatprep.subr.mxu0 %v3121_v0  ;;  %3150 = vst [vmem:[#allocation14_spill] sm:$0xff] %v2125_v39  ;;  %v291_v62 = vmul.f32 %v1899_v17, %v2125_v39  ;;  %v377_v42 = vadd.f32 %v1930_v33, %v343_v12  ;;  %v236_v12 = vmul.f32 %v1872_v8, %v2187_v25  ;;  %v2227_v25 = vld [vmem:[%s3112_s1 + $0x90] sm:$0xff] }
  0x53   :  { %3165 = vst [vmem:[#allocation28_spill] sm:$0xff] %v2227_v25 }
  0x55   :  { %1431 = vmatpush3.xpose.msra.mxu0 %v380_v63  ;;  %v238_v63 = vmul.f32 %v1872_v8, %v2132_v43  ;;  %v307_v43 = vadd.f32 %v291_v62, %v273_v19  ;;  %v289_v62 = vmul.f32 %v1899_v17, %v2182_v37  ;;  %v376_v19 = vadd.f32 %v1930_v33, %v342_v52  ;;  %v2304_v37 = vld [vmem:[%s3112_s1 + $0x188] sm:$0xff] }
  0x56   :  { %1432 = vmatprep.subr.mxu0 %v3121_v0  ;;  %v2162_v0 = vld [vmem:[%s3112_s1 + $0x20] sm:$0xff] }
  0x57   :  { %3155 = vst [vmem:[#allocation19_spill] sm:$0xff] %v2162_v0  ;;  %v237_v36 = vmul.f32 %v1872_v8, %v2162_v0  ;;  %v272_v39 = vadd.f32 %v256_v27, %v238_v63  ;;  %v2198_v27 = vld [vmem:[%s3112_s1 + $0x1a8] sm:$0xff]  ;;  %v2210_v63 = vld [vmem:[%s3112_s1 + $0x118] sm:$0xff] }
  0x58   :  { %3161 = vst [vmem:[#allocation24_spill] sm:$0xff] %v2198_v27  ;;  %3163 = vst [vmem:[#allocation26_spill] sm:$0xff] %v2210_v63 }
  0x59   :  { %1433 = vmatpush3.xpose.msra.mxu0 %v379_v34  ;;  %v2167_v34 = vld [vmem:[%s3112_s1 + $0xa0] sm:$0xff]  ;;  %v306_v0 = vadd.f32 %v290_v31, %v272_v39  ;;  %v288_v39 = vmul.f32 %v1899_v17, %v2210_v63  ;;  %v270_v31 = vadd.f32 %v254_v15, %v236_v12  ;;  %v2262_v12 = vld [vmem:[%s3112_s1 + $0x88] sm:$0xff] }
  0x5a   :  { %3156 = vst [vmem:[#allocation20_spill] sm:$0xff] %v2167_v34  ;;  %1434 = vmatprep.subr.mxu0 %v3157_v26  ;;  %v255_v38 = vmul.f32 %v1891_v13, %v2167_v34  ;;  %v341_v34 = vadd.f32 %v325_v30, %v307_v43  ;;  %v2237_v30 = vld [vmem:[%s3112_s1 + $0x198] sm:$0xff]  ;;  %3169 = vst [vmem:[#allocation32_spill] sm:$0xff] %v2262_v12  ;;  %v2276_v63 = vld [vmem:[%s3112_s1 + $0x108] sm:$0xff] }
  0x5b   :  { %3166 = vst [vmem:[#allocation29_spill] sm:$0xff] %v2237_v30  ;;  %3171 = vst [vmem:[#allocation34_spill] sm:$0xff] %v2276_v63 }
  0x5c   :  { %v271_v57 = vadd.f32 %v255_v38, %v237_v36  ;;  %v324_v36 = vmul.f32 %v1912_v22, %v2198_v27  ;;  %v2222_v38 = vld [vmem:[%s3112_s1 + $0x10] sm:$0xff]  ;;  %v253_v27 = vmul.f32 %v1891_v13, %v2227_v25 }
  0x5d   :  { %1435 = vmatpush3.xpose.msra.mxu0 %v378_v56  ;;  %v2203_v56 = vld [vmem:[%s3112_s1 + $0x1a0] sm:$0xff]  ;;  %3164 = vst [vmem:[#allocation27_spill] sm:$0xff] %v2222_v38 }
  0x5e   :  { %1436 = vmatprep.subr.mxu0 %v3157_v26  ;;  %3162 = vst [vmem:[#allocation25_spill] sm:$0xff] %v2203_v56  ;;  %v323_v52 = vmul.f32 %v1912_v22, %v2203_v56  ;;  %v305_v43 = vadd.f32 %v289_v62, %v271_v57  ;;  %v375_v56 = vadd.f32 %v1930_v33, %v341_v34  ;;  %v2249_v57 = vld [vmem:[%s3112_s1 + $0x110] sm:$0xff]  ;;  %v2257_v62 = vld [vmem:[%s3112_s1 + $0x8] sm:$0xff]  ;;  %v145_v34 = vlaneseq }
  0x5f   :  { %v340_v58 = vadd.f32 %v324_v36, %v306_v0  ;;  %3167 = vst [vmem:[#allocation30_spill] sm:$0xff] %v2249_v57  ;;  %3168 = vst [vmem:[#allocation31_spill] sm:$0xff] %v2257_v62  ;;  %v322_v0 = vmul.f32 %v1912_v22, %v2237_v30  ;;  %v2269_v36 = vld [vmem:[%s3112_s1 + $0x190] sm:$0xff] }
  0x60   :  { %v339_v15 = vadd.f32 %v323_v52, %v305_v43  ;;  %3170 = vst [vmem:[#allocation33_spill] sm:$0xff] %v2269_v36  ;;  %v234_v52 = vmul.f32 %v1872_v8, %v2257_v62  ;;  %v286_v43 = vmul.f32 %v1899_v17, %v2276_v63 }
  0x61   :  { %1437 = vmatpush3.xpose.msra.mxu0 %v377_v42  ;;  %v235_v42 = vmul.f32 %v1872_v8, %v2222_v38  ;;  %v287_v38 = vmul.f32 %v1899_v17, %v2249_v57  ;;  %v374_v30 = vadd.f32 %v1930_v33, %v340_v58  ;;  %v321_v58 = vmul.f32 %v1912_v22, %v2269_v36 }
  0x62   :  { %1438 = vmatprep.subr.mxu0 %v3157_v26 }
  0x63   :  { %v269_v25 = vadd.f32 %v253_v27, %v235_v42  ;;  %v2286_v27 = vld [vmem:[%s3112_s1] sm:$0xff]  ;;  %v148_v42 = vshrl.u32 %v145_v34, 7 }
  0x64   :  { %3172 = vst [vmem:[#allocation35_spill] sm:$0xff] %v2286_v27  ;;  %v233_v36 = vmul.f32 %v1872_v8, %v2286_v27  ;;  %v320_v8 = vmul.f32 %v1912_v22, %v2304_v37  ;;  %v2340_v27 = vld [vmem:[%s3112_s1 + $0x180] sm:$0xff] }
  0x65   :  { %1439 = vmatpush3.xpose.msra.mxu0 %v376_v19  ;;  %v304_v19 = vadd.f32 %v288_v39, %v270_v31  ;;  %v252_v39 = vmul.f32 %v1891_v13, %v2262_v12  ;;  %v146_v31 = vand.u32 127, %v145_v34  ;;  %v373_v12 = vadd.f32 %v1930_v33, %v339_v15 }
  0x66   :  { %1440 = vmatprep.subr.mxu0 %v3157_v26  ;;  %v303_v57 = vadd.f32 %v287_v38, %v269_v25  ;;  %v2318_v25 = vld [vmem:[%s3111_s0] sm:$0xff]  ;;  %v2323_v38 = vld [vmem:[%s3111_s0 + $0x8] sm:$0xff]  ;;  %v217_v15 = vstv %s2251_s2  ;;  %vm165_vm2 = vcmp.lt.s32.totalorder %v148_v42, 1  ;;  %v2356_v42 = vld [vmem:[%s3111_s0 + $0x18] sm:$0xff]  ;;  %s2974_s2 = sld [smem:[#allocation2 + $0x102]] }
  0x67   :  { %v338_v62 = vadd.f32 %v322_v0, %v304_v19  ;;  %v268_v63 = vadd.f32 %v252_v39, %v234_v52  ;;  %v214_v0 = vstv %s2243_s12  ;;  %vm164_vm1 = vcmp.lt.s32.totalorder %v146_v31, 81 }
  0x68   :  { %v215_v19 = vmul.f32 %v214_v0, %v2318_v25  ;;  %v218_v52 = vmul.f32 %v217_v15, %v2323_v38  ;;  %v337_v39 = vadd.f32 %v321_v58, %v303_v57  ;;  %vm181_vm3 = vmand %vm164_vm1, %vm165_vm2  ;;  %v319_v57 = vmul.f32 %v1912_v22, %v2340_v27 }
  0x69   :  { %1441 = vmatpush3.xpose.msra.mxu0 %v375_v56  ;;  %v2294_v56 = vld [vmem:[%s3112_s1 + $0x80] sm:$0xff]  ;;  %v2361_v22 = vsel %vm181_vm3, 1.0, %v3157_v26 }
  0x6a   :  { %1442 = vmatprep.subr.mxu0 %v3157_v26  ;;  %3173 = vst [vmem:[#allocation36_spill] sm:$0xff] %v2294_v56  ;;  %v251_v34 = vmul.f32 %v1891_v13, %v2294_v56  ;;  %v372_v13 = vadd.f32 %v1930_v33, %v338_v62  ;;  %v302_v56 = vadd.f32 %v286_v43, %v268_v63  ;;  %v2345_v62 = vld [vmem:[%s3111_s0 + $0x10] sm:$0xff] }
  0x6b   :  { %v371_v58 = vadd.f32 %v1930_v33, %v337_v39  ;;  %v229_v39 = vstv %s228_s17 }
  0x6c   :  { %v267_v31 = vadd.f32 %v251_v34, %v233_v36  ;;  %v336_v36 = vadd.f32 %v320_v8, %v302_v56  ;;  %v225_v34 = vstv %s2327_s13  ;;  %v3174_v8 = vstv %s1840_s27  ;;  %s1295_s13 = sld [smem:[#allocation4 + $0x2]] }
  0x6d   :  { %1443 = vmatpush3.xpose.msra.mxu0 %v374_v30  ;;  %v285_v30 = vmul.f32 %v1899_v17, %v2309_v23  ;;  %v221_v17 = vstv %s2288_s22  ;;  %v226_v15 = vmul.f32 %v225_v34, %v2356_v42 }
  0x6e   :  { %1444 = vmatprep.subr.mxu0 %v3157_v26  ;;  %v222_v63 = vmul.f32 %v221_v17, %v2345_v62  ;;  %v477_v17 = vld [vmem:[%s3117_s6 + $0x70] sm:$0xff] }
  0x6f   :  { %v301_v43 = vadd.f32 %v285_v30, %v267_v31  ;;  %v353_v30 = vmul.f32 %v3174_v8, %v2361_v22  ;;  %v2415_v8 = vstv %s1267_s30  ;;  %s1265_s30 = sld [smem:[#allocation2 + $0x83]] }
  0x71   :  { %1445 = vmatpush3.xpose.msra.mxu0 %v373_v12  ;;  %v219_v12 = vadd.f32 %v218_v52, %v215_v19  ;;  %v335_v56 = vadd.f32 %v319_v57, %v301_v43  ;;  %v476_v57 = vld [vmem:[%s3117_s6 + $0x68] sm:$0xff] }
  0x72   :  { %1446 = vmatprep.subr.mxu0 %v3157_v26 }
  0x73   :  { %v223_v0 = vadd.f32 %v222_v63, %v219_v12  ;;  %v369_v52 = vadd.f32 %v353_v30, %v335_v56  ;;  %v475_v12 = vld [vmem:[%s3117_s6 + $0x60] sm:$0xff]  ;;  %v474_v63 = vld [vmem:[%s3117_s6 + $0x58] sm:$0xff]  ;;  %v469_v56 = vld [vmem:[%s3117_s6 + $0x30] sm:$0xff]  ;;  %v2417_v30 = vstv %s1268_s9  ;;  %s1266_s9 = sld [smem:[#allocation4 + $0x1]] }
  0x75   :  { %1447 = vmatpush3.xpose.msra.mxu0 %v372_v13  ;;  %v370_v13 = vadd.f32 %v1930_v33, %v336_v36  ;;  %v227_v19 = vadd.f32 %v226_v15, %v223_v0  ;;  %v478_v33 = vld [vmem:[%s3117_s6 + $0x78] sm:$0xff]  ;;  %v472_v36 = vld [vmem:[%s3117_s6 + $0x48] sm:$0xff]  ;;  %v471_v15 = vld [vmem:[%s3117_s6 + $0x40] sm:$0xff] }
  0x76   :  { %1448 = vmatprep.subr.mxu0 %v3157_v26  ;;  %1458 = vmatpush3.msra.mxu1 %v478_v33  ;;  %v609_v33 = vmul.f32 %v2417_v30, %v1855_v4 }
  0x77   :  { %v230_v31 = vadd.f32 %v229_v39, %v227_v19  ;;  %1459 = vmatprep.subr.mxu1 %v3157_v26  ;;  %v468_v19 = vld [vmem:[%s3117_s6 + $0x28] sm:$0xff]  ;;  %v467_v39 = vld [vmem:[%s3117_s6 + $0x20] sm:$0xff] }
  0x78   :  { %1460 = vmatpush3.msra.mxu1 %v477_v17  ;;  %v2433_v17 = vstv %s1270_s11 }
  0x79   :  { %1449 = vmatpush3.xpose.msra.mxu0 %v371_v58  ;;  %1461 = vmatprep.subr.mxu1 %v3157_v26  ;;  %v473_v58 = vld [vmem:[%s3117_s6 + $0x50] sm:$0xff]  ;;  %v677_v4 = vmul.f32 %v2433_v17, %v1887_v11 }
  0x7a   :  { %1450 = vmatprep.subr.mxu0 %v3157_v26  ;;  %1462 = vmatpush3.msra.mxu1 %v476_v57  ;;  %v466_v57 = vld [vmem:[%s3117_s6 + $0x18] sm:$0xff] }
  0x7b   :  { %1463 = vmatprep.subr.mxu1 %v3157_v26 }
  0x7c   :  { %1464 = vmatpush3.msra.mxu1 %v475_v12 }
  0x7d   :  { %1451 = vmatpush3.xpose.msra.mxu0 %v370_v13  ;;  %1465 = vmatprep.subr.mxu1 %v3157_v26  ;;  %v470_v13 = vld [vmem:[%s3117_s6 + $0x38] sm:$0xff] }
  0x7e   :  { %1452 = vmatprep.subr.mxu0 %v3157_v26  ;;  %1466 = vmatpush3.msra.mxu1 %v474_v63 }
  0x7f   :  { %1467 = vmatprep.subr.mxu1 %v3157_v26 }
  0x80   :  { %1468 = vmatpush3.msra.mxu1 %v473_v58  ;;  %v464_v58 = vld [vmem:[%s3117_s6 + $0x8] sm:$0xff] }
  0x81   :  { %1453 = vmatpush3.xpose.msra.mxu0 %v369_v52  ;;  %1469 = vmatprep.subr.mxu1 %v3157_v26  ;;  %v2423_v52 = vstv %s1269_s10 }
  0x82   :  { %1527 = vmatprep.subr.mxu0 %v3157_v26  ;;  %1470 = vmatpush3.msra.mxu1 %v472_v36  ;;  %v643_v12 = vmul.f32 %v2423_v52, %v1870_v7  ;;  %v463_v36 = vld [vmem:[%s3117_s6] sm:$0xff] }
  0x83   :  { %1471 = vmatprep.subr.mxu1 %v3157_v26 }
  0x84   :  { %1455 = vmatmul.mubr.f32.vlgmr.msra.gmra.mxu0 %v230_v31  ;;  %1472 = vmatpush3.msra.mxu1 %v471_v15  ;;  %v591_v31 = vmul.f32 %v2415_v8, %v1838_v1  ;;  %v465_v1 = vld [vmem:[%s3117_s6 + $0x10] sm:$0xff]  ;;  %v590_v15 = vmul.f32 %v2415_v8, %v1845_v2 }
  0x85   :  { %1559 = vmatprep.mubr.msk.f32.mxu0 %vm1771_vm0, %v3157_v26  ;;  %1473 = vmatprep.subr.mxu1 %v3157_v26 }
  0x86   :  { %1474 = vmatpush3.msra.mxu1 %v470_v13  ;;  %v625_v63 = vadd.f32 %v609_v33, %v591_v31  ;;  %v608_v13 = vmul.f32 %v2417_v30, %v1860_v5  ;;  %v607_v31 = vmul.f32 %v2417_v30, %v1865_v6  ;;  %v695_v33 = vstv %s2457_s25  ;;  %s1298_s25 = sld [smem:[#allocation6 + $0x102]] }
  0x87   :  { %1475 = vmatprep.subr.mxu1 %v3157_v26  ;;  %v641_v5 = vmul.f32 %v2423_v52, %v1882_v10  ;;  %v587_v10 = vmul.f32 %v2415_v8, %v1960_v45  ;;  %v639_v45 = vmul.f32 %v2423_v52, %v1972_v49 }
  0x88   :  { %1476 = vmatpush3.msra.mxu1 %v469_v56  ;;  %v659_v7 = vadd.f32 %v643_v12, %v625_v63  ;;  %v624_v56 = vadd.f32 %v608_v13, %v590_v15  ;;  %v676_v12 = vmul.f32 %v2433_v17, %v1904_v18  ;;  %v675_v63 = vmul.f32 %v2433_v17, %v1924_v29 }
  0x89   :  { %1477 = vmatprep.subr.mxu1 %v3157_v26  ;;  %v640_v18 = vmul.f32 %v2423_v52, %v1947_v41  ;;  %v674_v15 = vmul.f32 %v2433_v17, %v1955_v44  ;;  %v603_v44 = vmul.f32 %v2417_v30, %v2012_v61  ;;  %v584_v61 = vmul.f32 %v2415_v8, %v2042_v28 }
  0x8a   :  { %1478 = vmatpush3.msra.mxu1 %v468_v19  ;;  %v642_v19 = vmul.f32 %v2423_v52, %v1877_v9  ;;  %v606_v9 = vmul.f32 %v2417_v30, %v1942_v40  ;;  %v636_v28 = vmul.f32 %v2423_v52, %v2065_v48  ;;  %v635_v48 = vmul.f32 %v2423_v52, %v2095_v16 }
  0x8b   :  { %1479 = vmatprep.subr.mxu1 %v3157_v26 }
  0x8c   :  { %1480 = vmatpush3.msra.mxu1 %v467_v39  ;;  %v589_v39 = vmul.f32 %v2415_v8, %v1850_v3  ;;  %v2480_v3 = vmul.f32 0.0, %v695_v33 }
  0x8d   :  { %1481 = vmatprep.subr.mxu1 %v3157_v26 }
  0x8e   :  { %1482 = vmatpush3.msra.mxu1 %v466_v57  ;;  %v658_v57 = vadd.f32 %v642_v19, %v624_v56  ;;  %v623_v2 = vadd.f32 %v607_v31, %v589_v39  ;;  %v638_v19 = vmul.f32 %v2423_v52, %v2002_v59  ;;  %v602_v31 = vmul.f32 %v2417_v30, %v2048_v32 }
  0x8f   :  { %1483 = vmatprep.subr.mxu1 %v3157_v26  ;;  %v672_v59 = vmul.f32 %v2433_v17, %v2026_v20  ;;  %v583_v32 = vmul.f32 %v2415_v8, %v2072_v53 }
  0x90   :  { %1484 = vmatpush3.msra.mxu1 %v465_v1  ;;  %v588_v1 = vmul.f32 %v2415_v8, %v1935_v35  ;;  %v657_v6 = vadd.f32 %v641_v5, %v623_v2  ;;  %v605_v35 = vmul.f32 %v2417_v30, %v1965_v46  ;;  %v586_v46 = vmul.f32 %v2415_v8, %v1977_v50 }
  0x91   :  { %1485 = vmatprep.subr.mxu1 %v3157_v26  ;;  %v673_v50 = vmul.f32 %v2433_v17, %v1990_v54  ;;  %v618_v5 = vadd.f32 %v602_v31, %v584_v61  ;;  %v3185_v31 = vld [vmem:[#allocation22_spill] sm:$0xff] }
  0x92   :  { %1486 = vmatpush3.msra.mxu1 %v464_v58  ;;  %v622_v58 = vadd.f32 %v606_v9, %v588_v1  ;;  %v621_v41 = vadd.f32 %v605_v35, %v587_v10  ;;  %v601_v1 = vmul.f32 %v2417_v30, %v2078_v55  ;;  %v582_v55 = vmul.f32 %v2415_v8, %v2102_v21 }
  0x93   :  { %1487 = vmatprep.subr.mxu1 %v3157_v26 }
  0x94   :  { %1488 = vmatpush3.msra.mxu1 %v463_v36  ;;  %v656_v29 = vadd.f32 %v640_v18, %v622_v58  ;;  %v655_v56 = vadd.f32 %v639_v45, %v621_v41  ;;  %v3175_v58 = vld [vmem:[#allocation12_spill] sm:$0xff]  ;;  %v3180_v41 = vld [vmem:[#allocation19_spill] sm:$0xff] }
  0x95   :  { %1492 = vmatprep.subr.mxu1 %v3157_v26  ;;  %v600_v18 = vmul.f32 %v2417_v30, %v3175_v58  ;;  %v580_v45 = vmul.f32 %v2415_v8, %v3180_v41 }
  0x96   :  { %v690_v49 = vadd.f32 %v674_v15, %v656_v29  ;;  %v689_v54 = vadd.f32 %v673_v50, %v655_v56  ;;  %v3179_v29 = vld [vmem:[#allocation16_spill] sm:$0xff] }
  0x97   :  { %v616_v16 = vadd.f32 %v600_v18, %v582_v55  ;;  %v599_v15 = vmul.f32 %v2417_v30, %v3179_v29 }
  0x98   :  { %v723_v9 = vadd.f32 %v2480_v3, %v689_v54  ;;  %v3186_v54 = vld [vmem:[#allocation23_spill] sm:$0xff] }
 0x144   :  { %v2401_v43 = vpop.f32.mrf.mxu0 }
 0x145   :  { %vm455_vm4 = vcmp.ne.f32.partialorder %v2401_v43, 0.0 }
 0x146   :  { %v1456_v34 = vpop.f32.mrf.mxu0  ;;  %v1261_v0 = vsel %vm455_vm4, 1.0, %v3157_v26 }
 0x147   :  { %458 = vadd.xlane.f32.xlu0 %v1261_v0  ;;  %v693_v34 = vadd.f32 %v677_v4, %v659_v7  ;;  %v692_v4 = vadd.f32 %v676_v12, %v658_v57  ;;  %v724_v57 = vadd.f32 %v2480_v3, %v690_v49  ;;  %v3182_v49 = vld [vmem:[#allocation17_spill] sm:$0xff] }
 0x148   :  { %v668_v56 = vmul.f32 %v2433_v17, %v3182_v49  ;;  %v3198_v49 = vld [vmem:[#allocation35_spill] sm:$0xff] }
 0x149   :  { %v727_v40 = vadd.f32 %v2480_v3, %v693_v34  ;;  %v604_v34 = vmul.f32 %v2417_v30, %v1982_v51 }
 0x14b   :  { %v620_v51 = vadd.f32 %v604_v34, %v586_v46  ;;  %v3181_v46 = vld [vmem:[#allocation20_spill] sm:$0xff] }
 0x14c   :  { %v598_v34 = vmul.f32 %v2417_v30, %v3181_v46  ;;  %v3196_v46 = vld [vmem:[#allocation33_spill] sm:$0xff] }
 0x14d   :  { %v654_v12 = vadd.f32 %v638_v19, %v620_v51  ;;  %v3183_v51 = vld [vmem:[#allocation18_spill] sm:$0xff] }
 0x14e   :  { %v633_v19 = vmul.f32 %v2423_v52, %v3183_v51 }
 0x14f   :  { %v688_v20 = vadd.f32 %v672_v59, %v654_v12  ;;  %v597_v12 = vmul.f32 %v2417_v30, %v3186_v54 }
 0x151   :  { %v722_v53 = vadd.f32 %v2480_v3, %v688_v20 }
 0x1d0   :  { %v459_v11 = vpop.xlane.xlu0 %458 }
 0x1d1   :  { %v460_v0 = vadd.f32 1e-05, %v459_v11  ;;  %v726_v11 = vadd.f32 %v2480_v3, %v692_v4 }
 0x1d3   :  { %1638 = vrcp.f32 %v460_v0  ;;  %v691_v0 = vadd.f32 %v675_v63, %v657_v6  ;;  %v652_v6 = vadd.f32 %v636_v28, %v618_v5  ;;  %v617_v63 = vadd.f32 %v601_v1, %v583_v32  ;;  %v3187_v5 = vld [vmem:[#allocation24_spill] sm:$0xff]  ;;  %v3188_v1 = vld [vmem:[#allocation25_spill] sm:$0xff] }
 0x1d4   :  { %v667_v28 = vmul.f32 %v2433_v17, %v3187_v5 }
 0x1d5   :  { %v725_v13 = vadd.f32 %v2480_v3, %v691_v0  ;;  %v3178_v0 = vld [vmem:[#allocation15_spill] sm:$0xff] }
 0x1d6   :  { %v581_v21 = vmul.f32 %v2415_v8, %v3178_v0  ;;  %v3195_v0 = vld [vmem:[#allocation32_spill] sm:$0xff] }
 0x1d8   :  { %v615_v50 = vadd.f32 %v599_v15, %v581_v21  ;;  %v595_v21 = vmul.f32 %v2417_v30, %v3195_v0  ;;  %v2678_v0 = vstv %s1296_s23 }
 0x1e0   :  { %v1639_v7 = vpop.eup %1638 }
 0x1e1   :  { %v462_v36 = vmul.f32 %v1639_v7, %v2401_v43  ;;  %v585_v43 = vmul.f32 %v2415_v8, %v2007_v60  ;;  %v637_v60 = vmul.f32 %v2423_v52, %v2033_v24  ;;  %v671_v24 = vmul.f32 %v2433_v17, %v2060_v47 }
 0x1e2   :  { %v670_v47 = vmul.f32 %v2433_v17, %v2090_v14  ;;  %v651_v7 = vadd.f32 %v635_v48, %v617_v63  ;;  %v3176_v14 = vld [vmem:[#allocation13_spill] sm:$0xff]  ;;  %v3191_v48 = vld [vmem:[#allocation28_spill] sm:$0xff] }
 0x1e3   :  { %1490 = vmatmul.mubr.f32.vlgmr.msra.gmra.mxu1 %v462_v36  ;;  %v619_v39 = vadd.f32 %v603_v44, %v585_v43  ;;  %v3177_v36 = vld [vmem:[#allocation14_spill] sm:$0xff] }
 0x1e4   :  { %1493 = vmatpush3.xpose.msra.mxu1 %v727_v40  ;;  %1524 = vmatprep.mubr.msk.f32.mxu1 %vm1771_vm0, %v3157_v26  ;;  %v686_v35 = vadd.f32 %v670_v47, %v652_v6  ;;  %v669_v40 = vmul.f32 %v2433_v17, %v3176_v14  ;;  %v3190_v47 = vld [vmem:[#allocation27_spill] sm:$0xff] }
 0x1e5   :  { %1494 = vmatprep.subr.mxu1 %v3157_v26  ;;  %v653_v2 = vadd.f32 %v637_v60, %v619_v39  ;;  %v614_v39 = vadd.f32 %v598_v34, %v580_v45  ;;  %v3184_v60 = vld [vmem:[#allocation21_spill] sm:$0xff]  ;;  %v578_v63 = vmul.f32 %v2415_v8, %v3190_v47  ;;  %v664_v34 = vmul.f32 %v2433_v17, %v3196_v46  ;;  %v1283_v47 = vld [vmem:[%s3117_s6 + $0xd0] sm:$0xff] }
 0x1e6   :  { %v720_v43 = vadd.f32 %v2480_v3, %v686_v35  ;;  %v685_v44 = vadd.f32 %v669_v40, %v651_v7  ;;  %v632_v61 = vmul.f32 %v2423_v52, %v3184_v60  ;;  %v3192_v35 = vld [vmem:[#allocation29_spill] sm:$0xff]  ;;  %v3193_v40 = vld [vmem:[#allocation30_spill] sm:$0xff] }
 0x1e7   :  { %v687_v4 = vadd.f32 %v671_v24, %v653_v2  ;;  %v649_v24 = vadd.f32 %v633_v19, %v615_v50  ;;  %v665_v7 = vmul.f32 %v2433_v17, %v3192_v35  ;;  %v3199_v50 = vld [vmem:[#allocation36_spill] sm:$0xff]  ;;  %v557_v19 = vstv %s2582_s26  ;;  %s1299_s26 = sld [smem:[#allocation6 + $0x103]] }
 0x1e8   :  { %1495 = vmatpush3.xpose.msra.mxu1 %v726_v11  ;;  %v634_v11 = vmul.f32 %v2423_v52, %v3177_v36  ;;  %v719_v59 = vadd.f32 %v2480_v3, %v685_v44  ;;  %v648_v32 = vadd.f32 %v632_v61, %v614_v39  ;;  %v3194_v36 = vld [vmem:[#allocation31_spill] sm:$0xff]  ;;  %v3197_v44 = vld [vmem:[#allocation34_spill] sm:$0xff]  ;;  %v594_v51 = vmul.f32 %v2417_v30, %v3199_v50 }
 0x1e9   :  { %1496 = vmatprep.subr.mxu1 %v3157_v26  ;;  %v721_v10 = vadd.f32 %v2480_v3, %v687_v4  ;;  %v3189_v4 = vld [vmem:[#allocation26_spill] sm:$0xff]  ;;  %v683_v58 = vadd.f32 %v667_v28, %v649_v24  ;;  %v560_v39 = vstv %s1263_s28  ;;  %v662_v28 = vmul.f32 %v2433_v17, %v2340_v27  ;;  %s2728_s28 = sld [smem:[#allocation7 + $0x2]] }
 0x1ea   :  { %v631_v6 = vmul.f32 %v2423_v52, %v3189_v4  ;;  %v561_v54 = vmul.f32 %v560_v39, %v2323_v38  ;;  %v572_v27 = vstv %s1266_s9  ;;  %v1285_v4 = vld [vmem:[%s3117_s6 + $0xe0] sm:$0xff]  ;;  %v1275_v50 = vld [vmem:[%s3117_s6 + $0x90] sm:$0xff] }
 0x1eb   :  { %v717_v29 = vadd.f32 %v2480_v3, %v683_v58 }
 0x1ec   :  { %1497 = vmatpush3.xpose.msra.mxu1 %v725_v13  ;;  %v650_v13 = vadd.f32 %v634_v11, %v616_v16  ;;  %v630_v16 = vmul.f32 %v2423_v52, %v3193_v40  ;;  %v577_v11 = vmul.f32 %v2415_v8, %v3194_v36  ;;  %v1280_v36 = vld [vmem:[%s3117_s6 + $0xb8] sm:$0xff] }
 0x1ed   :  { %1498 = vmatprep.subr.mxu1 %v3157_v26 }
 0x1ee   :  { %v684_v2 = vadd.f32 %v668_v56, %v650_v13  ;;  %v629_v13 = vmul.f32 %v2423_v52, %v3197_v44  ;;  %v576_v56 = vmul.f32 %v2415_v8, %v3198_v49  ;;  %v2700_v44 = vstv %s1299_s26  ;;  %v1646_v49 = vld [vmem:[%s3112_s1 + $0x178] sm:$0xff]  ;;  %s2954_s26 = sld [smem:[#allocation2 + $0x101]] }
 0x1f0   :  { %1499 = vmatpush3.xpose.msra.mxu1 %v724_v57  ;;  %v579_v57 = vmul.f32 %v2415_v8, %v3185_v31  ;;  %v718_v55 = vadd.f32 %v2480_v3, %v684_v2  ;;  %v663_v8 = vmul.f32 %v2433_v17, %v2304_v37  ;;  %v568_v37 = vstv %s1265_s30 }
 0x1f1   :  { %1500 = vmatprep.subr.mxu1 %v3157_v26 }
 0x1f2   :  { %v613_v20 = vadd.f32 %v597_v12, %v579_v57  ;;  %v558_v57 = vmul.f32 %v557_v19, %v2318_v25  ;;  %v610_v12 = vadd.f32 %v594_v51, %v576_v56  ;;  %v1647_v51 = vld [vmem:[%s3112_s1 + $0x1f8] sm:$0xff] }
 0x1f3   :  { %v1023_v19 = vmul.f32 %v1647_v51, %v2700_v44  ;;  %v1665_v51 = vld [vmem:[%s3112_s1 + $0x48] sm:$0xff] }
 0x1f4   :  { %1501 = vmatpush3.xpose.msra.mxu1 %v723_v9  ;;  %v666_v9 = vmul.f32 %v2433_v17, %v3188_v1  ;;  %v562_v24 = vadd.f32 %v561_v54, %v558_v57 }
 0x1f5   :  { %1502 = vmatprep.subr.mxu1 %v3157_v26 }
 0x1f6   :  { %v682_v18 = vadd.f32 %v666_v9, %v648_v32 }
 0x1f8   :  { %1503 = vmatpush3.xpose.msra.mxu1 %v722_v53  ;;  %v596_v53 = vmul.f32 %v2417_v30, %v3191_v48  ;;  %v716_v15 = vadd.f32 %v2480_v3, %v682_v18  ;;  %v628_v30 = vmul.f32 %v2423_v52, %v2309_v23  ;;  %v569_v52 = vmul.f32 %v568_v37, %v2356_v42  ;;  %v1288_v42 = vld [vmem:[%s3117_s6 + $0xf8] sm:$0xff]  ;;  %v1652_v37 = vld [vmem:[%s3112_s1 + $0xe8] sm:$0xff] }
 0x1f9   :  { %1504 = vmatprep.subr.mxu1 %v3157_v26  ;;  %1528 = vmatpush3.msra.mxu0 %v1288_v42 }
 0x1fa   :  { %v612_v14 = vadd.f32 %v596_v53, %v578_v63  ;;  %v644_v38 = vadd.f32 %v628_v30, %v610_v12  ;;  %1529 = vmatprep.subr.mxu0 %v3157_v26  ;;  %v1282_v63 = vld [vmem:[%s3117_s6 + $0xc8] sm:$0xff]  ;;  %v549_v53 = vld [vmem:[%s3118_s7] sm:$0xff]  ;;  %v1648_v12 = vld [vmem:[%s3112_s1 + $0x70] sm:$0xff] }
 0x1fb   :  { %v936_v30 = vmul.f32 %v1648_v12, %v2678_v0 }
 0x1fc   :  { %1505 = vmatpush3.xpose.msra.mxu1 %v721_v10  ;;  %v647_v10 = vadd.f32 %v631_v6, %v613_v20  ;;  %v646_v45 = vadd.f32 %v630_v16, %v612_v14  ;;  %v678_v1 = vadd.f32 %v662_v28, %v644_v38  ;;  %v1284_v6 = vld [vmem:[%s3117_s6 + $0xd8] sm:$0xff]  ;;  %v1281_v16 = vld [vmem:[%s3117_s6 + $0xc0] sm:$0xff]  ;;  %v1651_v38 = vld [vmem:[%s3112_s1 + $0x68] sm:$0xff] }
 0x1fd   :  { %1506 = vmatprep.subr.mxu1 %v3157_v26  ;;  %v935_v28 = vmul.f32 %v1651_v38, %v2678_v0 }
 0x1fe   :  { %v681_v41 = vadd.f32 %v665_v7, %v647_v10  ;;  %v680_v61 = vadd.f32 %v664_v34, %v646_v45  ;;  %v1644_v45 = vld [vmem:[%s3112_s1 + $0x78] sm:$0xff] }
 0x1ff   :  { %v937_v46 = vmul.f32 %v1644_v45, %v2678_v0  ;;  %v1645_v34 = vld [vmem:[%s3112_s1 + $0xf8] sm:$0xff]  ;;  %v1661_v45 = vld [vmem:[%s3112_s1 + $0x1e0] sm:$0xff] }
 0x200   :  { %1507 = vmatpush3.xpose.msra.mxu1 %v720_v43  ;;  %v611_v43 = vadd.f32 %v595_v21, %v577_v11  ;;  %v715_v60 = vadd.f32 %v2480_v3, %v681_v41  ;;  %v714_v2 = vadd.f32 %v2480_v3, %v680_v61  ;;  %v1279_v11 = vld [vmem:[%s3117_s6 + $0xb0] sm:$0xff]  ;;  %v2680_v21 = vstv %s1297_s24  ;;  %v1277_v41 = vld [vmem:[%s3117_s6 + $0xa0] sm:$0xff] }
 0x201   :  { %1508 = vmatprep.subr.mxu1 %v3157_v26 }
 0x202   :  { %v645_v31 = vadd.f32 %v629_v13, %v611_v43  ;;  %v955_v43 = vmul.f32 %v1645_v34, %v2680_v21  ;;  %v1276_v13 = vld [vmem:[%s3117_s6 + $0x98] sm:$0xff] }
 0x204   :  { %1509 = vmatpush3.xpose.msra.mxu1 %v719_v59  ;;  %v564_v59 = vstv %s1264_s29  ;;  %v679_v25 = vadd.f32 %v663_v8, %v645_v31  ;;  %v971_v39 = vadd.f32 %v955_v43, %v937_v46  ;;  %v1273_v31 = vld [vmem:[%s3117_s6 + $0x80] sm:$0xff]  ;;  %v1020_v46 = vmul.f32 %v1661_v45, %v2700_v44  ;;  %v1662_v43 = vld [vmem:[%s3112_s1 + $0x158] sm:$0xff] }
 0x205   :  { %1510 = vmatprep.subr.mxu1 %v3157_v26  ;;  %v565_v5 = vmul.f32 %v564_v59, %v2345_v62  ;;  %v696_v62 = vmul.f32 %v695_v33, %v2361_v22  ;;  %v1287_v33 = vld [vmem:[%s3117_s6 + $0xf0] sm:$0xff] }
 0x206   :  { %v713_v32 = vadd.f32 %v2480_v3, %v679_v25  ;;  %v1286_v3 = vld [vmem:[%s3117_s6 + $0xe8] sm:$0xff]  ;;  %1530 = vmatpush3.msra.mxu0 %v1287_v33  ;;  %v1649_v59 = vld [vmem:[%s3112_s1 + $0xf0] sm:$0xff]  ;;  %v1656_v33 = vld [vmem:[%s3112_s1 + $0xe0] sm:$0xff] }
 0x207   :  { %v566_v23 = vadd.f32 %v565_v5, %v562_v24  ;;  %v712_v20 = vadd.f32 %v696_v62, %v678_v1  ;;  %1531 = vmatprep.subr.mxu0 %v3157_v26  ;;  %v1650_v5 = vld [vmem:[%s3112_s1 + $0x170] sm:$0xff] }
 0x208   :  { %1511 = vmatpush3.xpose.msra.mxu1 %v718_v55  ;;  %1532 = vmatpush3.msra.mxu0 %v1286_v3  ;;  %v1653_v1 = vld [vmem:[%s3112_s1 + $0x1f0] sm:$0xff]  ;;  %v952_v3 = vmul.f32 %v1656_v33, %v2680_v21  ;;  %v1674_v33 = vld [vmem:[%s3112_s1 + $0x140] sm:$0xff] }
 0x209   :  { %1512 = vmatprep.subr.mxu1 %v3157_v26  ;;  %v570_v9 = vadd.f32 %v569_v52, %v566_v23  ;;  %1533 = vmatprep.subr.mxu0 %v3157_v26  ;;  %v953_v23 = vmul.f32 %v1652_v37, %v2680_v21  ;;  %v1041_v52 = vstv %s2728_s28  ;;  %v1022_v62 = vmul.f32 %v1653_v1, %v2700_v44 }
 0x20a   :  { %1534 = vmatpush3.msra.mxu0 %v1285_v4  ;;  %v2769_v4 = vmul.f32 0.0, %v1041_v52 }
 0x20b   :  { %v573_v17 = vadd.f32 %v572_v27, %v570_v9  ;;  %1535 = vmatprep.subr.mxu0 %v3157_v26  ;;  %v969_v9 = vadd.f32 %v953_v23, %v935_v28  ;;  %v1671_v28 = vld [vmem:[%s3112_s1 + $0xc0] sm:$0xff] }
 0x20c   :  { %1513 = vmatpush3.xpose.msra.mxu1 %v717_v29  ;;  %1536 = vmatpush3.msra.mxu0 %v1284_v6  ;;  %v1278_v29 = vld [vmem:[%s3117_s6 + $0xa8] sm:$0xff]  ;;  %v948_v37 = vmul.f32 %v1671_v28, %v2680_v21  ;;  %v1689_v28 = vld [vmem:[%s3112_s1 + $0x120] sm:$0xff] }
 0x20d   :  { %1514 = vmatprep.subr.mxu1 %v3157_v26  ;;  %1537 = vmatprep.subr.mxu0 %v3157_v26 }
 0x20e   :  { %1538 = vmatpush3.msra.mxu0 %v1283_v47 }
 0x20f   :  { %1539 = vmatprep.subr.mxu0 %v3157_v26 }
 0x210   :  { %1515 = vmatpush3.xpose.msra.mxu1 %v716_v15  ;;  %1540 = vmatpush3.msra.mxu0 %v1282_v63  ;;  %v2686_v15 = vstv %s1298_s25  ;;  %v1657_v63 = vld [vmem:[%s3112_s1 + $0x1e8] sm:$0xff]  ;;  %s2951_s25 = sld [smem:[#allocation2 + $0x100]] }
 0x211   :  { %1516 = vmatprep.subr.mxu1 %v3157_v26  ;;  %1541 = vmatprep.subr.mxu0 %v3157_v26  ;;  %v989_v56 = vmul.f32 %v1646_v49, %v2686_v15  ;;  %v988_v25 = vmul.f32 %v1650_v5, %v2686_v15 }
 0x212   :  { %1542 = vmatpush3.msra.mxu0 %v1281_v16 }
 0x213   :  { %1543 = vmatprep.subr.mxu0 %v3157_v26  ;;  %v1005_v61 = vadd.f32 %v989_v56, %v971_v39  ;;  %v1664_v56 = vld [vmem:[%s3112_s1 + $0xd0] sm:$0xff]  ;;  %v1666_v39 = vld [vmem:[%s3112_s1 + $0xc8] sm:$0xff] }
 0x214   :  { %1517 = vmatpush3.xpose.msra.mxu1 %v715_v60  ;;  %1544 = vmatpush3.msra.mxu0 %v1280_v36  ;;  %v1274_v60 = vld [vmem:[%s3117_s6 + $0x88] sm:$0xff] }
 0x215   :  { %1518 = vmatprep.subr.mxu1 %v3157_v26  ;;  %1545 = vmatprep.subr.mxu0 %v3157_v26  ;;  %v1039_v57 = vadd.f32 %v1023_v19, %v1005_v61  ;;  %v931_v19 = vmul.f32 %v1665_v51, %v2678_v0  ;;  %v1683_v51 = vld [vmem:[%s3112_s1 + $0x28] sm:$0xff] }
 0x216   :  { %1546 = vmatpush3.msra.mxu0 %v1279_v11 }
 0x217   :  { %1547 = vmatprep.subr.mxu0 %v3157_v26  ;;  %v1073_v16 = vadd.f32 %v2769_v4, %v1039_v57 }
 0x218   :  { %1519 = vmatpush3.xpose.msra.mxu1 %v714_v2  ;;  %1548 = vmatpush3.msra.mxu0 %v1278_v29  ;;  %v954_v2 = vmul.f32 %v1649_v59, %v2680_v21 }
 0x219   :  { %1520 = vmatprep.subr.mxu1 %v3157_v26  ;;  %1549 = vmatprep.subr.mxu0 %v3157_v26 }
 0x21a   :  { %1550 = vmatpush3.msra.mxu0 %v1277_v41  ;;  %v970_v24 = vadd.f32 %v954_v2, %v936_v30  ;;  %v1668_v30 = vld [vmem:[%s3112_s1 + $0x150] sm:$0xff] }
 0x21b   :  { %1551 = vmatprep.subr.mxu0 %v3157_v26  ;;  %v984_v59 = vmul.f32 %v1668_v30, %v2686_v15 }
 0x21c   :  { %1521 = vmatpush3.xpose.msra.mxu1 %v713_v32  ;;  %1552 = vmatpush3.msra.mxu0 %v1276_v13  ;;  %v1004_v32 = vadd.f32 %v988_v25, %v970_v24  ;;  %v985_v13 = vmul.f32 %v1662_v43, %v2686_v15  ;;  %v1669_v24 = vld [vmem:[%s3112_s1 + $0x148] sm:$0xff]  ;;  %v1670_v25 = vld [vmem:[%s3112_s1 + $0x40] sm:$0xff] }
 0x21d   :  { %1522 = vmatprep.subr.mxu1 %v3157_v26  ;;  %1553 = vmatprep.subr.mxu0 %v3157_v26  ;;  %v983_v5 = vmul.f32 %v1669_v24, %v2686_v15  ;;  %v930_v38 = vmul.f32 %v1670_v25, %v2678_v0 }
 0x21e   :  { %1554 = vmatpush3.msra.mxu0 %v1275_v50  ;;  %v1038_v6 = vadd.f32 %v1022_v62, %v1004_v32  ;;  %v950_v50 = vmul.f32 %v1664_v56, %v2680_v21  ;;  %v1672_v62 = vld [vmem:[%s3112_s1 + $0x1d0] sm:$0xff] }
 0x21f   :  { %1555 = vmatprep.subr.mxu0 %v3157_v26  ;;  %v1682_v56 = vld [vmem:[%s3112_s1 + $0x130] sm:$0xff] }
 0x220   :  { %1523 = vmatpush3.xpose.msra.mxu1 %v712_v20  ;;  %1556 = vmatpush3.msra.mxu0 %v1274_v60  ;;  %v1654_v20 = vld [vmem:[%s3112_s1 + $0x168] sm:$0xff]  ;;  %v1072_v11 = vadd.f32 %v2769_v4, %v1038_v6  ;;  %v949_v60 = vmul.f32 %v1666_v39, %v2680_v21  ;;  %v1675_v6 = vld [vmem:[%s3112_s1 + $0x38] sm:$0xff] }
 0x221   :  { %1597 = vmatprep.subr.mxu1 %v3157_v26  ;;  %1557 = vmatprep.subr.mxu0 %v3157_v26  ;;  %v987_v27 = vmul.f32 %v1654_v20, %v2686_v15  ;;  %v1684_v39 = vld [vmem:[%s3112_s1 + $0xa8] sm:$0xff] }
 0x222   :  { %1558 = vmatpush3.msra.mxu0 %v1273_v31  ;;  %v965_v2 = vadd.f32 %v949_v60, %v931_v19  ;;  %v927_v19 = vmul.f32 %v1683_v51, %v2678_v0  ;;  %v945_v60 = vmul.f32 %v1684_v39, %v2680_v21  ;;  %v1702_v39 = vld [vmem:[%s3112_s1 + $0x108] sm:$0xff] }
 0x223   :  { %1525 = vmatmul.mubr.f32.vlgmr.msra.gmra.mxu1 %v573_v17  ;;  %1562 = vmatprep.subr.mxu0 %v3157_v26  ;;  %v1655_v17 = vld [vmem:[%s3112_s1 + $0x60] sm:$0xff]  ;;  %v1003_v47 = vadd.f32 %v987_v27, %v969_v9  ;;  %v1018_v9 = vmul.f32 %v1672_v62, %v2700_v44  ;;  %v1673_v27 = vld [vmem:[%s3112_s1 + $0x1c8] sm:$0xff] }
 0x224   :  { %1629 = vmatprep.mubr.msk.f32.mxu1 %vm1771_vm0, %v3157_v26  ;;  %v934_v42 = vmul.f32 %v1655_v17, %v2678_v0  ;;  %v999_v20 = vadd.f32 %v983_v5, %v965_v2  ;;  %v1017_v17 = vmul.f32 %v1673_v27, %v2700_v44  ;;  %v961_v24 = vadd.f32 %v945_v60, %v927_v19  ;;  %v1688_v5 = vld [vmem:[%s3112_s1 + $0x128] sm:$0xff] }
 0x225   :  { %v979_v25 = vmul.f32 %v1688_v5, %v2686_v15  ;;  %v975_v60 = vmul.f32 %v1702_v39, %v2686_v15  ;;  %v1304_v39 = vld [vmem:[%s3117_s6 + $0x110] sm:$0xff] }
 0x227   :  { %v995_v27 = vadd.f32 %v979_v25, %v961_v24  ;;  %v1707_v25 = vld [vmem:[%s3112_s1 + $0x188] sm:$0xff] }
 0x2a3   :  { %v545_v48 = vpop.f32.mrf.mxu1 }
 0x2a4   :  { %vm550_vm5 = vcmp.ge.f32.partialorder %v545_v48, 0.0  ;;  %v551_v55 = vmul.f32 0.2, %v545_v48 }
 0x2a5   :  { %v1491_v58 = vpop.f32.mrf.mxu1 }
 0x2a6   :  { %v552_v18 = vsel %vm550_vm5, %v545_v48, %v551_v55  ;;  %v1021_v48 = vmul.f32 %v1657_v63, %v2700_v44  ;;  %v1658_v55 = vld [vmem:[%s3112_s1 + $0x160] sm:$0xff]  ;;  %v1676_v63 = vld [vmem:[%s3112_s1 + $0xb8] sm:$0xff] }
 0x2a7   :  { %v553_v10 = vmul.f32 %v552_v18, %v549_v53  ;;  %v986_v58 = vmul.f32 %v1658_v55, %v2686_v15  ;;  %v1659_v18 = vld [vmem:[%s3112_s1 + $0x58] sm:$0xff] }
 0x2a8   :  { %v1037_v29 = vadd.f32 %v1021_v48, %v1003_v47  ;;  %v929_v47 = vmul.f32 %v1675_v6, %v2678_v0  ;;  %v947_v48 = vmul.f32 %v1676_v63, %v2680_v21  ;;  %v1694_v63 = vld [vmem:[%s3112_s1 + $0x118] sm:$0xff] }
 0x2a9   :  { %v554_v35 = vadd.f32 %v553_v10, %v549_v53  ;;  %v968_v53 = vadd.f32 %v952_v3, %v934_v42  ;;  %v933_v10 = vmul.f32 %v1659_v18, %v2678_v0  ;;  %v964_v42 = vadd.f32 %v948_v37, %v930_v38 }
 0x2aa   :  { %v1071_v61 = vadd.f32 %v2769_v4, %v1037_v29  ;;  %v982_v3 = vmul.f32 %v1674_v33, %v2686_v15  ;;  %v978_v37 = vmul.f32 %v1689_v28, %v2686_v15 }
 0x2ab   :  { %555 = vst [vmem:[%s3119_s8] sm:$0xff] %v554_v35  ;;  %v1660_v35 = vld [vmem:[%s3112_s1 + $0xd8] sm:$0xff]  ;;  %v1002_v41 = vadd.f32 %v986_v58, %v968_v53  ;;  %v1033_v58 = vadd.f32 %v1017_v17, %v999_v20  ;;  %v1692_v17 = vld [vmem:[%s3112_s1 + $0x1a8] sm:$0xff] }
 0x2ac   :  { %v998_v18 = vadd.f32 %v982_v3, %v964_v42  ;;  %v1013_v42 = vmul.f32 %v1692_v17, %v2700_v44  ;;  %v1693_v3 = vld [vmem:[%s3112_s1 + $0x1a0] sm:$0xff] }
 0x2ad   :  { %v1036_v31 = vadd.f32 %v1020_v46, %v1002_v41  ;;  %v1680_v41 = vld [vmem:[%s3112_s1 + $0xb0] sm:$0xff]  ;;  %v1067_v46 = vadd.f32 %v2769_v4, %v1033_v58  ;;  %v1012_v6 = vmul.f32 %v1693_v3, %v2700_v44 }
 0x2ae   :  { %v946_v45 = vmul.f32 %v1680_v41, %v2680_v21  ;;  %v1696_v58 = vld [vmem:[%s3112_s1 + $0x90] sm:$0xff] }
 0x2af   :  { %v1070_v23 = vadd.f32 %v2769_v4, %v1036_v31 }
 0x2e3   :  { %v2664_v7 = vpop.f32.mrf.mxu1 }
 0x2e4   :  { %vm798_vm6 = vcmp.ne.f32.partialorder %v2664_v7, 0.0 }
 0x2e5   :  { %v1526_v14 = vpop.f32.mrf.mxu1  ;;  %v1272_v40 = vsel %vm798_vm6, 1.0, %v3157_v26 }
 0x2e6   :  { %801 = vadd.xlane.f32.xlu0 %v1272_v40  ;;  %v951_v14 = vmul.f32 %v1660_v35, %v2680_v21 }
 0x2e8   :  { %v967_v34 = vadd.f32 %v951_v14, %v933_v10  ;;  %v1677_v10 = vld [vmem:[%s3112_s1 + $0x1c0] sm:$0xff]  ;;  %v963_v14 = vadd.f32 %v947_v48, %v929_v47  ;;  %v977_v48 = vmul.f32 %v1694_v63, %v2686_v15 }
 0x2e9   :  { %v1016_v35 = vmul.f32 %v1677_v10, %v2700_v44 }
 0x2ea   :  { %v1001_v57 = vadd.f32 %v985_v13, %v967_v34  ;;  %v1681_v13 = vld [vmem:[%s3112_s1 + $0x1b8] sm:$0xff] }
 0x2eb   :  { %v1032_v34 = vadd.f32 %v1016_v35, %v998_v18  ;;  %v942_v18 = vmul.f32 %v1696_v58, %v2680_v21  ;;  %v1029_v35 = vadd.f32 %v1013_v42, %v995_v27  ;;  %v1710_v42 = vld [vmem:[%s3112_s1 + $0x180] sm:$0xff]  ;;  %v918_v58 = vstv %s1295_s13 }
 0x36f   :  { %v802_v54 = vpop.xlane.xlu0 %801 }
 0x370   :  { %v803_v8 = vadd.f32 1e-05, %v802_v54  ;;  %v1667_v54 = vld [vmem:[%s3112_s1 + $0x1d8] sm:$0xff] }
 0x372   :  { %1640 = vrcp.f32 %v803_v8  ;;  %v1019_v8 = vmul.f32 %v1667_v54, %v2700_v44 }
 0x374   :  { %v1035_v32 = vadd.f32 %v1019_v8, %v1001_v57  ;;  %v1686_v57 = vld [vmem:[%s3112_s1 + $0xa0] sm:$0xff]  ;;  %v1066_v8 = vadd.f32 %v2769_v4, %v1032_v34  ;;  %v1700_v34 = vld [vmem:[%s3112_s1 + $0x88] sm:$0xff] }
 0x375   :  { %v944_v54 = vmul.f32 %v1686_v57, %v2680_v21  ;;  %v1704_v57 = vld [vmem:[%s3112_s1 + $0x80] sm:$0xff] }
 0x376   :  { %v1069_v53 = vadd.f32 %v2769_v4, %v1035_v32 }
 0x37f   :  { %v1641_v40 = vpop.eup %1640 }
 0x380   :  { %v805_v36 = vmul.f32 %v1641_v40, %v2664_v7  ;;  %v1663_v7 = vld [vmem:[%s3112_s1 + $0x50] sm:$0xff]  ;;  %v1678_v40 = vld [vmem:[%s3112_s1 + $0x138] sm:$0xff] }
 0x381   :  { %v932_v49 = vmul.f32 %v1663_v7, %v2678_v0  ;;  %v1015_v7 = vmul.f32 %v1681_v13, %v2700_v44  ;;  %v1063_v13 = vadd.f32 %v2769_v4, %v1029_v35  ;;  %v1313_v35 = vld [vmem:[%s3117_s6 + $0x158] sm:$0xff] }
 0x382   :  { %1560 = vmatmul.mubr.f32.vlgmr.msra.gmra.mxu0 %v805_v36 }
 0x383   :  { %1563 = vmatpush3.xpose.msra.mxu0 %v1073_v16  ;;  %1594 = vmatprep.mubr.msk.f32.mxu0 %vm1771_vm0, %v3157_v26  ;;  %v966_v12 = vadd.f32 %v950_v50, %v932_v49  ;;  %v981_v16 = vmul.f32 %v1678_v40, %v2686_v15  ;;  %v980_v50 = vmul.f32 %v1682_v56, %v2686_v15 }
 0x384   :  { %1564 = vmatprep.subr.mxu0 %v3157_v26 }
 0x385   :  { %v1000_v1 = vadd.f32 %v984_v59, %v966_v12  ;;  %v997_v43 = vadd.f32 %v981_v16, %v963_v14  ;;  %v1687_v59 = vld [vmem:[%s3112_s1 + $0x1b0] sm:$0xff]  ;;  %v1697_v16 = vld [vmem:[%s3112_s1 + $0x198] sm:$0xff] }
 0x386   :  { %v1014_v2 = vmul.f32 %v1687_v59, %v2700_v44 }
 0x387   :  { %1565 = vmatpush3.xpose.msra.mxu0 %v1072_v11  ;;  %v1034_v55 = vadd.f32 %v1018_v9, %v1000_v1  ;;  %v1679_v11 = vld [vmem:[%s3112_s1 + $0x30] sm:$0xff]  ;;  %v1031_v12 = vadd.f32 %v1015_v7, %v997_v43  ;;  %v1691_v1 = vld [vmem:[%s3112_s1 + $0x98] sm:$0xff]  ;;  %v941_v43 = vmul.f32 %v1700_v34, %v2680_v21 }
 0x388   :  { %1566 = vmatprep.subr.mxu0 %v3157_v26  ;;  %v928_v29 = vmul.f32 %v1679_v11, %v2678_v0  ;;  %v943_v62 = vmul.f32 %v1691_v1, %v2680_v21 }
 0x389   :  { %v1068_v36 = vadd.f32 %v2769_v4, %v1034_v55  ;;  %v1065_v9 = vadd.f32 %v2769_v4, %v1031_v12  ;;  %v906_v12 = vstv %s2954_s26 }
 0x38a   :  { %v962_v49 = vadd.f32 %v946_v45, %v928_v29  ;;  %v1698_v29 = vld [vmem:[%s3112_s1 + $0x110] sm:$0xff]  ;;  %v1699_v45 = vld [vmem:[%s3112_s1 + $0x8] sm:$0xff] }
 0x38b   :  { %1567 = vmatpush3.xpose.msra.mxu0 %v1071_v61  ;;  %v1685_v61 = vld [vmem:[%s3112_s1 + $0x20] sm:$0xff]  ;;  %v976_v41 = vmul.f32 %v1698_v29, %v2686_v15 }
 0x38c   :  { %1568 = vmatprep.subr.mxu0 %v3157_v26  ;;  %v926_v31 = vmul.f32 %v1685_v61, %v2678_v0  ;;  %v996_v30 = vadd.f32 %v980_v50, %v962_v49  ;;  %v1701_v50 = vld [vmem:[%s3112_s1 + $0x190] sm:$0xff]  ;;  %v1703_v61 = vld [vmem:[%s3112_s1] sm:$0xff] }
 0x38d   :  { %v1010_v51 = vmul.f32 %v1701_v50, %v2700_v44  ;;  %v1307_v50 = vld [vmem:[%s3117_s6 + $0x128] sm:$0xff] }
 0x38e   :  { %v960_v38 = vadd.f32 %v944_v54, %v926_v31  ;;  %v1030_v20 = vadd.f32 %v1014_v2, %v996_v30  ;;  %v922_v31 = vmul.f32 %v1703_v61, %v2678_v0  ;;  %v940_v54 = vmul.f32 %v1704_v57, %v2680_v21  ;;  %v1706_v21 = vld [vmem:[%s3111_s0 + $0x8] sm:$0xff]  ;;  %v1302_v61 = vld [vmem:[%s3117_s6 + $0x100] sm:$0xff] }
 0x38f   :  { %1569 = vmatpush3.xpose.msra.mxu0 %v1070_v23  ;;  %v1690_v23 = vld [vmem:[%s3112_s1 + $0x18] sm:$0xff]  ;;  %v907_v5 = vmul.f32 %v1706_v21, %v906_v12 }
 0x390   :  { %1570 = vmatprep.subr.mxu0 %v3157_v26  ;;  %v925_v32 = vmul.f32 %v1690_v23, %v2678_v0  ;;  %v994_v33 = vadd.f32 %v978_v37, %v960_v38  ;;  %v1064_v10 = vadd.f32 %v2769_v4, %v1030_v20  ;;  %v1009_v38 = vmul.f32 %v1707_v25, %v2700_v44  ;;  %v1708_v37 = vld [vmem:[%s3112_s1 + $0x100] sm:$0xff] }
 0x391   :  { %v956_v28 = vadd.f32 %v940_v54, %v922_v31  ;;  %v974_v23 = vmul.f32 %v1708_v37, %v2686_v15  ;;  %v1008_v15 = vmul.f32 %v1710_v42, %v2700_v44 }
 0x392   :  { %v959_v47 = vadd.f32 %v943_v62, %v925_v32  ;;  %v1028_v14 = vadd.f32 %v1012_v6, %v994_v33  ;;  %v910_v32 = vstv %s2974_s2  ;;  %v914_v33 = vstv %s2996_s21  ;;  %v1711_v6 = vld [vmem:[%s3111_s0 + $0x18] sm:$0xff] }
 0x393   :  { %1571 = vmatpush3.xpose.msra.mxu0 %v1069_v53  ;;  %v1695_v53 = vld [vmem:[%s3112_s1 + $0x10] sm:$0xff]  ;;  %v990_v17 = vadd.f32 %v974_v23, %v956_v28 }
 0x394   :  { %1572 = vmatprep.subr.mxu0 %v3157_v26  ;;  %v924_v55 = vmul.f32 %v1695_v53, %v2678_v0  ;;  %v993_v40 = vadd.f32 %v977_v48, %v959_v47  ;;  %v1062_v7 = vadd.f32 %v2769_v4, %v1028_v14  ;;  %v915_v47 = vmul.f32 %v1711_v6, %v914_v33  ;;  %v1312_v14 = vld [vmem:[%s3117_s6 + $0x150] sm:$0xff] }
 0x395   :  { %v1024_v48 = vadd.f32 %v1008_v15, %v990_v17  ;;  %v1042_v53 = vmul.f32 %v1041_v52, %v2361_v22  ;;  %v1315_v22 = vld [vmem:[%s3117_s6 + $0x168] sm:$0xff]  ;;  %v1314_v52 = vld [vmem:[%s3117_s6 + $0x160] sm:$0xff] }
 0x396   :  { %v958_v11 = vadd.f32 %v942_v18, %v924_v55 }
 0x397   :  { %1573 = vmatpush3.xpose.msra.mxu0 %v1068_v36  ;;  %v1011_v36 = vmul.f32 %v1697_v16, %v2700_v44  ;;  %v1058_v55 = vadd.f32 %v1042_v53, %v1024_v48 }
 0x398   :  { %1574 = vmatprep.subr.mxu0 %v3157_v26  ;;  %v992_v56 = vadd.f32 %v976_v41, %v958_v11 }
 0x399   :  { %v1027_v49 = vadd.f32 %v1011_v36, %v993_v40  ;;  %v1311_v40 = vld [vmem:[%s3117_s6 + $0x148] sm:$0xff] }
 0x39a   :  { %v1026_v59 = vadd.f32 %v1010_v51, %v992_v56  ;;  %v1289_v36 = vld [vmem:[%s3118_s7 + $0x8] sm:$0xff]  ;;  %v1308_v56 = vld [vmem:[%s3117_s6 + $0x130] sm:$0xff]  ;;  %v1306_v51 = vld [vmem:[%s3117_s6 + $0x120] sm:$0xff] }
 0x39b   :  { %1575 = vmatpush3.xpose.msra.mxu0 %v1067_v46  ;;  %v923_v46 = vmul.f32 %v1699_v45, %v2678_v0  ;;  %v1061_v30 = vadd.f32 %v2769_v4, %v1027_v49  ;;  %v1705_v0 = vld [vmem:[%s3111_s0] sm:$0xff]  ;;  %v1309_v49 = vld [vmem:[%s3117_s6 + $0x138] sm:$0xff] }
 0x39c   :  { %1576 = vmatprep.subr.mxu0 %v3157_v26  ;;  %v1060_v1 = vadd.f32 %v2769_v4, %v1026_v59 }
 0x39d   :  { %v957_v19 = vadd.f32 %v941_v43, %v923_v46 }
 0x39f   :  { %1577 = vmatpush3.xpose.msra.mxu0 %v1066_v8  ;;  %v903_v8 = vstv %s2951_s25  ;;  %v991_v2 = vadd.f32 %v975_v60, %v957_v19  ;;  %v1305_v19 = vld [vmem:[%s3117_s6 + $0x118] sm:$0xff]  ;;  %v1303_v60 = vld [vmem:[%s3117_s6 + $0x108] sm:$0xff] }
 0x3a0   :  { %1578 = vmatprep.subr.mxu0 %v3157_v26  ;;  %v904_v24 = vmul.f32 %v1705_v0, %v903_v8 }
 0x3a1   :  { %v1025_v27 = vadd.f32 %v1009_v38, %v991_v2 }
 0x3a2   :  { %v908_v62 = vadd.f32 %v907_v5, %v904_v24 }
 0x3a3   :  { %1579 = vmatpush3.xpose.msra.mxu0 %v1065_v9  ;;  %v1709_v9 = vld [vmem:[%s3111_s0 + $0x10] sm:$0xff]  ;;  %v1059_v63 = vadd.f32 %v2769_v4, %v1025_v27 }
 0x3a4   :  { %1580 = vmatprep.subr.mxu0 %v3157_v26  ;;  %v911_v20 = vmul.f32 %v1709_v9, %v910_v32  ;;  %v1316_v4 = vld [vmem:[%s3117_s6 + $0x170] sm:$0xff] }
 0x3a6   :  { %v912_v3 = vadd.f32 %v911_v20, %v908_v62 }
 0x3a7   :  { %1581 = vmatpush3.xpose.msra.mxu0 %v1064_v10  ;;  %v1317_v10 = vld [vmem:[%s3117_s6 + $0x178] sm:$0xff] }
 0x3a8   :  { %1582 = vmatprep.subr.mxu0 %v3157_v26  ;;  %v916_v44 = vadd.f32 %v915_v47, %v912_v3  ;;  %1598 = vmatpush3.msra.mxu1 %v1317_v10 }
 0x3a9   :  { %1599 = vmatprep.subr.mxu1 %v3157_v26 }
 0x3aa   :  { %v919_v18 = vadd.f32 %v918_v58, %v916_v44  ;;  %1600 = vmatpush3.msra.mxu1 %v1316_v4 }
 0x3ab   :  { %1583 = vmatpush3.xpose.msra.mxu0 %v1063_v13  ;;  %1601 = vmatprep.subr.mxu1 %v3157_v26 }
 0x3ac   :  { %1584 = vmatprep.subr.mxu0 %v3157_v26  ;;  %1602 = vmatpush3.msra.mxu1 %v1315_v22 }
 0x3ad   :  { %1603 = vmatprep.subr.mxu1 %v3157_v26 }
 0x3ae   :  { %1604 = vmatpush3.msra.mxu1 %v1314_v52 }
 0x3af   :  { %1585 = vmatpush3.xpose.msra.mxu0 %v1062_v7  ;;  %1605 = vmatprep.subr.mxu1 %v3157_v26  ;;  %v1310_v7 = vld [vmem:[%s3117_s6 + $0x140] sm:$0xff] }
 0x3b0   :  { %1586 = vmatprep.subr.mxu0 %v3157_v26  ;;  %1606 = vmatpush3.msra.mxu1 %v1313_v35 }
 0x3b1   :  { %1607 = vmatprep.subr.mxu1 %v3157_v26 }
 0x3b2   :  { %1608 = vmatpush3.msra.mxu1 %v1312_v14 }
 0x3b3   :  { %1587 = vmatpush3.xpose.msra.mxu0 %v1061_v30  ;;  %1609 = vmatprep.subr.mxu1 %v3157_v26  ;;  %v1318_v30 = vld [vmem:[%s3118_s7 + $0x10] sm:$0xff] }
 0x3b4   :  { %1588 = vmatprep.subr.mxu0 %v3157_v26  ;;  %1610 = vmatpush3.msra.mxu1 %v1311_v40 }
 0x3b5   :  { %1611 = vmatprep.subr.mxu1 %v3157_v26 }
 0x3b6   :  { %1612 = vmatpush3.msra.mxu1 %v1310_v7 }
 0x3b7   :  { %1589 = vmatpush3.xpose.msra.mxu0 %v1060_v1  ;;  %1613 = vmatprep.subr.mxu1 %v3157_v26 }
 0x3b8   :  { %1590 = vmatprep.subr.mxu0 %v3157_v26  ;;  %1614 = vmatpush3.msra.mxu1 %v1309_v49 }
 0x3b9   :  { %1615 = vmatprep.subr.mxu1 %v3157_v26 }
 0x3ba   :  { %1616 = vmatpush3.msra.mxu1 %v1308_v56 }
 0x3bb   :  { %1591 = vmatpush3.xpose.msra.mxu0 %v1059_v63  ;;  %1617 = vmatprep.subr.mxu1 %v3157_v26 }
 0x3bc   :  { %1592 = vmatprep.subr.mxu0 %v3157_v26  ;;  %1618 = vmatpush3.msra.mxu1 %v1307_v50 }
 0x3bd   :  { %1619 = vmatprep.subr.mxu1 %v3157_v26 }
 0x3be   :  { %1620 = vmatpush3.msra.mxu1 %v1306_v51 }
 0x3bf   :  { %1593 = vmatpush3.xpose.msra.mxu0 %v1058_v55  ;;  %1621 = vmatprep.subr.mxu1 %v3157_v26 }
 0x3c0   :  { %1622 = vmatpush3.msra.mxu1 %v1305_v19 }
 0x3c1   :  { %1623 = vmatprep.subr.mxu1 %v3157_v26 }
 0x3c2   :  { %1595 = vmatmul.mubr.f32.vlgmr.msra.gmra.mxu0 %v919_v18  ;;  %1624 = vmatpush3.msra.mxu1 %v1304_v39 }
 0x3c3   :  { %1625 = vmatprep.subr.mxu1 %v3157_v26 }
 0x3c4   :  { %1626 = vmatpush3.msra.mxu1 %v1303_v60 }
 0x3c5   :  { %1627 = vmatprep.subr.mxu1 %v3157_v26 }
 0x3c6   :  { %1628 = vmatpush3.msra.mxu1 %v1302_v61 }
 0x442   :  { %v889_v16 = vpop.f32.mrf.mxu0 }
 0x443   :  { %vm895_vm7 = vcmp.ge.f32.partialorder %v889_v16, 0.0  ;;  %v896_v11 = vmul.f32 0.2, %v889_v16 }
 0x444   :  { %v1561_v29 = vpop.f32.mrf.mxu0 }
 0x445   :  { %v897_v41 = vsel %vm895_vm7, %v889_v16, %v896_v11 }
 0x446   :  { %v898_v45 = vmul.f32 %v1289_v36, %v897_v41 }
 0x448   :  { %v899_v46 = vadd.f32 %v1289_v36, %v898_v45 }
 0x44a   :  { %1290 = vst [vmem:[%s3119_s8 + $0x8] sm:$0xff] %v899_v46 }
 0x482   :  { %v1140_v34 = vpop.f32.mrf.mxu0 }
 0x483   :  { %vm1144_vm8 = vcmp.ne.f32.partialorder %v1140_v34, 0.0 }
 0x484   :  { %v1596_v43 = vpop.f32.mrf.mxu0  ;;  %v1301_v13 = vsel %vm1144_vm8, 1.0, %v3157_v26 }
 0x485   :  { %1147 = vadd.xlane.f32.xlu1 %v1301_v13 }
 0x50e   :  { %v1148_v31 = vpop.xlane.xlu1 %1147 }
 0x50f   :  { %v1149_v57 = vadd.f32 1e-05, %v1148_v31 }
 0x511   :  { %1642 = vrcp.f32 %v1149_v57 }
 0x51e   :  { %v1643_v54 = vpop.eup %1642 }
 0x51f   :  { %v1151_v8 = vmul.f32 %v1643_v54, %v1140_v34 }
 0x521   :  { %1630 = vmatmul.mubr.f32.vlgmr.msra.gmra.mxu1 %v1151_v8 }
 0x5e1   :  { %v1235_v12 = vpop.f32.mrf.mxu1 }
 0x5e2   :  { %vm1241_vm9 = vcmp.ge.f32.partialorder %v1235_v12, 0.0  ;;  %v1242_v59 = vmul.f32 0.2, %v1235_v12 }
 0x5e3   :  { %v1631_v2 = vpop.f32.mrf.mxu1 }
 0x5e4   :  { %v1243_v0 = vsel %vm1241_vm9, %v1235_v12, %v1242_v59 }
 0x5e5   :  { %v1244_v24 = vmul.f32 %v1318_v30, %v1243_v0 }
 0x5e7   :  { %v1245_v21 = vadd.f32 %v1318_v30, %v1244_v24 }
 0x5e9   :  { %1319 = vst [vmem:[%s3119_s8 + $0x10] sm:$0xff] %v1245_v21 }
 0x5ea   :  { %1252 = vsyncpa [#allocation3], 1 }
 0x5eb   :  { %1253 = vsyncpa [#allocation5], 1 }
 0x5ec   :  { %1254 = vsyncpa [#allocation8], 1 }

</bundles_post_ra>
